<compile_context>
chip_gen: v7x
topology: tpu7x:2x2x1
jax: 0.10.0
libtpu: 0.0.40
codegen_flags: <defaults>
</compile_context>

<pallas_src>
import functools
import numpy as np
import jax
import jax.numpy as jnp
from jax import lax
from jax.experimental import pallas as pl
from jax.experimental.pallas import tpu as pltpu


# ----------------------------- parameter setup (glue) -----------------------------

def _l2norm(v, eps=1e-12):
    return v / (jnp.sqrt(jnp.sum(v * v)) + eps)


def spectral_normalize(w_oihw, key, n_iter=1):
    """PyTorch-style spectral_norm: power iteration on W.view(Cout, -1)."""
    cout = w_oihw.shape[0]
    wmat = w_oihw.reshape(cout, -1)
    u = _l2norm(jax.random.normal(key, (cout,), dtype=w_oihw.dtype))
    v = _l2norm(wmat.T @ u)
    for _ in range(n_iter):
        v = _l2norm(wmat.T @ u)
        u = _l2norm(wmat @ v)
    sigma = u @ (wmat @ v)
    return w_oihw / sigma


# --------------------------------- Pallas kernel -----------------------------------

def disc_block_kernel(x_ref, w1_ref, w2_ref, w0_ref, b1_ref, b2_ref, b0_ref,
                      o_ref, pool_ref, *, H, W, Cin, Cout, per_tap):
    f32 = jnp.float32
    bf16 = jnp.bfloat16
    HW = H * W
    Hh, Wh = H // 2, W // 2

    x_bf = x_ref[0]                       # (H*W, Cin) bf16 straight from HBM
    x = x_bf.astype(f32)

    # w-boundary masks applied on the SOURCE side (2 multiplies per conv instead of 6):
    #   kw==0 taps read source column w-1  -> source column W-1 is never valid
    #   kw==2 taps read source column w+1  -> source column 0   is never valid
    # h boundaries are handled by the zero padding inside shift_rows.
    col = lax.broadcasted_iota(jnp.int32, (HW, 1), 0) % W
    keep_for_kw0 = (col <= W - 2).astype(f32)   # zeroes the last column
    keep_for_kw2 = (col >= 1).astype(f32)       # zeroes the first column

    def shift_rows(a, s):
        # out[p, :] = a[p + s, :], zero beyond the tile (sublane slice + concat, no MXU)
        if s == 0:
            return a
        pad = jnp.zeros((abs(s), a.shape[1]), a.dtype)
        if s > 0:
            return jnp.concatenate([a[s:, :], pad], axis=0)
        return jnp.concatenate([pad, a[: a.shape[0] + s, :]], axis=0)

    def conv3x3(a, w_ref_, cin):
        # a: (HW, cin) f32 (already ReLU'd). Shifts/masks stay f32 (portable incl. v5e's
        # f32-only VALU); MXU operands are bf16 with f32 accumulation.
        srcs = (a * keep_for_kw0, a, a * keep_for_kw2)   # indexed by kw
        if per_tap:
            # Production path (Cin/Cout >= 128): never materializes the (HW, 9*C) im2col
            # buffer; K per matmul stays MXU-aligned at real widths.
            acc = jnp.zeros((HW, Cout), f32)
            for kh in range(3):
                for kw in range(3):
                    tap = shift_rows(srcs[kw], (kh - 1) * W + (kw - 1)).astype(bf16)
                    w_tap = w_ref_[pl.ds((kh * 3 + kw) * cin, cin), :]
                    acc = acc + jnp.dot(tap, w_tap, preferred_element_type=f32)
            return acc
        # Tiny-C path (toy config): bf16 lane-concat im2col -> one dense MXU matmul.
        taps = []
        for kh in range(3):
            for kw in range(3):
                taps.append(shift_rows(srcs[kw], (kh - 1) * W + (kw - 1)).astype(bf16))
        cols = jnp.concatenate(taps, axis=1)             # (HW, 9*cin) bf16
        return jnp.dot(cols, w_ref_[...], preferred_element_type=f32)

    # ---- main branch: ReLU -> conv3x3 -> ReLU -> conv3x3 (0.25 pool scale in w2/b2) ----
    h1 = conv3x3(jnp.maximum(x, 0.0), w1_ref, Cin) + b1_ref[...]
    y = conv3x3(jnp.maximum(h1, 0.0), w2_ref, Cout) + b2_ref[...]

    # ---- shortcut branch: 1x1 conv on the pre-ReLU input (0.25 folded into w0/b0) ----
    y0 = jnp.dot(x_bf, w0_ref[...], preferred_element_type=f32) + b0_ref[...]

    # ---- residual add at full resolution, then ONE shared 2x2 average pool ----
    # avg-pool is linear and its 1/4 is already folded into the weights, so the pooled
    # output is just the 2x2 window sum of z at even (h, w).
    z = y + y0
    pool_ref[...] = z + shift_rows(z, 1) + shift_rows(z, W) + shift_rows(z, W + 1)

    # compaction: a single strided read picks the even-w positions of every row; an aligned
    # reshape + static slice then keeps only the even-h rows.
    evw = pool_ref[pl.ds(0, HW // 2, stride=2), :]        # (H*Wh, Cout), rows ordered (h, wo)
    pooled = evw.reshape(Hh, 2 * Wh, Cout)[:, :Wh, :]     # keep h even -> (Hh, Wh, Cout)
    o_ref[0] = pooled.astype(o_ref.dtype)


# ----------------------------------- wrapper ----------------------------------------

def _vmem_limit_bytes(H, W, Cin, Cout, per_tap):
    HW = H * W
    bf, f4 = 2, 4
    est = 2 * HW * Cin * bf                                  # double-buffered input block
    est += 2 * (H // 2) * (W // 2) * Cout * f4               # double-buffered output block
    est += 2 * (9 * Cin * Cout + 9 * Cout * Cout + Cin * Cout + 3 * Cout) * f4   # weights
    est += HW * Cout * f4                                    # pooling scratch
    if per_tap:
        est += 4 * HW * max(Cin, Cout) * f4                  # live f32 activations + acc
    else:
        est += 2 * HW * 9 * max(Cin, Cout) * bf              # materialized im2col (bf16)
        est += 4 * HW * max(Cin, Cout) * f4
    return int(min(100 * 2**20, max(32 * 2**20, 2 * est)))


@jax.jit
def disc_block(x_nchw, w1sn, b1, w2sn, b2, w0sn, b0):
    N, Cin, H, W = x_nchw.shape
    Cout = w1sn.shape[0]
    Hh, Wh = H // 2, W // 2
    assert H % 2 == 0 and W % 2 == 0, "DiscBlock avg-pool needs even H, W"
    assert Wh % 8 == 0, "pool compaction expects W/2 to be sublane-aligned (multiple of 8)"

    # Per-tap accumulation at production widths, lane-concat im2col at tiny widths.
    per_tap = (Cin >= 128) and (Cout >= 128)

    # layout glue (pure jnp, jit-friendly): NCHW -> (N, H*W, Cin), bf16 in HBM
    # (halves the dominant HBM read; MXU operands are bf16 anyway).
    x_flat = jnp.transpose(x_nchw, (0, 2, 3, 1)).reshape(N, H * W, Cin).astype(jnp.bfloat16)

    # per-tap dense weights in im2col order ((kh*3+kw)*Cin + ci), bf16 MXU operands.
    # The 2x2 average-pool's 1/4 is folded into w2/b2 and w0/b0 (exact in bf16: power of 2).
    w1_mat = jnp.transpose(w1sn, (2, 3, 1, 0)).reshape(9 * Cin, Cout).astype(jnp.bfloat16)
    w2_mat = (0.25 * jnp.transpose(w2sn, (2, 3, 1, 0)).reshape(9 * Cout, Cout)).astype(jnp.bfloat16)
    w0_mat = (0.25 * jnp.transpose(w0sn[:, :, 0, 0], (1, 0))).astype(jnp.bfloat16)
    b1r = b1.reshape(1, Cout).astype(jnp.float32)
    b2r = (0.25 * b2).reshape(1, Cout).astype(jnp.float32)
    b0r = (0.25 * b0).reshape(1, Cout).astype(jnp.float32)

    kernel = functools.partial(disc_block_kernel, H=H, W=W, Cin=Cin, Cout=Cout,
                               per_tap=per_tap)

    out_nhwc = pl.pallas_call(
        kernel,
        out_shape=jax.ShapeDtypeStruct((N, Hh, Wh, Cout), jnp.float32),
        grid_spec=pltpu.PrefetchScalarGridSpec(
            num_scalar_prefetch=0,
            grid=(N,),
            in_specs=[
                pl.BlockSpec((1, H * W, Cin), lambda n: (n, 0, 0)),
                pl.BlockSpec((9 * Cin, Cout), lambda n: (0, 0)),
                pl.BlockSpec((9 * Cout, Cout), lambda n: (0, 0)),
                pl.BlockSpec((Cin, Cout), lambda n: (0, 0)),
                pl.BlockSpec((1, Cout), lambda n: (0, 0)),
                pl.BlockSpec((1, Cout), lambda n: (0, 0)),
                pl.BlockSpec((1, Cout), lambda n: (0, 0)),
            ],
            out_specs=pl.BlockSpec((1, Hh, Wh, Cout), lambda n: (n, 0, 0, 0)),
            scratch_shapes=[pltpu.VMEM((H * W, Cout), jnp.float32)],
        ),
        compiler_params=pltpu.CompilerParams(
            dimension_semantics=("parallel",),
            vmem_limit_bytes=_vmem_limit_bytes(H, W, Cin, Cout, per_tap),
        ),
    )(x_flat, w1_mat, w2_mat, w0_mat, b1r, b2r, b0r)

    # layout glue: (N, Hh, Wh, Cout) -> NCHW
    return jnp.transpose(out_nhwc, (0, 3, 1, 2))


# --------------------------------- pure-JAX reference --------------------------------

def _avgpool2_nchw(x):
    N, C, H, W = x.shape
    return x.reshape(N, C, H // 2, 2, W // 2, 2).mean(axis=(3, 5))


def reference(x, w1, b1, w2, b2, w0, b0):
    dn = ("NCHW", "OIHW", "NCHW")
    h = jnp.maximum(x, 0.0)
    h = lax.conv_general_dilated(h, w1, (1, 1), [(1, 1), (1, 1)], dimension_numbers=dn)
    h = h + b1[None, :, None, None]
    h = jnp.maximum(h, 0.0)
    h = lax.conv_general_dilated(h, w2, (1, 1), [(1, 1), (1, 1)], dimension_numbers=dn)
    h = h + b2[None, :, None, None]
    h = _avgpool2_nchw(h)
    x0 = lax.conv_general_dilated(x, w0, (1, 1), [(0, 0), (0, 0)], dimension_numbers=dn)
    x0 = x0 + b0[None, :, None, None]
    x0 = _avgpool2_nchw(x0)
    return h + x0


# -------------------------------------- main -----------------------------------------

if __name__ == "__main__":
    key = jax.random.PRNGKey(0)
    keys = jax.random.split(key, 8)
    N, Cin, Cout, H, W = 2, 4, 8, 16, 16

    x = jax.random.normal(keys[0], (N, Cin, H, W), dtype=jnp.float32)

    def conv_init(k, cout, cin, ks):
        kw, kb = jax.random.split(k)
        bound = 1.0 / float(np.sqrt(cin * ks * ks))
        w = jax.random.uniform(kw, (cout, cin, ks, ks), jnp.float32, -bound, bound)
        b = jax.random.uniform(kb, (cout,), jnp.float32, -bound, bound)
        return w, b

    w1, b1 = conv_init(keys[1], Cout, Cin, 3)
    w2, b2 = conv_init(keys[2], Cout, Cout, 3)
    w0, b0 = conv_init(keys[3], Cout, Cin, 1)

    # spectral normalization (deterministic power iteration, plain JAX parameter prep)
    w1sn = spectral_normalize(w1, keys[4])
    w2sn = spectral_normalize(w2, keys[5])
    w0sn = spectral_normalize(w0, keys[6])

    out = disc_block(x, w1sn, b1, w2sn, b2, w0sn, b0)
    out = jax.block_until_ready(out)

    ref = reference(x, w1sn, b1, w2sn, b2, w0sn, b0)
    # Intentional precision trade-off: bf16 activations from HBM + bf16 MXU operands with
    # f32 accumulation (two stacked convs), hence the widened tolerance vs the f32 reference.
    if not np.allclose(np.asarray(out), np.asarray(ref), atol=3e-2, rtol=3e-2):
        raise AssertionError("Pallas DiscBlock does not match reference")
    print("KERNEL_OK")
</pallas_src>

<mosaic_0001>
module attributes {stable_mosaic.version = 11 : i64} {
  func.func @disc_block_kernel(%arg0: i32, %arg1: memref<1x256x4xbf16, #tpu.memory_space<vmem>>, %arg2: memref<36x8xbf16, #tpu.memory_space<vmem>>, %arg3: memref<72x8xbf16, #tpu.memory_space<vmem>>, %arg4: memref<4x8xbf16, #tpu.memory_space<vmem>>, %arg5: memref<1x8xf32, #tpu.memory_space<vmem>>, %arg6: memref<1x8xf32, #tpu.memory_space<vmem>>, %arg7: memref<1x8xf32, #tpu.memory_space<vmem>>, %arg8: memref<1x8x8x8xf32, #tpu.memory_space<vmem>>, %arg9: memref<256x8xf32, #tpu.memory_space<vmem>>) attributes {dimension_semantics = [#tpu.dimension_semantics<parallel>], iteration_bounds = array<i64: 2>, scalar_prefetch = 0 : i64, scratch_operands = 1 : i64, tpu.core_type = #tpu.core_type<tc>, window_params = [{transform_indices = @transform_0, window_bounds = array<i64: 1, 256, 4>}, {pipeline_mode = #tpu.pipeline_mode<synchronous>, transform_indices = @transform_1, window_bounds = array<i64: 36, 8>}, {pipeline_mode = #tpu.pipeline_mode<synchronous>, transform_indices = @transform_2, window_bounds = array<i64: 72, 8>}, {pipeline_mode = #tpu.pipeline_mode<synchronous>, transform_indices = @transform_3, window_bounds = array<i64: 4, 8>}, {pipeline_mode = #tpu.pipeline_mode<synchronous>, transform_indices = @transform_4, window_bounds = array<i64: 1, 8>}, {pipeline_mode = #tpu.pipeline_mode<synchronous>, transform_indices = @transform_5, window_bounds = array<i64: 1, 8>}, {pipeline_mode = #tpu.pipeline_mode<synchronous>, transform_indices = @transform_6, window_bounds = array<i64: 1, 8>}, {transform_indices = @transform_7, window_bounds = array<i64: 1, 8, 8, 8>}]} {
    %c0 = arith.constant 0 : index
    %c0_0 = arith.constant 0 : index
    %c0_1 = arith.constant 0 : index
    %0 = vector.load %arg1[%c0, %c0_0, %c0_1] : memref<1x256x4xbf16, #tpu.memory_space<vmem>>, vector<1x256x4xbf16>
    %1 = vector.shape_cast %0 : vector<1x256x4xbf16> to vector<256x4xbf16>
    %2 = arith.extf %1 : vector<256x4xbf16> to vector<256x4xf32>
    %3 = tpu.iota {dimensions = array<i32: 0>} : vector<256x1xi32>
    %c16_i32 = arith.constant 16 : i32
    %c0_i32 = arith.constant 0 : i32
    %4 = arith.cmpi eq, %c16_i32, %c0_i32 : i32
    %c1_i32 = arith.constant 1 : i32
    %5 = arith.select %4, %c1_i32, %c16_i32 : i32
    %6 = vector.broadcast %5 : i32 to vector<256x1xi32>
    %7 = arith.remsi %3, %6 : vector<256x1xi32>
    %c0_i32_2 = arith.constant 0 : i32
    %8 = vector.broadcast %c0_i32_2 : i32 to vector<256x1xi32>
    %9 = arith.cmpi ne, %7, %8 : vector<256x1xi32>
    %c0_i32_3 = arith.constant 0 : i32
    %10 = vector.broadcast %c0_i32_3 : i32 to vector<256x1xi32>
    %11 = arith.cmpi slt, %7, %10 : vector<256x1xi32>
    %c0_i32_4 = arith.constant 0 : i32
    %12 = arith.cmpi slt, %5, %c0_i32_4 : i32
    %13 = vector.broadcast %12 : i1 to vector<256x1xi1>
    %14 = vector.broadcast %13 : vector<256x1xi1> to vector<256x1xi1>
    %15 = arith.xori %11, %14 : vector<256x1xi1>
    %16 = arith.andi %15, %9 : vector<256x1xi1>
    %17 = vector.broadcast %5 : i32 to vector<256x1xi32>
    %18 = arith.addi %7, %17 : vector<256x1xi32>
    %19 = arith.select %16, %18, %7 : vector<256x1xi1>, vector<256x1xi32>
    %c14_i32 = arith.constant 14 : i32
    %20 = vector.broadcast %c14_i32 : i32 to vector<256x1xi32>
    %21 = arith.cmpi sle, %19, %20 : vector<256x1xi32>
    %22 = arith.extui %21 : vector<256x1xi1> to vector<256x1xi32>
    %23 = arith.sitofp %22 : vector<256x1xi32> to vector<256x1xf32>
    %c1_i32_5 = arith.constant 1 : i32
    %24 = vector.broadcast %c1_i32_5 : i32 to vector<256x1xi32>
    %25 = arith.cmpi sge, %19, %24 : vector<256x1xi32>
    %26 = arith.extui %25 : vector<256x1xi1> to vector<256x1xi32>
    %27 = arith.sitofp %26 : vector<256x1xi32> to vector<256x1xf32>
    %cst = arith.constant 0.000000e+00 : f32
    %28 = vector.broadcast %cst : f32 to vector<256x4xf32>
    %29 = arith.maximumf %2, %28 : vector<256x4xf32>
    %30 = vector.broadcast %23 : vector<256x1xf32> to vector<256x4xf32>
    %31 = arith.mulf %29, %30 : vector<256x4xf32>
    %32 = vector.broadcast %27 : vector<256x1xf32> to vector<256x4xf32>
    %33 = arith.mulf %29, %32 : vector<256x4xf32>
    %cst_6 = arith.constant 0.000000e+00 : f32
    %34 = vector.broadcast %cst_6 : f32 to vector<17x4xf32>
    %35 = vector.extract_strided_slice %31 {offsets = [0, 0], sizes = [239, 4], strides = [1, 1]} : vector<256x4xf32> to vector<239x4xf32>
    %36 = tpu.concatenate %34, %35 in 0 : vector<17x4xf32>, vector<239x4xf32> -> vector<256x4xf32>
    %37 = arith.truncf %36 : vector<256x4xf32> to vector<256x4xbf16>
    %cst_7 = arith.constant 0.000000e+00 : f32
    %38 = vector.broadcast %cst_7 : f32 to vector<16x4xf32>
    %39 = vector.extract_strided_slice %29 {offsets = [0, 0], sizes = [240, 4], strides = [1, 1]} : vector<256x4xf32> to vector<240x4xf32>
    %40 = tpu.concatenate %38, %39 in 0 : vector<16x4xf32>, vector<240x4xf32> -> vector<256x4xf32>
    %41 = arith.truncf %40 : vector<256x4xf32> to vector<256x4xbf16>
    %cst_8 = arith.constant 0.000000e+00 : f32
    %42 = vector.broadcast %cst_8 : f32 to vector<15x4xf32>
    %43 = vector.extract_strided_slice %33 {offsets = [0, 0], sizes = [241, 4], strides = [1, 1]} : vector<256x4xf32> to vector<241x4xf32>
    %44 = tpu.concatenate %42, %43 in 0 : vector<15x4xf32>, vector<241x4xf32> -> vector<256x4xf32>
    %45 = arith.truncf %44 : vector<256x4xf32> to vector<256x4xbf16>
    %cst_9 = arith.constant 0.000000e+00 : f32
    %46 = vector.broadcast %cst_9 : f32 to vector<1x4xf32>
    %47 = vector.extract_strided_slice %31 {offsets = [0, 0], sizes = [255, 4], strides = [1, 1]} : vector<256x4xf32> to vector<255x4xf32>
    %48 = tpu.concatenate %46, %47 in 0 : vector<1x4xf32>, vector<255x4xf32> -> vector<256x4xf32>
    %49 = arith.truncf %48 : vector<256x4xf32> to vector<256x4xbf16>
    %50 = arith.truncf %29 : vector<256x4xf32> to vector<256x4xbf16>
    %cst_10 = arith.constant 0.000000e+00 : f32
    %51 = vector.broadcast %cst_10 : f32 to vector<1x4xf32>
    %52 = vector.extract_strided_slice %33 {offsets = [1, 0], sizes = [255, 4], strides = [1, 1]} : vector<256x4xf32> to vector<255x4xf32>
    %53 = tpu.concatenate %52, %51 in 0 : vector<255x4xf32>, vector<1x4xf32> -> vector<256x4xf32>
    %54 = arith.truncf %53 : vector<256x4xf32> to vector<256x4xbf16>
    %cst_11 = arith.constant 0.000000e+00 : f32
    %55 = vector.broadcast %cst_11 : f32 to vector<15x4xf32>
    %56 = vector.extract_strided_slice %31 {offsets = [15, 0], sizes = [241, 4], strides = [1, 1]} : vector<256x4xf32> to vector<241x4xf32>
    %57 = tpu.concatenate %56, %55 in 0 : vector<241x4xf32>, vector<15x4xf32> -> vector<256x4xf32>
    %58 = arith.truncf %57 : vector<256x4xf32> to vector<256x4xbf16>
    %cst_12 = arith.constant 0.000000e+00 : f32
    %59 = vector.broadcast %cst_12 : f32 to vector<16x4xf32>
    %60 = vector.extract_strided_slice %29 {offsets = [16, 0], sizes = [240, 4], strides = [1, 1]} : vector<256x4xf32> to vector<240x4xf32>
    %61 = tpu.concatenate %60, %59 in 0 : vector<240x4xf32>, vector<16x4xf32> -> vector<256x4xf32>
    %62 = arith.truncf %61 : vector<256x4xf32> to vector<256x4xbf16>
    %cst_13 = arith.constant 0.000000e+00 : f32
    %63 = vector.broadcast %cst_13 : f32 to vector<17x4xf32>
    %64 = vector.extract_strided_slice %33 {offsets = [17, 0], sizes = [239, 4], strides = [1, 1]} : vector<256x4xf32> to vector<239x4xf32>
    %65 = tpu.concatenate %64, %63 in 0 : vector<239x4xf32>, vector<17x4xf32> -> vector<256x4xf32>
    %66 = arith.truncf %65 : vector<256x4xf32> to vector<256x4xbf16>
    %67 = tpu.concatenate %37, %41, %45, %49, %50, %54, %58, %62, %66 in 1 : vector<256x4xbf16>, vector<256x4xbf16>, vector<256x4xbf16>, vector<256x4xbf16>, vector<256x4xbf16>, vector<256x4xbf16>, vector<256x4xbf16>, vector<256x4xbf16>, vector<256x4xbf16> -> vector<256x36xbf16>
    %c0_14 = arith.constant 0 : index
    %c0_15 = arith.constant 0 : index
    %68 = vector.load %arg2[%c0_14, %c0_15] : memref<36x8xbf16, #tpu.memory_space<vmem>>, vector<36x8xbf16>
    %cst_16 = arith.constant dense<0.000000e+00> : vector<256x8xf32>
    %69 = tpu.matmul %67, %68, %cst_16 {dimension_numbers = #tpu.dot_dimension_numbers<[1], [0], [0], [1], [0, 0, 1, 1], [], []>} : vector<256x36xbf16>, vector<36x8xbf16>, vector<256x8xf32> -> vector<256x8xf32>
    %c0_17 = arith.constant 0 : index
    %c0_18 = arith.constant 0 : index
    %70 = vector.load %arg5[%c0_17, %c0_18] : memref<1x8xf32, #tpu.memory_space<vmem>>, vector<1x8xf32>
    %71 = vector.broadcast %70 : vector<1x8xf32> to vector<256x8xf32>
    %72 = arith.addf %69, %71 : vector<256x8xf32>
    %cst_19 = arith.constant 0.000000e+00 : f32
    %73 = vector.broadcast %cst_19 : f32 to vector<256x8xf32>
    %74 = arith.maximumf %72, %73 : vector<256x8xf32>
    %75 = vector.broadcast %23 : vector<256x1xf32> to vector<256x8xf32>
    %76 = arith.mulf %74, %75 : vector<256x8xf32>
    %77 = vector.broadcast %27 : vector<256x1xf32> to vector<256x8xf32>
    %78 = arith.mulf %74, %77 : vector<256x8xf32>
    %cst_20 = arith.constant 0.000000e+00 : f32
    %79 = vector.broadcast %cst_20 : f32 to vector<17x8xf32>
    %80 = vector.extract_strided_slice %76 {offsets = [0, 0], sizes = [239, 8], strides = [1, 1]} : vector<256x8xf32> to vector<239x8xf32>
    %81 = tpu.concatenate %79, %80 in 0 : vector<17x8xf32>, vector<239x8xf32> -> vector<256x8xf32>
    %82 = arith.truncf %81 : vector<256x8xf32> to vector<256x8xbf16>
    %cst_21 = arith.constant 0.000000e+00 : f32
    %83 = vector.broadcast %cst_21 : f32 to vector<16x8xf32>
    %84 = vector.extract_strided_slice %74 {offsets = [0, 0], sizes = [240, 8], strides = [1, 1]} : vector<256x8xf32> to vector<240x8xf32>
    %85 = tpu.concatenate %83, %84 in 0 : vector<16x8xf32>, vector<240x8xf32> -> vector<256x8xf32>
    %86 = arith.truncf %85 : vector<256x8xf32> to vector<256x8xbf16>
    %cst_22 = arith.constant 0.000000e+00 : f32
    %87 = vector.broadcast %cst_22 : f32 to vector<15x8xf32>
    %88 = vector.extract_strided_slice %78 {offsets = [0, 0], sizes = [241, 8], strides = [1, 1]} : vector<256x8xf32> to vector<241x8xf32>
    %89 = tpu.concatenate %87, %88 in 0 : vector<15x8xf32>, vector<241x8xf32> -> vector<256x8xf32>
    %90 = arith.truncf %89 : vector<256x8xf32> to vector<256x8xbf16>
    %cst_23 = arith.constant 0.000000e+00 : f32
    %91 = vector.broadcast %cst_23 : f32 to vector<1x8xf32>
    %92 = vector.extract_strided_slice %76 {offsets = [0, 0], sizes = [255, 8], strides = [1, 1]} : vector<256x8xf32> to vector<255x8xf32>
    %93 = tpu.concatenate %91, %92 in 0 : vector<1x8xf32>, vector<255x8xf32> -> vector<256x8xf32>
    %94 = arith.truncf %93 : vector<256x8xf32> to vector<256x8xbf16>
    %95 = arith.truncf %74 : vector<256x8xf32> to vector<256x8xbf16>
    %cst_24 = arith.constant 0.000000e+00 : f32
    %96 = vector.broadcast %cst_24 : f32 to vector<1x8xf32>
    %97 = vector.extract_strided_slice %78 {offsets = [1, 0], sizes = [255, 8], strides = [1, 1]} : vector<256x8xf32> to vector<255x8xf32>
    %98 = tpu.concatenate %97, %96 in 0 : vector<255x8xf32>, vector<1x8xf32> -> vector<256x8xf32>
    %99 = arith.truncf %98 : vector<256x8xf32> to vector<256x8xbf16>
    %cst_25 = arith.constant 0.000000e+00 : f32
    %100 = vector.broadcast %cst_25 : f32 to vector<15x8xf32>
    %101 = vector.extract_strided_slice %76 {offsets = [15, 0], sizes = [241, 8], strides = [1, 1]} : vector<256x8xf32> to vector<241x8xf32>
    %102 = tpu.concatenate %101, %100 in 0 : vector<241x8xf32>, vector<15x8xf32> -> vector<256x8xf32>
    %103 = arith.truncf %102 : vector<256x8xf32> to vector<256x8xbf16>
    %cst_26 = arith.constant 0.000000e+00 : f32
    %104 = vector.broadcast %cst_26 : f32 to vector<16x8xf32>
    %105 = vector.extract_strided_slice %74 {offsets = [16, 0], sizes = [240, 8], strides = [1, 1]} : vector<256x8xf32> to vector<240x8xf32>
    %106 = tpu.concatenate %105, %104 in 0 : vector<240x8xf32>, vector<16x8xf32> -> vector<256x8xf32>
    %107 = arith.truncf %106 : vector<256x8xf32> to vector<256x8xbf16>
    %cst_27 = arith.constant 0.000000e+00 : f32
    %108 = vector.broadcast %cst_27 : f32 to vector<17x8xf32>
    %109 = vector.extract_strided_slice %78 {offsets = [17, 0], sizes = [239, 8], strides = [1, 1]} : vector<256x8xf32> to vector<239x8xf32>
    %110 = tpu.concatenate %109, %108 in 0 : vector<239x8xf32>, vector<17x8xf32> -> vector<256x8xf32>
    %111 = arith.truncf %110 : vector<256x8xf32> to vector<256x8xbf16>
    %112 = tpu.concatenate %82, %86, %90, %94, %95, %99, %103, %107, %111 in 1 : vector<256x8xbf16>, vector<256x8xbf16>, vector<256x8xbf16>, vector<256x8xbf16>, vector<256x8xbf16>, vector<256x8xbf16>, vector<256x8xbf16>, vector<256x8xbf16>, vector<256x8xbf16> -> vector<256x72xbf16>
    %c0_28 = arith.constant 0 : index
    %c0_29 = arith.constant 0 : index
    %113 = vector.load %arg3[%c0_28, %c0_29] : memref<72x8xbf16, #tpu.memory_space<vmem>>, vector<72x8xbf16>
    %cst_30 = arith.constant dense<0.000000e+00> : vector<256x8xf32>
    %114 = tpu.matmul %112, %113, %cst_30 {dimension_numbers = #tpu.dot_dimension_numbers<[1], [0], [0], [1], [0, 0, 1, 1], [], []>} : vector<256x72xbf16>, vector<72x8xbf16>, vector<256x8xf32> -> vector<256x8xf32>
    %c0_31 = arith.constant 0 : index
    %c0_32 = arith.constant 0 : index
    %115 = vector.load %arg6[%c0_31, %c0_32] : memref<1x8xf32, #tpu.memory_space<vmem>>, vector<1x8xf32>
    %116 = vector.broadcast %115 : vector<1x8xf32> to vector<256x8xf32>
    %117 = arith.addf %114, %116 : vector<256x8xf32>
    %c0_33 = arith.constant 0 : index
    %c0_34 = arith.constant 0 : index
    %118 = vector.load %arg4[%c0_33, %c0_34] : memref<4x8xbf16, #tpu.memory_space<vmem>>, vector<4x8xbf16>
    %cst_35 = arith.constant dense<0.000000e+00> : vector<256x8xf32>
    %119 = tpu.matmul %1, %118, %cst_35 {dimension_numbers = #tpu.dot_dimension_numbers<[1], [0], [0], [1], [0, 0, 1, 1], [], []>} : vector<256x4xbf16>, vector<4x8xbf16>, vector<256x8xf32> -> vector<256x8xf32>
    %c0_36 = arith.constant 0 : index
    %c0_37 = arith.constant 0 : index
    %120 = vector.load %arg7[%c0_36, %c0_37] : memref<1x8xf32, #tpu.memory_space<vmem>>, vector<1x8xf32>
    %121 = vector.broadcast %120 : vector<1x8xf32> to vector<256x8xf32>
    %122 = arith.addf %119, %121 : vector<256x8xf32>
    %123 = arith.addf %117, %122 : vector<256x8xf32>
    %cst_38 = arith.constant 0.000000e+00 : f32
    %124 = vector.broadcast %cst_38 : f32 to vector<1x8xf32>
    %125 = vector.extract_strided_slice %123 {offsets = [1, 0], sizes = [255, 8], strides = [1, 1]} : vector<256x8xf32> to vector<255x8xf32>
    %126 = tpu.concatenate %125, %124 in 0 : vector<255x8xf32>, vector<1x8xf32> -> vector<256x8xf32>
    %127 = arith.addf %123, %126 : vector<256x8xf32>
    %cst_39 = arith.constant 0.000000e+00 : f32
    %128 = vector.broadcast %cst_39 : f32 to vector<16x8xf32>
    %129 = vector.extract_strided_slice %123 {offsets = [16, 0], sizes = [240, 8], strides = [1, 1]} : vector<256x8xf32> to vector<240x8xf32>
    %130 = tpu.concatenate %129, %128 in 0 : vector<240x8xf32>, vector<16x8xf32> -> vector<256x8xf32>
    %131 = arith.addf %127, %130 : vector<256x8xf32>
    %cst_40 = arith.constant 0.000000e+00 : f32
    %132 = vector.broadcast %cst_40 : f32 to vector<17x8xf32>
    %133 = vector.extract_strided_slice %123 {offsets = [17, 0], sizes = [239, 8], strides = [1, 1]} : vector<256x8xf32> to vector<239x8xf32>
    %134 = tpu.concatenate %133, %132 in 0 : vector<239x8xf32>, vector<17x8xf32> -> vector<256x8xf32>
    %135 = arith.addf %131, %134 : vector<256x8xf32>
    %c0_41 = arith.constant 0 : index
    %c0_42 = arith.constant 0 : index
    %136 = vector.load %arg9[%c0_41, %c0_42] : memref<256x8xf32, #tpu.memory_space<vmem>>, vector<256x8xf32>
    tpu.vector_store %arg9[%c0_41, %c0_42], %135 {strides = array<i32>} : memref<256x8xf32, #tpu.memory_space<vmem>>, vector<256x8xf32>,
    %c0_43 = arith.constant 0 : index
    %c0_44 = arith.constant 0 : index
    %137 = tpu.strided_load %arg9[%c0_43, %c0_44] {strides = array<i32: 2, 1>} : memref<256x8xf32, #tpu.memory_space<vmem>>, vector<128x8xf32>
    %138 = vector.shape_cast %137 : vector<128x8xf32> to vector<8x16x8xf32>
    %139 = vector.extract_strided_slice %138 {offsets = [0, 0, 0], sizes = [8, 8, 8], strides = [1, 1, 1]} : vector<8x16x8xf32> to vector<8x8x8xf32>
    %c0_45 = arith.constant 0 : index
    %c0_46 = arith.constant 0 : index
    %c0_47 = arith.constant 0 : index
    %c0_48 = arith.constant 0 : index
    %140 = vector.load %arg8[%c0_45, %c0_46, %c0_47, %c0_48] : memref<1x8x8x8xf32, #tpu.memory_space<vmem>>, vector<1x8x8x8xf32>
    %141 = vector.shape_cast %140 : vector<1x8x8x8xf32> to vector<8x8x8xf32>
    %142 = vector.shape_cast %139 : vector<8x8x8xf32> to vector<1x8x8x8xf32>
    tpu.vector_store %arg8[%c0_45, %c0_46, %c0_47, %c0_48], %142 {strides = array<i32>} : memref<1x8x8x8xf32, #tpu.memory_space<vmem>>, vector<1x8x8x8xf32>,
    return
  }
  func.func @transform_0(%arg0: i32) -> (i32, i32, i32) {
    %c0_i32 = arith.constant 0 : i32
    %c0_i32_0 = arith.constant 0 : i32
    %c0_i32_1 = arith.constant 0 : i32
    return %arg0, %c0_i32, %c0_i32_0 : i32, i32, i32
  }
  func.func @transform_1(%arg0: i32) -> (i32, i32) {
    %c0_i32 = arith.constant 0 : i32
    %c0_i32_0 = arith.constant 0 : i32
    %c0_i32_1 = arith.constant 0 : i32
    return %c0_i32, %c0_i32_0 : i32, i32
  }
  func.func @transform_2(%arg0: i32) -> (i32, i32) {
    %c0_i32 = arith.constant 0 : i32
    %c0_i32_0 = arith.constant 0 : i32
    %c0_i32_1 = arith.constant 0 : i32
    return %c0_i32, %c0_i32_0 : i32, i32
  }
  func.func @transform_3(%arg0: i32) -> (i32, i32) {
    %c0_i32 = arith.constant 0 : i32
    %c0_i32_0 = arith.constant 0 : i32
    %c0_i32_1 = arith.constant 0 : i32
    return %c0_i32, %c0_i32_0 : i32, i32
  }
  func.func @transform_4(%arg0: i32) -> (i32, i32) {
    %c0_i32 = arith.constant 0 : i32
    %c0_i32_0 = arith.constant 0 : i32
    %c0_i32_1 = arith.constant 0 : i32
    return %c0_i32, %c0_i32_0 : i32, i32
  }
  func.func @transform_5(%arg0: i32) -> (i32, i32) {
    %c0_i32 = arith.constant 0 : i32
    %c0_i32_0 = arith.constant 0 : i32
    %c0_i32_1 = arith.constant 0 : i32
    return %c0_i32, %c0_i32_0 : i32, i32
  }
  func.func @transform_6(%arg0: i32) -> (i32, i32) {
    %c0_i32 = arith.constant 0 : i32
    %c0_i32_0 = arith.constant 0 : i32
    %c0_i32_1 = arith.constant 0 : i32
    return %c0_i32, %c0_i32_0 : i32, i32
  }
  func.func @transform_7(%arg0: i32) -> (i32, i32, i32, i32) {
    %c0_i32 = arith.constant 0 : i32
    %c0_i32_0 = arith.constant 0 : i32
    %c0_i32_1 = arith.constant 0 : i32
    %c0_i32_2 = arith.constant 0 : i32
    return %arg0, %c0_i32, %c0_i32_0, %c0_i32_1 : i32, i32, i32, i32
  }
}

</mosaic_0001>

<bundles_post_ra>
// kernel: disc_block.1
= control target key start
LH: loop header
LB: loop body
LE: loop exit
PB: predicated region body
PF: predicated region fallthrough
CT: control target
= control target key end

     0   :  { %s4609_s24 = smov 0   ;;  %s6372_s0 = inlined_call_operand.vmem [shape: bf16[2,256,4], index: 0, kind: input, shape index: {}]   ;;  %s6373_s1 = inlined_call_operand.vmem [shape: bf16[36,8], index: 1, kind: input, shape index: {}]   ;;  %s6374_s2 = inlined_call_operand.vmem [shape: bf16[72,8], index: 2, kind: input, shape index: {}]   ;;  %s6375_s3 = inlined_call_operand.vmem [shape: bf16[4,8], index: 3, kind: input, shape index: {}]   ;;  %s6376_s4 = inlined_call_operand.vmem [shape: f32[1,8], index: 4, kind: input, shape index: {}]   ;;  %s6377_s5 = inlined_call_operand.vmem [shape: f32[1,8], index: 5, kind: input, shape index: {}]   ;;  %s6378_s6 = inlined_call_operand.vmem [shape: f32[1,8], index: 6, kind: input, shape index: {}]   ;;  %s6379_s7 = inlined_call_operand.vmem [shape: f32[2,8,8,8], index: 7, kind: output, shape index: {}]  }
   0x1 LB: > { %s4068_s25 = sadd.s32 4294967295, %s4553_s24   ;;  %p4072_p0 = scmp.ge.s32.totalorder %s4553_s24, 1  ;;  %s4553_s24 = sphi %s4609_s24, %s17_s24  }
   0x2   : > { %p237_p1 = scmp.lt.s32.totalorder %s4553_s24, 3 }
   0x4   : > { %p238_p2 = pnand %p4072_p0, %p237_p1 }
   0x6   : > { %241 = sbr.rel (%p238_p2) target bundleno = 1091 (0x443), region = 48 }
   0xd   : > { %p269_p3 = scmp.lt.s32.totalorder %s4068_s25, 1  ;;  %v344_v0 = vlaneseq  ;;  %v6380_v1 = vmov 0.0|0.0   ;;  %s4556_s26 = smov 4   ;;  %vm1232_vm0 = vcmask 1046528   ;;  %vm1079_vm1 = vcmask 1040384   ;;  %v4492_v47 = vld [vmem:[%s6373_s1] sm:$0xff]  }
   0xe   : > { %1378 = vrot.lane.b32.xlu0 %v6380_v1, %s4556_s26  ;;  %v6383_v18 = vmov 0.0   ;;  %s4558_s8 = smov 16   ;;  %4245 = vmatprep.subr.bf16.mxu0 %v4492_v47  ;;  %s4559_s11 = smov 8   ;;  %v4493_v63 = vld [vmem:[%s6373_s1 + $0x8] sm:$0xff]   ;;  %vm2009_vm13 = vcmask 1041408  }
   0xf   : > { %s6430_s25 = smov (!%p269_p3, %s4068_s25), 1  ;;  %v4621_v2 = vshrl.u32 %v344_v0, 7  ;;  %4246 = vmatpush3.bf16.msra.mxu0 %v4492_v47  ;;  %s4560_s14 = smov 12  }
  0x10   : > { %s4186_s27 = sshll.u32 %s6430_s25, 7  ;;  %4247 = vmatprep.subr.bf16.mxu0 %v4493_v63  ;;  %s4561_s15 = smov 20  }
  0x11   : > { %v381_v3 = vand.u32 15, %v4621_v2  ;;  %v346_v4 = vadd.s32 8, %v4621_v2  ;;  %v347_v5 = vadd.s32 16, %v4621_v2  ;;  %v348_v6 = vadd.s32 24, %v4621_v2  ;;  %s4631_s30 = scalar_lea.vmem %s6372_s0, %s4186_s27  ;;  %s4562_s16 = smov 24  }
  0x12   : > { %v349_v7 = vadd.s32 32, %v4621_v2  ;;  %v280_v8 = vld [vmem:[%s4631_s30] sm:$0xff]   ;;  %v282_v9 = vld [vmem:[%s4631_s30 + $0x8] sm:$0xff]   ;;  %v284_v17 = vld [vmem:[%s4631_s30 + $0x10] sm:$0xff]   ;;  %v350_v20 = vadd.s32 40, %v4621_v2  ;;  %v351_v51 = vadd.s32 48, %v4621_v2 }
  0x13   : > { %vm857_vm2 = vcmp.ge.s32.totalorder %v381_v3, 1  ;;  %v388_v10 = vand.u32 15, %v346_v4  ;;  %v395_v11 = vand.u32 15, %v347_v5  ;;  %v402_v12 = vand.u32 15, %v348_v6  ;;  %v286_v54 = vld [vmem:[%s4631_s30 + $0x18] sm:$0xff]   ;;  %4248 = vmatpush3.bf16.msra.mxu0 %v4493_v63  ;;  %s4563_s17 = smov 28  }
  0x14   : > { %v312_v13 = vunpack.c.l.bf16 %v280_v8  ;;  %v313_v14 = vunpack.c.h.bf16 %v280_v8  ;;  %v314_v15 = vunpack.c.l.bf16 %v282_v9  ;;  %v315_v16 = vunpack.c.h.bf16 %v282_v9  ;;  %s4564_s18 = smov 32   ;;  %s4565_s21 = smov 56  }
  0x15   : > { %v4638_v19 = vsel %vm857_vm2, 1.0, %v6383_v18  ;;  %vm762_vm3 = vcmp.le.s32.totalorder %v388_v10, 14  ;;  %vm859_vm4 = vcmp.ge.s32.totalorder %v395_v11, 1  ;;  %vm764_vm5 = vcmp.le.s32.totalorder %v402_v12, 14  ;;  %s4566_s22 = smov 64   ;;  %s4567_s27 = smov 40  }
  0x16   : > { %v953_v21 = vmax.f32 %v312_v13, 0.0  ;;  %v954_v22 = vmax.f32 %v313_v14, 0.0  ;;  %v955_v23 = vmax.f32 %v314_v15, 0.0  ;;  %v4641_v24 = vmax.f32 %v315_v16, 0.0  ;;  %s4568_s9 = smov 48  }
  0x17   : > { %v4644_v25 = vsel %vm762_vm3, 1.0, %v6383_v18  ;;  %v4647_v26 = vsel %vm859_vm4, 1.0, %v6383_v18  ;;  %v316_v27 = vunpack.c.l.bf16 %v284_v17  ;;  %v4656_v35 = vsel %vm764_vm5, 1.0, %v6383_v18 }
  0x18   : > { %v1186_v28 = vpack.c.bf16 %v954_v22, %v953_v21  ;;  %v4650_v29 = vpack.c.bf16 %v4641_v24, %v955_v23  ;;  %v1017_v30 = vmul.f32 %v4638_v19, %v953_v21  ;;  %v986_v31 = vmul.f32 %v4644_v25, %v954_v22 }
  0x19   : > { %v1080_v32 = vrot.slane %v953_v21, 7  ;;  %v1019_v33 = vmul.f32 %v4647_v26, %v955_v23  ;;  %v1234_v34 = vrot.slane %v954_v22, 1  ;;  %v988_v38 = vmul.f32 %v4656_v35, %v4641_v24 }
  0x1a   : > { %1380 = vrot.lane.b32.xlu0 %v1186_v28, %s4556_s26  ;;  %1509 = vrot.lane.b32.xlu1 %v4650_v29, %s4558_s8  ;;  %v1233_v36 = vrot.slane %v1017_v30, 1  ;;  %v1081_v37 = vrot.slane %v986_v31, 7  ;;  %v1083_v39 = vrot.slane %v955_v23, 7  ;;  %v409_v42 = vand.u32 15, %v349_v7 }
  0x1b   : > { %v1169_v40 = vsel %vm1079_vm1, 0.0, %v1080_v32  ;;  %v1236_v41 = vrot.slane %v1019_v33, 1  ;;  %v4664_v43 = vmax.f32 %v316_v27, 0.0  ;;  %v1085_v50 = vrot.slane %v988_v38, 7 }
  0x1c   : > { %v1325_v44 = vsel %vm1232_vm0, 0.0, %v1233_v36  ;;  %v1082_v45 = vsel %vm1079_vm1, %v1080_v32, %v1081_v37  ;;  %v1235_v46 = vsel %vm1232_vm0, %v1233_v36, %v1234_v34  ;;  %vm861_vm6 = vcmp.ge.s32.totalorder %v409_v42, 1  ;;  %v288_v36 = vld [vmem:[%s4631_s30 + $0x20] sm:$0xff]  }
  0x1d   : > { %v1326_v48 = vpack.c.bf16 %v1325_v44, %v6383_v18  ;;  %v1237_v49 = vsel %vm1232_vm0, %v1234_v34, %v1236_v41  ;;  %v4676_v52 = vpack.c.bf16 %v1082_v45, %v1169_v40  ;;  %v317_v53 = vunpack.c.h.bf16 %v284_v17 }
  0x1e   : > { %1507 = vrot.lane.b32.xlu0 %v1186_v28, %s4558_s8  ;;  %v1327_v55 = vpack.c.bf16 %v1237_v49, %v1235_v46  ;;  %v1084_v56 = vsel %vm1079_vm1, %v1081_v37, %v1083_v39  ;;  %v4682_v57 = vsel %vm861_vm6, 1.0, %v6383_v18  ;;  %v416_v58 = vand.u32 15, %v350_v20 }
  0x1f   : > { %1426 = vrot.lane.b32.xlu1 %v1326_v48, %s4559_s11  ;;  %v1086_v59 = vsel %vm1079_vm1, %v1083_v39, %v1085_v50  ;;  %v1021_v60 = vmul.f32 %v4682_v57, %v4664_v43  ;;  %v1238_v61 = vrot.slane %v4641_v24, 1  ;;  %v958_v62 = vmax.f32 %v317_v53, 0.0  ;;  %v290_v53 = vld [vmem:[%s4631_s30 + $0x28] sm:$0xff]  }
  0x20   : > { %vm766_vm7 = vcmp.le.s32.totalorder %v416_v58, 14  ;;  %v318_v0 = vunpack.c.l.bf16 %v286_v54  ;;  %v423_v3 = vand.u32 15, %v351_v51  ;;  %v4697_v6 = vpack.c.bf16 %v1086_v59, %v1084_v56 }
  0x21   : > { %v1240_v4 = vrot.slane %v1021_v60, 1  ;;  %v4694_v5 = vsel %vm766_vm7, 1.0, %v6383_v18  ;;  %v1239_v9 = vsel %vm1232_vm0, %v1236_v41, %v1238_v61  ;;  %v1087_v11 = vrot.slane %v4664_v43, 7 }
  0x22   : > { %1474 = vrot.lane.b32.xlu0 %v4676_v52, %s4560_s14  ;;  %v990_v7 = vmul.f32 %v4694_v5, %v958_v62  ;;  %vm863_vm8 = vcmp.ge.s32.totalorder %v423_v3, 1  ;;  %v4700_v8 = vmax.f32 %v318_v0, 0.0  ;;  %v352_v14 = vadd.s32 56, %v4621_v2 }
  0x23   : > { %1428 = vrot.lane.b32.xlu1 %v1327_v55, %s4559_s11  ;;  %v1241_v10 = vsel %vm1232_vm0, %v1238_v61, %v1240_v4  ;;  %v4706_v12 = vsel %vm863_vm8, 1.0, %v6383_v18  ;;  %v1088_v17 = vsel %vm1079_vm1, %v1085_v50, %v1087_v11  ;;  %v1242_v23 = vrot.slane %v958_v62, 1 }
  0x24   : > { %v1089_v13 = vrot.slane %v990_v7, 7  ;;  %v1328_v15 = vpack.c.bf16 %v1241_v10, %v1239_v9  ;;  %v4714_v16 = vmul.f32 %v4706_v12, %v4700_v8  ;;  %v430_v21 = vand.u32 15, %v352_v14 }
  0x25   : > { %v319_v27 = vunpack.c.h.bf16 %v286_v54  ;;  %v353_v28 = vadd.s32 64, %v4621_v2  ;;  %v1188_v30 = vpack.c.bf16 %v958_v62, %v4664_v43  ;;  %v1243_v31 = vsel %vm1232_vm0, %v1240_v4, %v1242_v23 }
  0x26   : > { %1540 = vrot.lane.b32.xlu0 %v1327_v55, %s4561_s15  ;;  %v1090_v20 = vsel %vm1079_vm1, %v1087_v11, %v1089_v13  ;;  %v1244_v24 = vrot.slane %v4714_v16, 1  ;;  %vm768_vm9 = vcmp.le.s32.totalorder %v430_v21, 14  ;;  %v354_v39 = vadd.s32 72, %v4621_v2 }
  0x27   : > { %1476 = vrot.lane.b32.xlu1 %v4697_v6, %s4560_s14  ;;  %v4721_v22 = vpack.c.bf16 %v1090_v20, %v1088_v17  ;;  %v960_v33 = vmax.f32 %v319_v27, 0.0  ;;  %v4733_v34 = vsel %vm768_vm9, 1.0, %v6383_v18  ;;  %v437_v38 = vand.u32 15, %v353_v28 }
  0x28   : > { %v1245_v32 = vsel %vm1232_vm0, %v1242_v23, %v1244_v24  ;;  %v320_v41 = vunpack.c.l.bf16 %v288_v36  ;;  %v444_v42 = vand.u32 15, %v354_v39  ;;  %v1091_v43 = vrot.slane %v4700_v8, 7 }
  0x29   : > { %v1329_v37 = vpack.c.bf16 %v1245_v32, %v1243_v31  ;;  %v992_v40 = vmul.f32 %v4733_v34, %v960_v33  ;;  %vm865_vm10 = vcmp.ge.s32.totalorder %v437_v38, 1  ;;  %v321_v46 = vunpack.c.h.bf16 %v288_v36  ;;  %v292_v36 = vld [vmem:[%s4631_s30 + $0x30] sm:$0xff]  }
  0x2a   : > { %1573 = vrot.lane.b32.xlu0 %v4697_v6, %s4562_s16  ;;  %v961_v45 = vmax.f32 %v320_v41, 0.0  ;;  %v4745_v47 = vsel %vm865_vm10, 1.0, %v6383_v18  ;;  %v355_v48 = vadd.s32 80, %v4621_v2  ;;  %vm770_vm11 = vcmp.le.s32.totalorder %v444_v42, 14 }
  0x2b   : > { %1542 = vrot.lane.b32.xlu1 %v1328_v15, %s4561_s15  ;;  %v1093_v44 = vrot.slane %v992_v40, 7  ;;  %v1092_v49 = vsel %vm1079_vm1, %v1089_v13, %v1091_v43  ;;  %v962_v51 = vmax.f32 %v321_v46, 0.0  ;;  %v4755_v54 = vsel %vm770_vm11, 1.0, %v6383_v18 }
  0x2c   : > { %v451_v55 = vand.u32 15, %v355_v48  ;;  %v1246_v58 = vrot.slane %v960_v33, 1  ;;  %v322_v59 = vunpack.c.l.bf16 %v290_v53  ;;  %v1189_v62 = vpack.c.bf16 %v960_v33, %v4700_v8 }
  0x2d   : > { %v1094_v50 = vsel %vm1079_vm1, %v1091_v43, %v1093_v44  ;;  %v994_v61 = vmul.f32 %v4755_v54, %v962_v51  ;;  %v1095_v4 = vrot.slane %v961_v45, 7  ;;  %v356_v10 = vadd.s32 88, %v4621_v2 }
  0x2e   : > { %1605 = vrot.lane.b32.xlu0 %v4650_v29, %s4563_s17  ;;  %v4760_v56 = vpack.c.bf16 %v1094_v50, %v1092_v49  ;;  %vm867_vm12 = vcmp.ge.s32.totalorder %v451_v55, 1  ;;  %v1247_v63 = vsel %vm1232_vm0, %v1244_v24, %v1246_v58  ;;  %v4768_v0 = vmax.f32 %v322_v59, 0.0  ;;  %v294_v55 = vld [vmem:[%s4631_s30 + $0x38] sm:$0xff]  }
  0x2f   : > { %1575 = vrot.lane.b32.xlu1 %v4721_v22, %s4562_s16  ;;  %v1097_v7 = vrot.slane %v994_v61, 7  ;;  %v4772_v9 = vsel %vm867_vm12, 1.0, %v6383_v18  ;;  %v1096_v13 = vsel %vm1079_vm1, %v1093_v44, %v1095_v4  ;;  %v458_v16 = vand.u32 15, %v356_v10 }
  0x30   : > { %v4779_v8 = vmul.f32 %v4772_v9, %v4768_v0  ;;  %v1250_v20 = vrot.slane %v962_v51, 1  ;;  %v323_v23 = vunpack.c.h.bf16 %v290_v53  ;;  %v357_v24 = vadd.s32 96, %v4621_v2 }
  0x31   : > { %v1098_v14 = vsel %vm1079_vm1, %v1095_v4, %v1097_v7  ;;  %vm772_vm14 = vcmp.le.s32.totalorder %v458_v16, 14  ;;  %v1190_v28 = vpack.c.bf16 %v962_v51, %v961_v45  ;;  %v358_v39 = vadd.s32 104, %v4621_v2 }
  0x32   : > { %1637 = vrot.lane.b32.xlu0 %v1328_v15, %s4564_s18  ;;  %v4789_v17 = vpack.c.bf16 %v1098_v14, %v1096_v13  ;;  %v1252_v21 = vrot.slane %v4779_v8, 1  ;;  %v964_v32 = vmax.f32 %v323_v23, 0.0  ;;  %v4801_v33 = vsel %vm772_vm14, 1.0, %v6383_v18 }
  0x33   : > { %1607 = vrot.lane.b32.xlu1 %v1188_v30, %s4563_s17  ;;  %v465_v38 = vand.u32 15, %v357_v24  ;;  %v324_v41 = vunpack.c.l.bf16 %v292_v36  ;;  %v472_v42 = vand.u32 15, %v358_v39  ;;  %v1099_v43 = vrot.slane %v4768_v0, 7 }
  0x34   : > { %v1253_v31 = vsel %vm1232_vm0, %v1250_v20, %v1252_v21  ;;  %v996_v40 = vmul.f32 %v4801_v33, %v964_v32  ;;  %v325_v46 = vunpack.c.h.bf16 %v292_v36  ;;  %v359_v49 = vadd.s32 112, %v4621_v2 }
  0x35   : > { %vm869_vm15 = vcmp.ge.s32.totalorder %v465_v38, 1  ;;  %vm774_vm2 = vcmp.le.s32.totalorder %v472_v42, 14  ;;  %v1100_v50 = vsel %vm1079_vm1, %v1097_v7, %v1099_v43  ;;  %v1254_v61 = vrot.slane %v964_v32, 1 }
  0x36   : > { %1639 = vrot.lane.b32.xlu0 %v1329_v37, %s4564_s18  ;;  %v1101_v44 = vrot.slane %v996_v40, 7  ;;  %v4812_v48 = vsel %vm869_vm15, 1.0, %v6383_v18  ;;  %v966_v53 = vmax.f32 %v325_v46, 0.0  ;;  %v479_v59 = vand.u32 15, %v359_v49  ;;  %v296_v40 = vld [vmem:[%s4631_s30 + $0x40] sm:$0xff]  }
  0x37   : > { %1382 = vrot.lane.b32.xlu1 %v4650_v29, %s4556_s26  ;;  %v1025_v29 = vmul.f32 %v4745_v47, %v961_v45  ;;  %v965_v45 = vmax.f32 %v324_v41, 0.0  ;;  %v1191_v4 = vpack.c.bf16 %v964_v32, %v4768_v0  ;;  %v1255_v7 = vsel %vm1232_vm0, %v1252_v21, %v1254_v61 }
  0x38   : > { %vm871_vm3 = vcmp.ge.s32.totalorder %v479_v59, 1  ;;  %vm1669_vm10 = vcmask 31744   ;;  %vm1718_vm11 = vcmask 64512   ;;  %vm1751_vm14 = vcmask 97280  }
  0x39   : > { %v1248_v60 = vrot.slane %v1025_v29, 1  ;;  %v1102_v29 = vsel %vm1079_vm1, %v1099_v43, %v1101_v44  ;;  %v1029_v51 = vmul.f32 %v4812_v48, %v965_v45  ;;  %v1103_v8 = vrot.slane %v965_v45, 7 }
  0x3a   : > { %1430 = vrot.lane.b32.xlu0 %v1328_v15, %s4559_s11  ;;  %v4494_v15 = vld [vmem:[%s6373_s1 + $0x10] ss:$0 sps:$4 sm:$0x33]   ;;  %v4839_v14 = vsel %vm871_vm3, 1.0, %v6383_v18  ;;  %v1192_v32 = vpack.c.bf16 %v966_v53, %v965_v45  ;;  %v362_v43 = vadd.s32 136, %v4621_v2  ;;  %v328_v45 = vunpack.c.l.bf16 %v296_v40 }
  0x3b   : > { %1384 = vrot.lane.b32.xlu1 %v1188_v30, %s4556_s26  ;;  %v1249_v3 = vsel %vm1232_vm0, %v1246_v58, %v1248_v60  ;;  %4465 = vmatprep.subr.msk.bf16.mxu0 %vm2009_vm13, %v4494_v15  ;;  %v2011_v27 = vsel %vm2009_vm13, %v4494_v15, 0  ;;  %v4822_v58 = vsel %vm774_vm2, 1.0, %v6383_v18  ;;  %v360_v15 = vadd.s32 120, %v4621_v2 }
  0x3c   : > { %v1330_v11 = vpack.c.bf16 %v1249_v3, %v1247_v63  ;;  %4250 = vmatpush3.bf16.msra.mxu0 %v2011_v27  ;;  %v1256_v63 = vrot.slane %v1029_v51, 1  ;;  %v998_v3 = vmul.f32 %v4822_v58, %v966_v53  ;;  %v1258_v27 = vrot.slane %v966_v53, 1 }
  0x3d   : > { %v486_v23 = vand.u32 15, %v360_v15  ;;  %v500_v46 = vand.u32 15, %v362_v43  ;;  %v329_v51 = vunpack.c.h.bf16 %v296_v40  ;;  %vm1784_vm15 = vcmask 130048  }
  0x3e   : > { %1478 = vrot.lane.b32.xlu0 %v4721_v22, %s4560_s14  ;;  %v1105_v13 = vrot.slane %v998_v3, 7  ;;  %v1259_v36 = vsel %vm1232_vm0, %v1256_v63, %v1258_v27  ;;  %v298_v3 = vld [vmem:[%s4631_s30 + $0x48] sm:$0xff]   ;;  %vm1817_vm2 = vcmask 162816   ;;  %vm1850_vm3 = vcmask 195584  }
  0x3f   : > { %1432 = vrot.lane.b32.xlu1 %v1329_v37, %s4559_s11  ;;  %vm776_vm4 = vcmp.le.s32.totalorder %v486_v23, 14  ;;  %vm778_vm6 = vcmp.le.s32.totalorder %v500_v46, 14  ;;  %v330_v15 = vunpack.c.l.bf16 %v298_v3  ;;  %v331_v46 = vunpack.c.h.bf16 %v298_v3 }
  0x40   : > { %v1106_v21 = vsel %vm1079_vm1, %v1103_v8, %v1105_v13  ;;  %v4860_v39 = vsel %vm776_vm4, 1.0, %v6383_v18  ;;  %vm1883_vm4 = vcmask 228352  }
  0x42   : > { %1511 = vrot.lane.b32.xlu0 %v1188_v30, %s4558_s8  ;;  %v1251_v30 = vsel %vm1232_vm0, %v1248_v60, %v1250_v20  ;;  %v4827_v60 = vpack.c.bf16 %v1102_v29, %v1100_v50  ;;  %v1104_v20 = vsel %vm1079_vm1, %v1101_v44, %v1103_v8  ;;  %v969_v29 = vmax.f32 %v328_v45, 0.0 }
  0x43   : > { %1480 = vrot.lane.b32.xlu1 %v4760_v56, %s4560_s14  ;;  %v4851_v24 = vpack.c.bf16 %v1106_v21, %v1104_v20  ;;  %v4896_v21 = vmax.f32 %v330_v15, 0.0 }
  0x46   : > { %1544 = vrot.lane.b32.xlu0 %v1329_v37, %s4561_s15  ;;  %v1331_v37 = vpack.c.bf16 %v1253_v31, %v1251_v30  ;;  %v327_v30 = vunpack.c.h.bf16 %v294_v55  ;;  %v361_v31 = vadd.s32 128, %v4621_v2 }
  0x47   : > { %1513 = vrot.lane.b32.xlu1 %v1189_v62, %s4558_s8 }
  0x48   : > { %v968_v38 = vmax.f32 %v327_v30, 0.0  ;;  %v493_v42 = vand.u32 15, %v361_v31 }
  0x4a   : > { %1577 = vrot.lane.b32.xlu0 %v4760_v56, %s4562_s16  ;;  %v1000_v44 = vmul.f32 %v4860_v39, %v968_v38  ;;  %vm873_vm5 = vcmp.ge.s32.totalorder %v493_v42, 1  ;;  %v1262_v8 = vrot.slane %v968_v38, 1 }
  0x4b   : > { %1546 = vrot.lane.b32.xlu1 %v1330_v11, %s4561_s15  ;;  %v4871_v53 = vsel %vm873_vm5, 1.0, %v6383_v18  ;;  %vm1916_vm5 = vcmask 261120  }
  0x4c   : > { %v1109_v50 = vrot.slane %v1000_v44, 7 }
  0x4e   : > { %1609 = vrot.lane.b32.xlu0 %v1189_v62, %s4563_s17 }
  0x4f   : > { %1579 = vrot.lane.b32.xlu1 %v4789_v17, %s4562_s16 }
  0x52   : > { %1641 = vrot.lane.b32.xlu0 %v1330_v11, %s4564_s18 }
  0x53   : > { %1611 = vrot.lane.b32.xlu1 %v1190_v28, %s4563_s17 }
  0x56   : > { %1643 = vrot.lane.b32.xlu0 %v1331_v37, %s4564_s18 }
  0x57   : > { %1386 = vrot.lane.b32.xlu1 %v1189_v62, %s4556_s26  ;;  %v326_v62 = vunpack.c.l.bf16 %v294_v55  ;;  %v363_v55 = vadd.s32 144, %v4621_v2 }
  0x59   : > { %v4835_v10 = vmax.f32 %v326_v62, 0.0  ;;  %v1033_v62 = vmul.f32 %v4871_v53, %v969_v29 }
  0x5a   : > { %1434 = vrot.lane.b32.xlu0 %v1330_v11, %s4559_s11  ;;  %v1257_v11 = vsel %vm1232_vm0, %v1254_v61, %v1256_v63  ;;  %v970_v63 = vmax.f32 %v329_v51, 0.0 }
  0x5b   : > { %1388 = vrot.lane.b32.xlu1 %v1190_v28, %s4556_s26  ;;  %v1332_v16 = vpack.c.bf16 %v1257_v11, %v1255_v7  ;;  %v1031_v0 = vmul.f32 %v4839_v14, %v4835_v10  ;;  %v1107_v49 = vrot.slane %v4835_v10, 7  ;;  %v507_v7 = vand.u32 15, %v363_v55 }
  0x5c   : > { %v1266_v42 = vrot.slane %v970_v63, 1 }
  0x5d   : > { %v1108_v59 = vsel %vm1079_vm1, %v1105_v13, %v1107_v49  ;;  %v1110_v61 = vsel %vm1079_vm1, %v1107_v49, %v1109_v50  ;;  %v1264_v13 = vrot.slane %v1033_v62, 1  ;;  %vm875_vm7 = vcmp.ge.s32.totalorder %v507_v7, 1  ;;  %v300_v7 = vld [vmem:[%s4631_s30 + $0x50] sm:$0xff]  }
  0x5e   : > { %1482 = vrot.lane.b32.xlu0 %v4789_v17, %s4560_s14  ;;  %v4886_v11 = vpack.c.bf16 %v1110_v61, %v1108_v59  ;;  %v4901_v31 = vsel %vm875_vm7, 1.0, %v6383_v18  ;;  %v365_v49 = vadd.s32 160, %v4621_v2  ;;  %v4932_v61 = vmax.f32 %v331_v46, 0.0 }
  0x5f   : > { %1436 = vrot.lane.b32.xlu1 %v1331_v37, %s4559_s11  ;;  %v1265_v23 = vsel %vm1232_vm0, %v1262_v8, %v1264_v13  ;;  %v1267_v51 = vsel %vm1232_vm0, %v1264_v13, %v1266_v42  ;;  %vm1976_vm7 = vcmask 293888  }
  0x62   : > { %1515 = vrot.lane.b32.xlu0 %v1190_v28, %s4558_s8  ;;  %v1260_v28 = vrot.slane %v1031_v0, 1  ;;  %v1193_v0 = vpack.c.bf16 %v968_v38, %v4835_v10 }
  0x63   : > { %1484 = vrot.lane.b32.xlu1 %v4827_v60, %s4560_s14 }
  0x64   : > { %v1263_v20 = vsel %vm1232_vm0, %v1260_v28, %v1262_v8 }
  0x65   : > { %v1334_v10 = vpack.c.bf16 %v1265_v23, %v1263_v20 }
  0x66   : > { %1548 = vrot.lane.b32.xlu0 %v1331_v37, %s4561_s15  ;;  %v1261_v37 = vsel %vm1232_vm0, %v1258_v27, %v1260_v28  ;;  %v1111_v27 = vrot.slane %v969_v29, 7  ;;  %v4908_v28 = vmul.f32 %v4901_v31, %v4896_v21 }
  0x67   : > { %1517 = vrot.lane.b32.xlu1 %v1191_v4, %s4558_s8  ;;  %v1333_v41 = vpack.c.bf16 %v1261_v37, %v1259_v36  ;;  %v364_v36 = vadd.s32 152, %v4621_v2 }
  0x68   : > { %v1112_v37 = vsel %vm1079_vm1, %v1109_v50, %v1111_v27  ;;  %v6385_v43 = vrot.slane %v4908_v28, 1  ;;  %v4926_v50 = vpack.c.bf16 %v970_v63, %v969_v29  ;;  %v521_v29 = vand.u32 15, %v365_v49 }
  0x69   : > { %v514_v40 = vand.u32 15, %v364_v36  ;;  %v367_v49 = vadd.s32 176, %v4621_v2 }
  0x6a   : > { %1581 = vrot.lane.b32.xlu0 %v4827_v60, %s4562_s16  ;;  %v1269_v55 = vsel %vm1232_vm0, %v1266_v42, %v6385_v43  ;;  %vm877_vm9 = vcmp.ge.s32.totalorder %v521_v29, 1 }
  0x6b   : > { %1550 = vrot.lane.b32.xlu1 %v1332_v16, %s4561_s15  ;;  %vm780_vm8 = vcmp.le.s32.totalorder %v514_v40, 14  ;;  %v4939_v8 = vpack.c.bf16 %v1269_v55, %v1267_v51  ;;  %v333_v40 = vunpack.c.h.bf16 %v300_v7  ;;  %v4956_v46 = vsel %vm877_vm9, 1.0, %v6383_v18 }
  0x6c   : > { %v4935_v3 = vsel %vm780_vm8, 1.0, %v6383_v18  ;;  %6402 = vst [vmem:[#allocation5_spill] sm:$0xff] %v4956_v46 }
  0x6d   : > { %6401 = vst [vmem:[#allocation4_spill] sm:$0xff] %v4935_v3  ;;  %v4946_v13 = vmul.f32 %v4935_v3, %v4932_v61 }
  0x6e   : > { %1613 = vrot.lane.b32.xlu0 %v1191_v4, %s4563_s17 }
  0x6f   : > { %1583 = vrot.lane.b32.xlu1 %v4851_v24, %s4562_s16 }
  0x72   : > { %1645 = vrot.lane.b32.xlu0 %v1332_v16, %s4564_s18 }
  0x73   : > { %1615 = vrot.lane.b32.xlu1 %v1192_v32, %s4563_s17 }
  0x76   : > { %1647 = vrot.lane.b32.xlu0 %v1333_v41, %s4564_s18 }
  0x77   : > { %1390 = vrot.lane.b32.xlu1 %v1191_v4, %s4556_s26  ;;  %v4881_v4 = vsel %vm778_vm6, 1.0, %v6383_v18 }
  0x78   : > { %6400 = vst [vmem:[#allocation3_spill] sm:$0xff] %v4881_v4 }
  0x7a   : > { %1438 = vrot.lane.b32.xlu0 %v1332_v16, %s4559_s11  ;;  %v4889_v16 = vmul.f32 %v4881_v4, %v970_v63  ;;  %v366_v63 = vadd.s32 168, %v4621_v2 }
  0x7b   : > { %1392 = vrot.lane.b32.xlu1 %v1192_v32, %s4556_s26 }
  0x7c   : > { %v1113_v30 = vrot.slane %v4889_v16, 7  ;;  %v332_v16 = vunpack.c.l.bf16 %v300_v7  ;;  %v528_v23 = vand.u32 15, %v366_v63  ;;  %v4971_v63 = vmax.f32 %v333_v40, 0.0 }
  0x7e   : > { %1486 = vrot.lane.b32.xlu0 %v4851_v24, %s4560_s14  ;;  %v1114_v38 = vsel %vm1079_vm1, %v1111_v27, %v1113_v30  ;;  %v1115_v27 = vrot.slane %v4896_v21, 7  ;;  %vm782_vm12 = vcmp.le.s32.totalorder %v528_v23, 14 }
  0x7f   : > { %1440 = vrot.lane.b32.xlu1 %v1333_v41, %s4559_s11 }
  0x82   : > { %1519 = vrot.lane.b32.xlu0 %v1192_v32, %s4558_s8  ;;  %v1379_v32 = vpop.permute.xlu0 %1378 }
  0x83   : > { %1488 = vrot.lane.b32.xlu1 %v4886_v11, %s4560_s14  ;;  %v1672_v51 = vsel %vm1669_vm10, 0.0|0.0, %v1379_v32  ;;  %v535_v32 = vand.u32 15, %v367_v49 }
  0x85   : > { %vm879_vm6 = vcmp.ge.s32.totalorder %v535_v32, 1 }
  0x86   : > { %1552 = vrot.lane.b32.xlu0 %v1333_v41, %s4561_s15  ;;  %v4915_v41 = vpack.c.bf16 %v1114_v38, %v1112_v37  ;;  %v6382_v37 = vrot.slane %v4946_v13, 7  ;;  %v4953_v38 = vmax.f32 %v332_v16, 0.0 }
  0x87   : > { %1521 = vrot.lane.b32.xlu1 %v1193_v0, %s4558_s8 }
  0x88   : > { %v1118_v7 = vsel %vm1079_vm1, %v1115_v27, %v6382_v37  ;;  %v4969_v29 = vmul.f32 %v4956_v46, %v4953_v38 }
  0x8a   : > { %1585 = vrot.lane.b32.xlu0 %v4886_v11, %s4562_s16 }
  0x8b   : > { %1554 = vrot.lane.b32.xlu1 %v1334_v10, %s4561_s15 }
  0x8c   : > { %v4918_v44 = vpop.permute.xlu0 %1380  ;;  %v4920_v45 = vpop.permute.xlu1 %1509 }
  0x8d   : > { %v1675_v49 = vsel %vm1669_vm10, %v4676_v52, %v4918_v44  ;;  %v1195_v52 = vpack.c.bf16 %v4932_v61, %v4896_v21 }
  0x8e   : > { %1617 = vrot.lane.b32.xlu0 %v1193_v0, %s4563_s17 }
  0x8f   : > { %1587 = vrot.lane.b32.xlu1 %v4915_v41, %s4562_s16 }
  0x90   : > { %v1508_v59 = vpop.permute.xlu0 %1507 }
  0x91   : > { %v1427_v62 = vpop.permute.xlu1 %1426 }
  0x92   : > { %1649 = vrot.lane.b32.xlu0 %v1334_v10, %s4564_s18  ;;  %v1720_v16 = vsel %vm1718_vm11, %v1672_v51, %v1427_v62  ;;  %v1270_v62 = vrot.slane %v4932_v61, 1  ;;  %v1272_v51 = vrot.slane %v4969_v29, 1  ;;  %v6405_v61 = vmov 0.0  }
  0x93   : > { %1619 = vrot.lane.b32.xlu1 %v4926_v50, %s4563_s17 }
  0x94   : > { %v1475_v15 = vpop.permute.xlu0 %1474 }
  0x95   : > { %v1429_v20 = vpop.permute.xlu1 %1428  ;;  %v1753_v1 = vsel %vm1751_vm14, %v1720_v16, %v1475_v15 }
  0x96   : > { %1651 = vrot.lane.b32.xlu0 %v4939_v8, %s4564_s18  ;;  %v1722_v37 = vsel %vm1718_vm11, %v1675_v49, %v1429_v20  ;;  %v1119_v20 = vrot.slane %v4953_v38, 7 }
  0x97   : > { %1394 = vrot.lane.b32.xlu1 %v1193_v0, %s4556_s26  ;;  %v1116_v0 = vsel %vm1079_vm1, %v1113_v30, %v1115_v27  ;;  %v4978_v30 = vsel %vm782_vm12, 1.0, %v6383_v18 }
  0x98   : > { %v1541_v36 = vpop.permute.xlu0 %1540  ;;  %6403 = vst [vmem:[#allocation6_spill] sm:$0xff] %v4978_v30  ;;  %v4985_v27 = vpack.c.bf16 %v1118_v7, %v1116_v0  ;;  %v4995_v16 = vmul.f32 %v4978_v30, %v4971_v63  ;;  %v1786_v0 = vsel %vm1784_vm15, %v1753_v1, %v1508_v59  ;;  %v6404_v1 = vrot.slane %v4908_v28, 1 }
  0x99   : > { %v1477_v42 = vpop.permute.xlu1 %1476  ;;  %v1819_v18 = vsel %vm1817_vm2, %v1786_v0, %v1541_v36 }
  0x9a   : > { %1442 = vrot.lane.b32.xlu0 %v1334_v10, %s4559_s11  ;;  %v4974_v10 = vld [vmem:[%s4631_s30 + $0x58] sm:$0xff]   ;;  %v1755_v43 = vsel %vm1751_vm14, %v1722_v37, %v1477_v42  ;;  %v1271_v59 = vsel %vm1232_vm0, %v6404_v1, %v1270_v62  ;;  %v1273_v42 = vsel %vm1232_vm0, %v1270_v62, %v1272_v51  ;;  %v6387_v21 = vrot.slane %v4995_v16, 7 }
  0x9b   : > { %1396 = vrot.lane.b32.xlu1 %v4926_v50, %s4556_s26  ;;  %v334_v40 = vunpack.c.l.bf16 %v4974_v10  ;;  %v368_v62 = vadd.s32 184, %v4621_v2  ;;  %v1336_v49 = vpack.c.bf16 %v1273_v42, %v1271_v59 }
  0x9c   : > { %v1574_v55 = vpop.permute.xlu0 %1573  ;;  %v1122_v0 = vsel %vm1079_vm1, %v1119_v20, %v6387_v21 }
  0x9d   : > { %v1543_v23 = vpop.permute.xlu1 %1542  ;;  %v1852_v44 = vsel %vm1850_vm3, %v1819_v18, %v1574_v55  ;;  %v5012_v36 = vmax.f32 %v334_v40, 0.0  ;;  %v5018_v18 = vsel %vm879_vm6, 1.0, %v6405_v61  ;;  %v1788_v55 = vsel %vm1784_vm15, %v1755_v43, %v4920_v45 }
  0x9e   : > { %1490 = vrot.lane.b32.xlu0 %v4915_v41, %s4560_s14  ;;  %6406 = vst [vmem:[#allocation7_spill] sm:$0xff] %v5018_v18  ;;  %v1821_v32 = vsel %vm1817_vm2, %v1788_v55, %v1543_v23  ;;  %v6407_v23 = vrot.slane %v4946_v13, 7  ;;  %v542_v1 = vand.u32 15, %v368_v62  ;;  %v1274_v13 = vrot.slane %v4971_v63, 1 }
  0x9f   : > { %1444 = vrot.lane.b32.xlu1 %v4939_v8, %s4559_s11  ;;  %v5032_v43 = vmul.f32 %v5018_v18, %v5012_v36  ;;  %v369_v55 = vadd.s32 192, %v4621_v2 }
  0xa0   : > { %v1606_v15 = vpop.permute.xlu0 %1605  ;;  %vm784_vm8 = vcmp.le.s32.totalorder %v542_v1, 14 }
  0xa1   : > { %v1576_v7 = vpop.permute.xlu1 %1575  ;;  %v1885_v37 = vsel %vm1883_vm4, %v1852_v44, %v1606_v15 }
  0xa2   : > { %1523 = vrot.lane.b32.xlu0 %v4926_v50, %s4558_s8  ;;  %v1854_v40 = vsel %vm1850_vm3, %v1821_v32, %v1576_v7 }
  0xa3   : > { %1492 = vrot.lane.b32.xlu1 %v4985_v27, %s4560_s14 }
  0xa4   : > { %v1638_v50 = vpop.permute.xlu0 %1637 }
  0xa5   : > { %v1608_v28 = vpop.permute.xlu1 %1607  ;;  %v1918_v29 = vsel %vm1916_vm5, %v1885_v37, %v1638_v50  ;;  %v6386_v37 = vrot.slane %v5032_v43, 1 }
  0xa6   : > { %1556 = vrot.lane.b32.xlu0 %v4939_v8, %s4561_s15  ;;  %4251 = vmatprep.mubr.msk.bf16.mxu0 %vm1976_vm7, %v1918_v29  ;;  %v1887_v45 = vsel %vm1883_vm4, %v1854_v40, %v1608_v28  ;;  %v1120_v8 = vsel %vm1079_vm1, %v6407_v23, %v1119_v20  ;;  %v335_v20 = vunpack.c.h.bf16 %v4974_v10  ;;  %v1196_v28 = vpack.c.bf16 %v4971_v63, %v4953_v38  ;;  %v304_v40 = vld [vmem:[%s4631_s30 + $0x60] sm:$0xff]  }
  0xa7   : > { %1525 = vrot.lane.b32.xlu1 %v1195_v52, %s4558_s8  ;;  %v5046_v59 = vpack.c.bf16 %v1122_v0, %v1120_v8  ;;  %v1275_v29 = vsel %vm1232_vm0, %v1272_v51, %v1274_v13  ;;  %v1277_v32 = vsel %vm1232_vm0, %v1274_v13, %v6386_v37  ;;  %v549_v23 = vand.u32 15, %v369_v55 }
  0xa8   : > { %v1640_v15 = vpop.permute.xlu0 %1639  ;;  %v976_v10 = vmax.f32 %v335_v20, 0.0  ;;  %v5066_v8 = vpack.c.bf16 %v1277_v32, %v1275_v29  ;;  %v370_v38 = vadd.s32 200, %v4621_v2  ;;  %v336_v63 = vunpack.c.l.bf16 %v304_v40 }
  0xa9   : > { %v1920_v7 = vsel %vm1916_vm5, %v1887_v45, %v1640_v15  ;;  %v1383_v44 = vpop.permute.xlu1 %1382  ;;  %v5063_v15 = vsel %vm784_vm8, 1.0, %v6405_v61  ;;  %vm881_vm9 = vcmp.ge.s32.totalorder %v549_v23, 1  ;;  %v1123_v55 = vrot.slane %v5012_v36, 7 }
  0xaa   : > { %1589 = vrot.lane.b32.xlu0 %v4985_v27, %s4562_s16  ;;  %4252 = vmatmul.mubr.msk.bf16.vlgmr.msra.gmra.mrb[0].mxu0 %vm1976_vm7, %v1920_v7  ;;  %6408 = vst [vmem:[#allocation8_spill] sm:$0xff] %v5063_v15  ;;  %v5071_v0 = vmul.f32 %v5063_v15, %v976_v10  ;;  %v556_v1 = vand.u32 15, %v370_v38  ;;  %v5076_v13 = vmax.f32 %v336_v63, 0.0  ;;  %v5081_v32 = vsel %vm881_vm9, 1.0, %v6405_v61  ;;  %v5097_v15 = vld [vmem:[%s4631_s30 + $0x68] sm:$0xff]  }
  0xab   : > { %1558 = vrot.lane.b32.xlu1 %v1336_v49, %s4561_s15  ;;  %6409 = vst [vmem:[#allocation9_spill] sm:$0xff] %v5081_v32  ;;  %v337_v37 = vunpack.c.h.bf16 %v304_v40  ;;  %v371_v23 = vadd.s32 208, %v4621_v2  ;;  %v6410_v63 = vrot.slane %v4995_v16, 7  ;;  %v1278_v16 = vrot.slane %v976_v10, 1 }
  0xac   : > { %v1431_v50 = vpop.permute.xlu0 %1430  ;;  %v1125_v29 = vrot.slane %v5071_v0, 7  ;;  %vm786_vm12 = vcmp.le.s32.totalorder %v556_v1, 14  ;;  %v338_v18 = vunpack.c.l.bf16 %v5097_v15 }
  0xad   : > { %v1385_v42 = vpop.permute.xlu1 %1384  ;;  %v1124_v0 = vsel %vm1079_vm1, %v6410_v63, %v1123_v55  ;;  %v5094_v40 = vmax.f32 %v337_v37, 0.0  ;;  %v563_v1 = vand.u32 15, %v371_v23 }
  0xae   : > { %1621 = vrot.lane.b32.xlu0 %v1195_v52, %s4563_s17  ;;  %v1126_v30 = vsel %vm1079_vm1, %v1123_v55, %v1125_v29 }
  0xaf   : > { %1591 = vrot.lane.b32.xlu1 %v5046_v59, %s4562_s16  ;;  %v5109_v37 = vpack.c.bf16 %v1126_v30, %v1124_v0  ;;  %vm883_vm6 = vcmp.ge.s32.totalorder %v563_v1, 1  ;;  %v1681_v30 = vsel %vm1669_vm10, %v4721_v22, %v1385_v42  ;;  %v1127_v0 = vrot.slane %v5076_v13, 7 }
  0xb0   : > { %v1479_v62 = vpop.permute.xlu0 %1478  ;;  %v5135_v22 = vmax.f32 %v338_v18, 0.0 }
  0xb1   : > { %v1433_v45 = vpop.permute.xlu1 %1432 }
  0xb2   : > { %1653 = vrot.lane.b32.xlu0 %v1336_v49, %s4564_s18 }
  0xb3   : > { %1623 = vrot.lane.b32.xlu1 %v1196_v28, %s4563_s17 }
  0xb4   : > { %v1512_v51 = vpop.permute.xlu0 %1511 }
  0xb5   : > { %v1481_v7 = vpop.permute.xlu1 %1480 }
  0xb6   : > { %1655 = vrot.lane.b32.xlu0 %v5066_v8, %s4564_s18 }
  0xb7   : > { %1398 = vrot.lane.b32.xlu1 %v1195_v52, %s4556_s26  ;;  %v5088_v52 = vmul.f32 %v5081_v32, %v5076_v13  ;;  %v1678_v32 = vsel %vm1669_vm10, %v4697_v6, %v1383_v44 }
  0xb8   : > { %v1545_v20 = vpop.permute.xlu0 %1544  ;;  %v1724_v63 = vsel %vm1718_vm11, %v1678_v32, %v1431_v50  ;;  %v5120_v50 = vpack.c.bf16 %v976_v10, %v5012_v36 }
  0xb9   : > { %v1514_v21 = vpop.permute.xlu1 %1513  ;;  %v1280_v55 = vrot.slane %v5088_v52, 1  ;;  %v1757_v23 = vsel %vm1751_vm14, %v1724_v63, %v1479_v62  ;;  %v6412_v62 = vrot.slane %v5032_v43, 1 }
  0xba   : > { %1446 = vrot.lane.b32.xlu0 %v1336_v49, %s4559_s11  ;;  %v5100_v49 = vsel %vm786_vm12, 1.0, %v6405_v61  ;;  %v1790_v44 = vsel %vm1784_vm15, %v1757_v23, %v1512_v51  ;;  %v1726_v51 = vsel %vm1718_vm11, %v1681_v30, %v1433_v45 }
  0xbb   : > { %1400 = vrot.lane.b32.xlu1 %v1196_v28, %s4556_s26  ;;  %6411 = vst [vmem:[#allocation10_spill] sm:$0xff] %v5100_v49  ;;  %v5116_v6 = vmul.f32 %v5100_v49, %v5094_v40  ;;  %v1823_v32 = vsel %vm1817_vm2, %v1790_v44, %v1545_v20  ;;  %v1279_v52 = vsel %vm1232_vm0, %v6412_v62, %v1278_v16  ;;  %v5141_v20 = vsel %vm883_vm6, 1.0, %v6405_v61 }
  0xbc   : > { %v1578_v38 = vpop.permute.xlu0 %1577  ;;  %v1281_v36 = vsel %vm1232_vm0, %v1278_v16, %v1280_v55  ;;  %v1759_v42 = vsel %vm1751_vm14, %v1726_v51, %v1481_v7  ;;  %6413 = vst [vmem:[#allocation11_spill] sm:$0xff] %v5141_v20  ;;  %v1128_v44 = vsel %vm1079_vm1, %v1125_v29, %v1127_v0  ;;  %v1282_v29 = vrot.slane %v5094_v40, 1 }
  0xbd   : > { %v1547_v46 = vpop.permute.xlu1 %1546  ;;  %v1856_v63 = vsel %vm1850_vm3, %v1823_v32, %v1578_v38  ;;  %v1129_v10 = vrot.slane %v5116_v6, 7  ;;  %v1792_v45 = vsel %vm1784_vm15, %v1759_v42, %v1514_v21  ;;  %v1338_v7 = vpack.c.bf16 %v1281_v36, %v1279_v52 }
  0xbe   : > { %1494 = vrot.lane.b32.xlu0 %v5046_v59, %s4560_s14  ;;  %v1825_v23 = vsel %vm1817_vm2, %v1792_v45, %v1547_v46  ;;  %v5155_v21 = vmul.f32 %v5141_v20, %v5135_v22  ;;  %v373_v36 = vadd.s32 224, %v4621_v2  ;;  %v1198_v42 = vpack.c.bf16 %v5094_v40, %v5076_v13 }
  0xbf   : > { %1448 = vrot.lane.b32.xlu1 %v5066_v8, %s4559_s11  ;;  %v374_v13 = vadd.s32 232, %v4621_v2 }
  0xc0   : > { %v1610_v4 = vpop.permute.xlu0 %1609  ;;  %v6395_v52 = vrot.slane %v5155_v21, 1 }
  0xc1   : > { %v1580_v3 = vpop.permute.xlu1 %1579 }
  0xc2   : > { %1527 = vrot.lane.b32.xlu0 %v1196_v28, %s4558_s8  ;;  %v1889_v28 = vsel %vm1883_vm4, %v1856_v63, %v1610_v4  ;;  %v372_v4 = vadd.s32 216, %v4621_v2  ;;  %v1858_v18 = vsel %vm1850_vm3, %v1825_v23, %v1580_v3 }
  0xc3   : > { %1496 = vrot.lane.b32.xlu1 %v5109_v37, %s4560_s14 }
  0xc4   : > { %v1642_v43 = vpop.permute.xlu0 %1641  ;;  %v570_v32 = vand.u32 15, %v372_v4  ;;  %v577_v4 = vand.u32 15, %v373_v36 }
  0xc5   : > { %v1922_v38 = vsel %vm1916_vm5, %v1889_v28, %v1642_v43  ;;  %v1612_v1 = vpop.permute.xlu1 %1611  ;;  %v1283_v28 = vsel %vm1232_vm0, %v1280_v55, %v1282_v29  ;;  %v1285_v43 = vsel %vm1232_vm0, %v1282_v29, %v6395_v52 }
  0xc6   : > { %1560 = vrot.lane.b32.xlu0 %v5066_v8, %s4561_s15  ;;  %4255 = vmatprep.mubr.msk.bf16.mxu0 %vm1976_vm7, %v1922_v38  ;;  %v1891_v16 = vsel %vm1883_vm4, %v1858_v18, %v1612_v1  ;;  %v1130_v8 = vsel %vm1079_vm1, %v1127_v0, %v1129_v10  ;;  %v339_v0 = vunpack.c.h.bf16 %v5097_v15  ;;  %vm788_vm8 = vcmp.le.s32.totalorder %v570_v32, 14  ;;  %v308_v38 = vld [vmem:[%s4631_s30 + $0x70] sm:$0xff]  }
  0xc7   : > { %1529 = vrot.lane.b32.xlu1 %v5120_v50, %s4558_s8  ;;  %v5167_v62 = vpack.c.bf16 %v1130_v8, %v1128_v44  ;;  %v5185_v23 = vsel %vm788_vm8, 1.0, %v6405_v61  ;;  %v5188_v18 = vpack.c.bf16 %v1285_v43, %v1283_v28  ;;  %v340_v40 = vunpack.c.l.bf16 %v308_v38 }
  0xc8   : > { %v1644_v46 = vpop.permute.xlu0 %1643  ;;  %v980_v45 = vmax.f32 %v339_v0, 0.0  ;;  %6414 = vst [vmem:[#allocation12_spill] sm:$0xff] %v5185_v23  ;;  %vm885_vm9 = vcmp.ge.s32.totalorder %v577_v4, 1  ;;  %v584_v44 = vand.u32 15, %v374_v13  ;;  %v1131_v32 = vrot.slane %v5135_v22, 7 }
  0xc9   : > { %v1924_v30 = vsel %vm1916_vm5, %v1891_v16, %v1644_v46  ;;  %v1387_v3 = vpop.permute.xlu1 %1386  ;;  %v5199_v8 = vmax.f32 %v340_v40, 0.0  ;;  %v5204_v0 = vsel %vm885_vm9, 1.0, %v6405_v61  ;;  %v341_v36 = vunpack.c.h.bf16 %v308_v38 }
  0xca   : > { %1593 = vrot.lane.b32.xlu0 %v5109_v37, %s4562_s16  ;;  %4256 = vmatmul.mubr.msk.bf16.gmra.mrb[4].mxu0 %vm1976_vm7, %v1924_v30  ;;  %v5193_v16 = vmul.f32 %v5185_v23, %v980_v45  ;;  %6415 = vst [vmem:[#allocation13_spill] sm:$0xff] %v5204_v0  ;;  %v375_v43 = vadd.s32 240, %v4621_v2  ;;  %vm790_vm12 = vcmp.le.s32.totalorder %v584_v44, 14  ;;  %v1132_v13 = vsel %vm1079_vm1, %v1129_v10, %v1131_v32 }
  0xcb   : > { %1562 = vrot.lane.b32.xlu1 %v1338_v7, %s4561_s15  ;;  %v5217_v38 = vmax.f32 %v341_v36, 0.0  ;;  %v1286_v6 = vrot.slane %v980_v45, 1  ;;  %vm3128_vm9 = vcmask 523264  }
  0xcc   : > { %v1435_v51 = vpop.permute.xlu0 %1434  ;;  %v1133_v29 = vrot.slane %v5193_v16, 7  ;;  %v5220_v16 = vld [vmem:[%s4631_s30 + $0x78] sm:$0xff]   ;;  %v591_v44 = vand.u32 15, %v375_v43 }
  0xcd   : > { %v1389_v63 = vpop.permute.xlu1 %1388  ;;  %v342_v49 = vunpack.c.l.bf16 %v5220_v16 }
  0xce   : > { %1625 = vrot.lane.b32.xlu0 %v5120_v50, %s4563_s17  ;;  %v1134_v40 = vsel %vm1079_vm1, %v1131_v32, %v1133_v29  ;;  %vm887_vm6 = vcmp.ge.s32.totalorder %v591_v44, 1 }
  0xcf   : > { %1595 = vrot.lane.b32.xlu1 %v5167_v62, %s4562_s16  ;;  %v5232_v32 = vpack.c.bf16 %v1134_v40, %v1132_v13  ;;  %v1135_v40 = vrot.slane %v5199_v8, 7 }
  0xd0   : > { %v1483_v15 = vpop.permute.xlu0 %1482 }
  0xd1   : > { %v1437_v1 = vpop.permute.xlu1 %1436 }
  0xd2   : > { %1657 = vrot.lane.b32.xlu0 %v1338_v7, %s4564_s18 }
  0xd3   : > { %1627 = vrot.lane.b32.xlu1 %v1198_v42, %s4563_s17 }
  0xd4   : > { %v1516_v55 = vpop.permute.xlu0 %1515 }
  0xd5   : > { %v1485_v46 = vpop.permute.xlu1 %1484 }
  0xd6   : > { %1659 = vrot.lane.b32.xlu0 %v5188_v18, %s4564_s18 }
  0xd7   : > { %1402 = vrot.lane.b32.xlu1 %v5120_v50, %s4556_s26  ;;  %v5211_v50 = vmul.f32 %v5204_v0, %v5199_v8  ;;  %v1684_v0 = vsel %vm1669_vm10, %v4760_v56, %v1387_v3 }
  0xd8   : > { %v1549_v30 = vpop.permute.xlu0 %1548  ;;  %v1728_v10 = vsel %vm1718_vm11, %v1684_v0, %v1435_v51  ;;  %v1199_v51 = vpack.c.bf16 %v980_v45, %v5135_v22  ;;  %v1687_v0 = vsel %vm1669_vm10, %v4789_v17, %v1389_v63  ;;  %v5256_v17 = vmax.f32 %v342_v49, 0.0 }
  0xd9   : > { %v1518_v28 = vpop.permute.xlu1 %1517  ;;  %v1288_v36 = vrot.slane %v5211_v50, 1  ;;  %v1761_v43 = vsel %vm1751_vm14, %v1728_v10, %v1483_v15  ;;  %v6416_v15 = vrot.slane %v5155_v21, 1  ;;  %v1730_v10 = vsel %vm1718_vm11, %v1687_v0, %v1437_v1 }
  0xda   : > { %1450 = vrot.lane.b32.xlu0 %v1338_v7, %s4559_s11  ;;  %v5223_v7 = vsel %vm790_vm12, 1.0, %v6405_v61  ;;  %v1794_v3 = vsel %vm1784_vm15, %v1761_v43, %v1516_v55  ;;  %v1763_v63 = vsel %vm1751_vm14, %v1730_v10, %v1485_v46  ;;  %v376_v49 = vadd.s32 248, %v4621_v2 }
  0xdb   : > { %1404 = vrot.lane.b32.xlu1 %v1198_v42, %s4556_s26  ;;  %v5239_v56 = vmul.f32 %v5223_v7, %v5217_v38  ;;  %v1827_v50 = vsel %vm1817_vm2, %v1794_v3, %v1549_v30  ;;  %v1287_v13 = vsel %vm1232_vm0, %v6416_v15, %v1286_v6  ;;  %v1289_v22 = vsel %vm1232_vm0, %v1286_v6, %v1288_v36 }
  0xdc   : > { %v1582_v4 = vpop.permute.xlu0 %1581  ;;  %v5262_v30 = vsel %vm887_vm6, 1.0, %v6405_v61  ;;  %v1796_v1 = vsel %vm1784_vm15, %v1763_v63, %v1518_v28  ;;  %v1340_v46 = vpack.c.bf16 %v1289_v22, %v1287_v13  ;;  %v598_v2 = vand.u32 15, %v376_v49 }
  0xdd   : > { %v1551_v52 = vpop.permute.xlu1 %1550  ;;  %v1860_v55 = vsel %vm1850_vm3, %v1827_v50, %v1582_v4  ;;  %v1137_v45 = vrot.slane %v5239_v56, 7  ;;  %v5275_v28 = vmul.f32 %v5262_v30, %v5256_v17  ;;  %v1290_v50 = vrot.slane %v5217_v38, 1 }
  0xde   : > { %1498 = vrot.lane.b32.xlu0 %v5167_v62, %s4560_s14  ;;  %v1829_v43 = vsel %vm1817_vm2, %v1796_v1, %v1551_v52  ;;  %v1136_v52 = vsel %vm1079_vm1, %v1133_v29, %v1135_v40  ;;  %v343_v13 = vunpack.c.h.bf16 %v5220_v16  ;;  %vm792_vm8 = vcmp.le.s32.totalorder %v598_v2, 14 }
  0xdf   : > { %1452 = vrot.lane.b32.xlu1 %v5188_v18, %s4559_s11  ;;  %v1292_v15 = vrot.slane %v5275_v28, 1  ;;  %v1200_v10 = vpack.c.bf16 %v5217_v38, %v5199_v8  ;;  %v5298_v1 = vsel %vm792_vm8, 1.0, %v6405_v61  ;;  %v1344_v38 = vrot.slane %v5256_v17, 7 }
  0xe0   : > { %v1614_v23 = vpop.permute.xlu0 %1613  ;;  %vm3204_vm12 = vcmask 588800  }
  0xe1   : > { %v1584_v20 = vpop.permute.xlu1 %1583  ;;  %v1293_v22 = vsel %vm1232_vm0, %v1290_v50, %v1292_v15  ;;  %v1345_v28 = vsel %vm1079_vm1, %v1137_v45, %v1344_v38 }
  0xe2   : > { %1531 = vrot.lane.b32.xlu0 %v1198_v42, %s4558_s8  ;;  %v1893_v42 = vsel %vm1883_vm4, %v1860_v55, %v1614_v23  ;;  %v1862_v23 = vsel %vm1850_vm3, %v1829_v43, %v1584_v20  ;;  %v1291_v55 = vsel %vm1232_vm0, %v1288_v36, %v1290_v50 }
  0xe3   : > { %1500 = vrot.lane.b32.xlu1 %v5232_v32, %s4560_s14  ;;  %v1341_v16 = vpack.c.bf16 %v1293_v22, %v1291_v55 }
  0xe4   : > { %v1646_v21 = vpop.permute.xlu0 %1645 }
  0xe5   : > { %v1926_v4 = vsel %vm1916_vm5, %v1893_v42, %v1646_v21  ;;  %v1616_v44 = vpop.permute.xlu1 %1615  ;;  %v984_v42 = vmax.f32 %v343_v13, 0.0 }
  0xe6   : > { %1564 = vrot.lane.b32.xlu0 %v5188_v18, %s4561_s15  ;;  %4259 = vmatprep.mubr.msk.bf16.mxu0 %vm1976_vm7, %v1926_v4  ;;  %v1895_v6 = vsel %vm1883_vm4, %v1862_v23, %v1616_v44  ;;  %v1138_v18 = vsel %vm1079_vm1, %v1135_v40, %v1137_v45 }
  0xe7   : > { %1533 = vrot.lane.b32.xlu1 %v1199_v51, %s4558_s8  ;;  %v5285_v20 = vpack.c.bf16 %v1138_v18, %v1136_v52  ;;  %v1016_v44 = vmul.f32 %v5298_v1, %v984_v42  ;;  %v1353_v2 = vrot.slane %v984_v42, 1  ;;  %v1351_v55 = vpack.c.bf16 %v984_v42, %v5256_v17 }
  0xe8   : > { %v1648_v56 = vpop.permute.xlu0 %1647 }
  0xe9   : > { %v1928_v3 = vsel %vm1916_vm5, %v1895_v6, %v1648_v56  ;;  %v1391_v0 = vpop.permute.xlu1 %1390  ;;  %v1346_v36 = vrot.slane %v1016_v44, 7  ;;  %v1354_v44 = vsel %vm1232_vm0, %v1292_v15, %v1353_v2 }
  0xea   : > { %1597 = vrot.lane.b32.xlu0 %v5232_v32, %s4562_s16  ;;  %4260 = vmatmul.mubr.msk.bf16.gmra.mrb[8].mxu0 %vm1976_vm7, %v1928_v3  ;;  %v1690_v52 = vsel %vm1669_vm10, %v4827_v60, %v1391_v0 }
  0xeb   : > { %1566 = vrot.lane.b32.xlu1 %v1340_v46, %s4561_s15  ;;  %v1347_v6 = vsel %vm1079_vm1, %v1344_v38, %v1346_v36  ;;  %v1360_v38 = vsel %vm1079_vm1, %v1346_v36, 0.0  ;;  %v6417_v36 = vmov 0.0|0.0  }
  0xec   : > { %v1439_v29 = vpop.permute.xlu0 %1438  ;;  %v1350_v18 = vpack.c.bf16 %v1347_v6, %v1345_v28 }
  0xed   : > { %v1393_v40 = vpop.permute.xlu1 %1392 }
  0xee   : > { %1629 = vrot.lane.b32.xlu0 %v1199_v51, %s4563_s17  ;;  %v1693_v13 = vsel %vm1669_vm10, %v4851_v24, %v1393_v40  ;;  %v1357_v24 = vsel %vm1232_vm0, %v1353_v2, 0.0 }
  0xef   : > { %1599 = vrot.lane.b32.xlu1 %v5285_v20, %s4562_s16  ;;  %v1358_v42 = vpack.c.bf16 %v1357_v24, %v1354_v44 }
  0xf0   : > { %v1487_v63 = vpop.permute.xlu0 %1486 }
  0xf1   : > { %v1441_v21 = vpop.permute.xlu1 %1440 }
  0xf2   : > { %1661 = vrot.lane.b32.xlu0 %v1340_v46, %s4564_s18  ;;  %v1734_v0 = vsel %vm1718_vm11, %v1693_v13, %v1441_v21 }
  0xf3   : > { %1631 = vrot.lane.b32.xlu1 %v1200_v10, %s4563_s17 }
  0xf4   : > { %v1520_v4 = vpop.permute.xlu0 %1519 }
  0xf5   : > { %v1489_v43 = vpop.permute.xlu1 %1488 }
  0xf6   : > { %1663 = vrot.lane.b32.xlu0 %v1341_v16, %s4564_s18  ;;  %v1767_v22 = vsel %vm1751_vm14, %v1734_v0, %v1489_v43 }
  0xf7   : > { %1406 = vrot.lane.b32.xlu1 %v1199_v51, %s4556_s26  ;;  %v1732_v51 = vsel %vm1718_vm11, %v1690_v52, %v1439_v29 }
  0xf8   : > { %v1553_v8 = vpop.permute.xlu0 %1552 }
  0xf9   : > { %v1522_v49 = vpop.permute.xlu1 %1521 }
  0xfa   : > { %1454 = vrot.lane.b32.xlu0 %v1340_v46, %s4559_s11  ;;  %v1765_v46 = vsel %vm1751_vm14, %v1732_v51, %v1487_v63  ;;  %v1800_v40 = vsel %vm1784_vm15, %v1767_v22, %v1522_v49 }
  0xfb   : > { %1408 = vrot.lane.b32.xlu1 %v1200_v10, %s4556_s26  ;;  %v1798_v45 = vsel %vm1784_vm15, %v1765_v46, %v1520_v4 }
  0xfc   : > { %v1586_v23 = vpop.permute.xlu0 %1585  ;;  %v1831_v60 = vsel %vm1817_vm2, %v1798_v45, %v1553_v8 }
  0xfd   : > { %v1555_v56 = vpop.permute.xlu1 %1554  ;;  %v1864_v29 = vsel %vm1850_vm3, %v1831_v60, %v1586_v23 }
  0xfe   : > { %1502 = vrot.lane.b32.xlu0 %v5285_v20, %s4560_s14  ;;  %v1833_v8 = vsel %vm1817_vm2, %v1800_v40, %v1555_v56 }
  0xff   : > { %1456 = vrot.lane.b32.xlu1 %v1341_v16, %s4559_s11 }
 0x100   : > { %v1618_v3 = vpop.permute.xlu0 %1617 }
 0x101   : > { %v1588_v50 = vpop.permute.xlu1 %1587  ;;  %v1897_v63 = vsel %vm1883_vm4, %v1864_v29, %v1618_v3 }
 0x102   : > { %1535 = vrot.lane.b32.xlu0 %v1200_v10, %s4558_s8  ;;  %v1866_v17 = vsel %vm1850_vm3, %v1833_v8, %v1588_v50 }
 0x103   : > { %1504 = vrot.lane.b32.xlu1 %v1350_v18, %s4560_s14 }
 0x104   : > { %v1650_v4 = vpop.permute.xlu0 %1649 }
 0x105   : > { %v1930_v10 = vsel %vm1916_vm5, %v1897_v63, %v1650_v4  ;;  %v1620_v21 = vpop.permute.xlu1 %1619 }
 0x106   : > { %1568 = vrot.lane.b32.xlu0 %v1341_v16, %s4561_s15  ;;  %4263 = vmatprep.mubr.msk.bf16.mxu0 %vm1976_vm7, %v1930_v10  ;;  %v1899_v15 = vsel %vm1883_vm4, %v1866_v17, %v1620_v21  ;;  %v1361_v16 = vpack.c.bf16 %v6405_v61, %v1360_v38 }
 0x107   : > { %1537 = vrot.lane.b32.xlu1 %v1351_v55, %s4558_s8 }
 0x108   : > { %v1652_v43 = vpop.permute.xlu0 %1651 }
 0x109   : > { %v1932_v49 = vsel %vm1916_vm5, %v1899_v15, %v1652_v43  ;;  %v1395_v23 = vpop.permute.xlu1 %1394 }
 0x10a   : > { %1601 = vrot.lane.b32.xlu0 %v1350_v18, %s4562_s16  ;;  %4264 = vmatmul.mubr.msk.bf16.gmra.mrb[12].mxu0 %vm1976_vm7, %v1932_v49  ;;  %v1696_v50 = vsel %vm1669_vm10, %v4886_v11, %v1395_v23 }
 0x10b   : > { %1570 = vrot.lane.b32.xlu1 %v1358_v42, %s4561_s15 }
 0x10c   : > { %v1443_v28 = vpop.permute.xlu0 %1442 }
 0x10d   : > { %v1397_v6 = vpop.permute.xlu1 %1396  ;;  %v1736_v13 = vsel %vm1718_vm11, %v1696_v50, %v1443_v28 }
 0x10e   : > { %1633 = vrot.lane.b32.xlu0 %v1351_v55, %s4563_s17  ;;  %v1699_v22 = vsel %vm1669_vm10, %v4915_v41, %v1397_v6 }
 0x10f   : > { %1603 = vrot.lane.b32.xlu1 %v1361_v16, %s4562_s16 }
 0x110   : > { %v1491_v56 = vpop.permute.xlu0 %1490 }
 0x111   : > { %v1445_v52 = vpop.permute.xlu1 %1444  ;;  %v1769_v60 = vsel %vm1751_vm14, %v1736_v13, %v1491_v56 }
 0x112   : > { %1665 = vrot.lane.b32.xlu0 %v1358_v42, %s4564_s18  ;;  %v1738_v4 = vsel %vm1718_vm11, %v1699_v22, %v1445_v52 }
 0x113   : > { %1635 = vrot.lane.b32.xlu1 %v6417_v36, %s4563_s17 }
 0x114   : > { %v1524_v51 = vpop.permute.xlu0 %1523 }
 0x115   : > { %v1493_v18 = vpop.permute.xlu1 %1492  ;;  %v1802_v29 = vsel %vm1784_vm15, %v1769_v60, %v1524_v51 }
 0x116   : > { %2595 = vrot.lane.b32.xlu0 %v6417_v36, %s4559_s11  ;;  %v1771_v44 = vsel %vm1751_vm14, %v1738_v4, %v1493_v18 }
 0x117   : > { %1667 = vrot.lane.b32.xlu1 %v6417_v36, %s4564_s18 }
 0x118   : > { %v1557_v46 = vpop.permute.xlu0 %1556 }
 0x119   : > { %v1526_v3 = vpop.permute.xlu1 %1525  ;;  %v1835_v63 = vsel %vm1817_vm2, %v1802_v29, %v1557_v46 }
 0x11a   : > { %v1804_v10 = vsel %vm1784_vm15, %v1771_v44, %v1526_v3 }
 0x11b   : > { %2852 = vrot.lane.b32.xlu1 %v6417_v36, %s4565_s21 }
 0x11c   : > { %v1590_v2 = vpop.permute.xlu0 %1589 }
 0x11d   : > { %v1559_v45 = vpop.permute.xlu1 %1558  ;;  %v1868_v11 = vsel %vm1850_vm3, %v1835_v63, %v1590_v2 }
 0x11e   : > { %v1837_v17 = vsel %vm1817_vm2, %v1804_v10, %v1559_v45 }
 0x11f   : > { %2884 = vrot.lane.b32.xlu1 %v6417_v36, %s4566_s22 }
 0x120   : > { %v1622_v0 = vpop.permute.xlu0 %1621 }
 0x121   : > { %v1592_v55 = vpop.permute.xlu1 %1591  ;;  %v1901_v24 = vsel %vm1883_vm4, %v1868_v11, %v1622_v0 }
 0x122   : > { %v1870_v41 = vsel %vm1850_vm3, %v1837_v17, %v1592_v55 }
 0x124   : > { %v1654_v40 = vpop.permute.xlu0 %1653 }
 0x125   : > { %v1934_v21 = vsel %vm1916_vm5, %v1901_v24, %v1654_v40  ;;  %v1624_v8 = vpop.permute.xlu1 %1623 }
 0x126   : > { %4267 = vmatprep.mubr.msk.bf16.mxu0 %vm1976_vm7, %v1934_v21  ;;  %v1903_v42 = vsel %vm1883_vm4, %v1870_v41, %v1624_v8 }
 0x128   : > { %v1656_v15 = vpop.permute.xlu0 %1655 }
 0x129   : > { %v1936_v43 = vsel %vm1916_vm5, %v1903_v42, %v1656_v15  ;;  %v1399_v38 = vpop.permute.xlu1 %1398 }
 0x12a   : > { %4268 = vmatmul.mubr.msk.bf16.gmra.mrb[16].mxu0 %vm1976_vm7, %v1936_v43  ;;  %v1702_v46 = vsel %vm1669_vm10, %v4985_v27, %v1399_v38 }
 0x12c   : > { %v1447_v49 = vpop.permute.xlu0 %1446 }
 0x12d   : > { %v1401_v23 = vpop.permute.xlu1 %1400  ;;  %v1740_v3 = vsel %vm1718_vm11, %v1702_v46, %v1447_v49 }
 0x12e   : > { %v1705_v60 = vsel %vm1669_vm10, %v5046_v59, %v1401_v23 }
 0x130   : > { %v1495_v16 = vpop.permute.xlu0 %1494 }
 0x131   : > { %v1449_v28 = vpop.permute.xlu1 %1448  ;;  %v1773_v2 = vsel %vm1751_vm14, %v1740_v3, %v1495_v16 }
 0x132   : > { %v1742_v29 = vsel %vm1718_vm11, %v1705_v60, %v1449_v28 }
 0x134   : > { %v1528_v6 = vpop.permute.xlu0 %1527 }
 0x135   : > { %v1497_v56 = vpop.permute.xlu1 %1496  ;;  %v1806_v50 = vsel %vm1784_vm15, %v1773_v2, %v1528_v6 }
 0x136   : > { %v1775_v22 = vsel %vm1751_vm14, %v1742_v29, %v1497_v56 }
 0x138   : > { %v1561_v52 = vpop.permute.xlu0 %1560 }
 0x139   : > { %v1530_v36 = vpop.permute.xlu1 %1529  ;;  %v1839_v0 = vsel %vm1817_vm2, %v1806_v50, %v1561_v52 }
 0x13a   : > { %v1808_v4 = vsel %vm1784_vm15, %v1775_v22, %v1530_v36 }
 0x13c   : > { %v1594_v51 = vpop.permute.xlu0 %1593 }
 0x13d   : > { %v1563_v18 = vpop.permute.xlu1 %1562  ;;  %v1872_v55 = vsel %vm1850_vm3, %v1839_v0, %v1594_v51 }
 0x13e   : > { %v1841_v24 = vsel %vm1817_vm2, %v1808_v4, %v1563_v18 }
 0x140   : > { %v1626_v45 = vpop.permute.xlu0 %1625 }
 0x141   : > { %v1596_v13 = vpop.permute.xlu1 %1595  ;;  %v1905_v27 = vsel %vm1883_vm4, %v1872_v55, %v1626_v45 }
 0x142   : > { %v1874_v59 = vsel %vm1850_vm3, %v1841_v24, %v1596_v13 }
 0x144   : > { %v1658_v63 = vpop.permute.xlu0 %1657 }
 0x145   : > { %v1938_v11 = vsel %vm1916_vm5, %v1905_v27, %v1658_v63  ;;  %v1628_v44 = vpop.permute.xlu1 %1627 }
 0x146   : > { %4271 = vmatprep.mubr.msk.bf16.mxu0 %vm1976_vm7, %v1938_v11  ;;  %v1907_v40 = vsel %vm1883_vm4, %v1874_v59, %v1628_v44 }
 0x148   : > { %v1660_v10 = vpop.permute.xlu0 %1659 }
 0x149   : > { %v1940_v21 = vsel %vm1916_vm5, %v1907_v40, %v1660_v10  ;;  %v1403_v8 = vpop.permute.xlu1 %1402 }
 0x14a   : > { %4272 = vmatmul.mubr.msk.bf16.gmra.mrb[20].mxu0 %vm1976_vm7, %v1940_v21  ;;  %v1708_v6 = vsel %vm1669_vm10, %v5109_v37, %v1403_v8 }
 0x14c   : > { %v1451_v17 = vpop.permute.xlu0 %1450 }
 0x14d   : > { %v1405_v41 = vpop.permute.xlu1 %1404  ;;  %v1744_v56 = vsel %vm1718_vm11, %v1708_v6, %v1451_v17  ;;  %v5420_v17 = vld [vmem:[%s6376_s4] ss:$0 sm:$0xff] }
 0x14e   : > { %v1711_v46 = vsel %vm1669_vm10, %v5167_v62, %v1405_v41 }
 0x150   : > { %v1499_v42 = vpop.permute.xlu0 %1498 }
 0x151   : > { %v1453_v15 = vpop.permute.xlu1 %1452  ;;  %v1777_v52 = vsel %vm1751_vm14, %v1744_v56, %v1499_v42 }
 0x152   : > { %v1746_v2 = vsel %vm1718_vm11, %v1711_v46, %v1453_v15 }
 0x154   : > { %v1532_v43 = vpop.permute.xlu0 %1531 }
 0x155   : > { %v1501_v38 = vpop.permute.xlu1 %1500  ;;  %v1810_v51 = vsel %vm1784_vm15, %v1777_v52, %v1532_v43 }
 0x156   : > { %v1779_v50 = vsel %vm1751_vm14, %v1746_v2, %v1501_v38 }
 0x158   : > { %v1565_v49 = vpop.permute.xlu0 %1564 }
 0x159   : > { %v1534_v23 = vpop.permute.xlu1 %1533  ;;  %v1843_v3 = vsel %vm1817_vm2, %v1810_v51, %v1565_v49 }
 0x15a   : > { %v1812_v60 = vsel %vm1784_vm15, %v1779_v50, %v1534_v23 }
 0x15c   : > { %v1598_v16 = vpop.permute.xlu0 %1597 }
 0x15d   : > { %v1567_v28 = vpop.permute.xlu1 %1566  ;;  %v1876_v45 = vsel %vm1850_vm3, %v1843_v3, %v1598_v16 }
 0x15e   : > { %v1845_v55 = vsel %vm1817_vm2, %v1812_v60, %v1567_v28 }
 0x160   : > { %v1630_v36 = vpop.permute.xlu0 %1629 }
 0x161   : > { %v1600_v18 = vpop.permute.xlu1 %1599  ;;  %v1909_v37 = vsel %vm1883_vm4, %v1876_v45, %v1630_v36 }
 0x162   : > { %v1878_v62 = vsel %vm1850_vm3, %v1845_v55, %v1600_v18 }
 0x164   : > { %v1662_v13 = vpop.permute.xlu0 %1661 }
 0x165   : > { %v1942_v0 = vsel %vm1916_vm5, %v1909_v37, %v1662_v13  ;;  %v1632_v29 = vpop.permute.xlu1 %1631 }
 0x166   : > { %4275 = vmatprep.mubr.msk.bf16.mxu0 %vm1976_vm7, %v1942_v0  ;;  %v1911_v22 = vsel %vm1883_vm4, %v1878_v62, %v1632_v29 }
 0x168   : > { %v1664_v27 = vpop.permute.xlu0 %1663 }
 0x169   : > { %v1944_v63 = vsel %vm1916_vm5, %v1911_v22, %v1664_v27  ;;  %v1407_v4 = vpop.permute.xlu1 %1406 }
 0x16a   : > { %4276 = vmatmul.mubr.msk.bf16.gmra.mrb[24].mxu0 %vm1976_vm7, %v1944_v63  ;;  %v1714_v42 = vsel %vm1669_vm10, %v5232_v32, %v1407_v4 }
 0x16c   : > { %v1455_v11 = vpop.permute.xlu0 %1454 }
 0x16d   : > { %v1409_v44 = vpop.permute.xlu1 %1408  ;;  %v1748_v38 = vsel %vm1718_vm11, %v1714_v42, %v1455_v11 }
 0x16e   : > { %v1717_v16 = vsel %vm1669_vm10, %v5285_v20, %v1409_v44 }
 0x170   : > { %v1503_v24 = vpop.permute.xlu0 %1502 }
 0x171   : > { %v1457_v59 = vpop.permute.xlu1 %1456  ;;  %v1781_v28 = vsel %vm1751_vm14, %v1748_v38, %v1503_v24 }
 0x172   : > { %v1750_v52 = vsel %vm1718_vm11, %v1717_v16, %v1457_v59 }
 0x174   : > { %v1536_v40 = vpop.permute.xlu0 %1535 }
 0x175   : > { %v1505_v10 = vpop.permute.xlu1 %1504  ;;  %v1814_v36 = vsel %vm1784_vm15, %v1781_v28, %v1536_v40 }
 0x176   : > { %v1783_v3 = vsel %vm1751_vm14, %v1750_v52, %v1505_v10  ;;  %vm3237_vm14 = vcmask 1043456  }
 0x178   : > { %v1569_v21 = vpop.permute.xlu0 %1568 }
 0x179   : > { %v1538_v8 = vpop.permute.xlu1 %1537  ;;  %v1847_v2 = vsel %vm1817_vm2, %v1814_v36, %v1569_v21 }
 0x17a   : > { %v1816_v37 = vsel %vm1784_vm15, %v1783_v3, %v1538_v8  ;;  %v4496_v3 = vld [vmem:[%s6374_s2 + $0x8] sm:$0xff]  }
 0x17c   : > { %v1602_v41 = vpop.permute.xlu0 %1601 }
 0x17d   : > { %v4253_v15 = vpop.f32.mrb[0].mxu0  ;;  %v1571_v43 = vpop.permute.xlu1 %1570  ;;  %v1880_v13 = vsel %vm1850_vm3, %v1847_v2, %v1602_v41 }
 0x17e   : > { %v2056_v49 = vadd.f32 %v4253_v15, %v5420_v17  ;;  %v2047_v23 = vpop.f32.mrb[1].mxu0  ;;  %v1849_v29 = vsel %vm1817_vm2, %v1816_v37, %v1571_v43  ;;  %vm3029_vm2 = vcmask 326656  }
 0x17f   : > { %v2048_v6 = vadd.f32 %v5420_v17, %v2047_v23  ;;  %v4254_v56 = vpop.f32.mrb[2].mxu0 }
 0x180   : > { %v2176_v32 = vmax.f32 %v2056_v49, 0.0  ;;  %v2059_v51 = vadd.f32 %v4254_v56, %v5420_v17  ;;  %v1634_v18 = vpop.permute.xlu0 %1633  ;;  %v2050_v46 = vpop.f32.mrb[3].mxu0 }
 0x181   : > { %v2174_v45 = vmax.f32 %v2048_v6, 0.0  ;;  %v2051_v20 = vadd.f32 %v5420_v17, %v2050_v46  ;;  %v1604_v50 = vpop.permute.xlu1 %1603  ;;  %v4495_v46 = vld [vmem:[%s6374_s2] sm:$0xff]  }
 0x182   : > { %v2240_v60 = vmul.f32 %v4647_v26, %v2176_v32  ;;  %v5439_v0 = vmax.f32 %v2059_v51, 0.0  ;;  %v1913_v26 = vsel %vm1883_vm4, %v1880_v13, %v1634_v18  ;;  %v1882_v15 = vsel %vm1850_vm3, %v1849_v29, %v1604_v50  ;;  %4283 = vmatprep.subr.bf16.mxu0 %v4495_v46  ;;  %4359 = vmatprep.subr.bf16.mxu1 %v4495_v46 }
 0x183   : > { %v2238_v55 = vmul.f32 %v4638_v19, %v2174_v45  ;;  %v2300_v62 = vrot.slane %v2174_v45, 7  ;;  %v2175_v22 = vmax.f32 %v2051_v20, 0.0  ;;  %v2303_v19 = vrot.slane %v2176_v32, 7  ;;  %4284 = vmatpush3.bf16.msra.mxu0 %v4495_v46  ;;  %4364 = vmatpush3.bf16.msra.mxu1 %v4495_v46 }
 0x184   : > { %v2454_v27 = vrot.slane %v2240_v60, 1  ;;  %v5445_v63 = vmul.f32 %v4656_v35, %v5439_v0  ;;  %v2406_v4 = vpack.c.bf16 %v5439_v0, %v2176_v32  ;;  %v2456_v11 = vrot.slane %v5439_v0, 1  ;;  %v1666_v44 = vpop.permute.xlu0 %1665  ;;  %4285 = vmatprep.subr.bf16.mxu0 %v4496_v3  ;;  %4360 = vmatprep.subr.bf16.mxu1 %v4496_v3 }
 0x185   : > { %v2451_v24 = vrot.slane %v2238_v55, 1  ;;  %v2207_v59 = vmul.f32 %v4644_v25, %v2175_v22  ;;  %v2405_v40 = vpack.c.bf16 %v2175_v22, %v2174_v45  ;;  %v1636_v10 = vpop.permute.xlu1 %1635  ;;  %v2452_v8 = vrot.slane %v2175_v22, 1  ;;  %v4497_v55 = vld [vmem:[%s6374_s2 + $0x10] sm:$0xff]  }
 0x186   : > { %v2305_v21 = vrot.slane %v5445_v63, 7  ;;  %v1946_v41 = vsel %vm1916_vm5, %v1913_v26, %v1666_v44  ;;  %2822 = vrot.lane.b32.xlu0 %v2406_v4, %s4565_s21  ;;  %2726 = vrot.lane.b32.xlu1 %v2406_v4, %s4564_s18  ;;  %v2389_v35 = vsel %vm1079_vm1, 0.0, %v2300_v62  ;;  %v5461_v25 = vsel %vm1232_vm0, %v2454_v27, %v2456_v11 }
 0x187   : > { %v2301_v42 = vrot.slane %v2207_v59, 7  ;;  %4279 = vmatprep.mubr.msk.bf16.mxu0 %vm1976_vm7, %v1946_v41  ;;  %v1915_v43 = vsel %vm1883_vm4, %v1882_v15, %v1636_v10  ;;  %v2453_v38 = vsel %vm1232_vm0, %v2451_v24, %v2452_v8  ;;  %v2455_v49 = vsel %vm1232_vm0, %v2452_v8, %v2454_v27  ;;  %4286 = vmatpush3.bf16.msra.mxu0 %v4496_v3 }
 0x188   : > { %v2306_v23 = vsel %vm1079_vm1, %v2303_v19, %v2305_v21  ;;  %v2543_v16 = vsel %vm1232_vm0, 0.0, %v2451_v24  ;;  %v2545_v6 = vpack.c.bf16 %v2455_v49, %v2453_v38  ;;  %4365 = vmatpush3.bf16.msra.mxu1 %v4496_v3  ;;  %4287 = vmatprep.subr.bf16.mxu0 %v4497_v55  ;;  %vm3062_vm4 = vcmask 392192  }
 0x189   : > { %v1668_v28 = vpop.permute.xlu1 %1667  ;;  %v2302_v56 = vsel %vm1079_vm1, %v2300_v62, %v2301_v42  ;;  %v2304_v52 = vsel %vm1079_vm1, %v2301_v42, %v2303_v19  ;;  %v2544_v18 = vpack.c.bf16 %v2543_v16, %v6405_v61  ;;  %4361 = vmatprep.subr.bf16.mxu1 %v4497_v55  ;;  %v4498_v19 = vld [vmem:[%s6374_s2 + $0x18] sm:$0xff]  }
 0x18a   : > { %v1948_v36 = vsel %vm1916_vm5, %v1915_v43, %v1668_v28  ;;  %2724 = vrot.lane.b32.xlu0 %v2405_v40, %s4564_s18  ;;  %2599 = vrot.lane.b32.xlu1 %v2406_v4, %s4559_s11  ;;  %v5475_v32 = vpack.c.bf16 %v2302_v56, %v2389_v35  ;;  %v5477_v51 = vpack.c.bf16 %v2306_v23, %v2304_v52 }
 0x18b   : > { %4280 = vmatmul.mubr.msk.bf16.gmra.mrb[28].mxu0 %vm1976_vm7, %v1948_v36  ;;  %vm3095_vm7 = vcmask 457728  }
 0x18c   : > { %4288 = vmatpush3.bf16.msra.mxu0 %v4497_v55  ;;  %4366 = vmatpush3.bf16.msra.mxu1 %v4497_v55 }
 0x18d   : > { %4289 = vmatprep.subr.bf16.mxu0 %v4498_v19  ;;  %4362 = vmatprep.subr.bf16.mxu1 %v4498_v19 }
 0x18e   : > { %2643 = vrot.lane.b32.xlu0 %v2544_v18, %s4558_s8  ;;  %2597 = vrot.lane.b32.xlu1 %v2405_v40, %s4559_s11 }
 0x190   : > { %4290 = vmatpush3.bf16.msra.mxu0 %v4498_v19  ;;  %4367 = vmatpush3.bf16.msra.mxu1 %v4498_v19 }
 0x192   : > { %2757 = vrot.lane.b32.xlu0 %v2545_v6, %s4567_s27  ;;  %2645 = vrot.lane.b32.xlu1 %v2545_v6, %s4558_s8 }
 0x196   : > { %2691 = vrot.lane.b32.xlu0 %v5475_v32, %s4562_s16  ;;  %2693 = vrot.lane.b32.xlu1 %v5477_v51, %s4562_s16 }
 0x19a   : > { %2790 = vrot.lane.b32.xlu0 %v5477_v51, %s4568_s9 }
 0x19d   : > { %v4257_v2 = vpop.f32.mrb[4].mxu0 }
 0x19e   : > { %v2072_v45 = vadd.f32 %v4257_v2, %v5420_v17  ;;  %v2063_v20 = vpop.f32.mrb[5].mxu0 }
 0x19f   : > { %v2064_v50 = vadd.f32 %v5420_v17, %v2063_v20  ;;  %v4258_v37 = vpop.f32.mrb[6].mxu0 }
 0x1a0   : > { %v2180_v13 = vmax.f32 %v2072_v45, 0.0  ;;  %v2075_v60 = vadd.f32 %v4258_v37, %v5420_v17  ;;  %v2066_v29 = vpop.f32.mrb[7].mxu0 }
 0x1a1   : > { %v2178_v62 = vmax.f32 %v2064_v50, 0.0  ;;  %v2067_v22 = vadd.f32 %v5420_v17, %v2066_v29 }
 0x1a2   : > { %v2244_v27 = vmul.f32 %v4706_v12, %v2180_v13  ;;  %v5505_v4 = vmax.f32 %v2075_v60, 0.0  ;;  %v2311_v42 = vrot.slane %v2180_v13, 7 }
 0x1a3   : > { %v2242_v44 = vmul.f32 %v4682_v57, %v2178_v62  ;;  %v2307_v24 = vrot.slane %v2178_v62, 7  ;;  %v2179_v26 = vmax.f32 %v2067_v22, 0.0 }
 0x1a4   : > { %v2462_v59 = vrot.slane %v2244_v27, 1  ;;  %v5510_v40 = vmul.f32 %v4733_v34, %v5505_v4  ;;  %v5513_v10 = vpack.c.bf16 %v5505_v4, %v2180_v13  ;;  %v2464_v12 = vrot.slane %v5505_v4, 1 }
 0x1a5   : > { %v2458_v8 = vrot.slane %v2242_v44, 1  ;;  %v2211_v57 = vmul.f32 %v4694_v5, %v2179_v26  ;;  %v5520_v41 = vpack.c.bf16 %v2179_v26, %v2178_v62  ;;  %v2460_v35 = vrot.slane %v2179_v26, 1 }
 0x1a6   : > { %v2313_v15 = vrot.slane %v5510_v40, 7  ;;  %v2308_v34 = vsel %vm1079_vm1, %v2305_v21, %v2307_v24  ;;  %v2465_v43 = vsel %vm1232_vm0, %v2462_v59, %v2464_v12  ;;  %v4499_v21 = vld [vmem:[%s6374_s2 + $0x20] ss:$0 sps:$4 sm:$0xff]  }
 0x1a7   : > { %v2309_v38 = vrot.slane %v2211_v57, 7  ;;  %2824 = vrot.lane.b32.xlu1 %v5520_v41, %s4565_s21  ;;  %v2459_v5 = vsel %vm1232_vm0, %v2456_v11, %v2458_v8  ;;  %v2461_v49 = vsel %vm1232_vm0, %v2458_v8, %v2460_v35  ;;  %v2463_v63 = vsel %vm1232_vm0, %v2460_v35, %v2462_v59  ;;  %4466 = vmatprep.subr.msk.bf16.mxu0 %vm3237_vm14, %v4499_v21 }
 0x1a8   : > { %v2546_v23 = vpack.c.bf16 %v2459_v5, %v5461_v25  ;;  %v5540_v16 = vpack.c.bf16 %v2463_v63, %v2461_v49  ;;  %v2314_v28 = vsel %vm1079_vm1, %v2311_v42, %v2313_v15  ;;  %4467 = vmatprep.subr.msk.bf16.mxu1 %vm3237_vm14, %v4499_v21  ;;  %v3239_v56 = vsel %vm3237_vm14, %v4499_v21, 0 }
 0x1a9   : > { %v2310_v0 = vsel %vm1079_vm1, %v2307_v24, %v2309_v38  ;;  %v2312_v11 = vsel %vm1079_vm1, %v2309_v38, %v2311_v42  ;;  %4292 = vmatpush3.bf16.msra.mxu0 %v3239_v56  ;;  %4368 = vmatpush3.bf16.msra.mxu1 %v3239_v56 }
 0x1aa   : > { %2854 = vrot.lane.b32.xlu0 %v2546_v23, %s4566_s22  ;;  %v5546_v6 = vpack.c.bf16 %v2310_v0, %v2308_v34  ;;  %v5548_v52 = vpack.c.bf16 %v2314_v28, %v2312_v11 }
 0x1ab   : > { %2601 = vrot.lane.b32.xlu1 %v5520_v41, %s4559_s11 }
 0x1ae   : > { %2856 = vrot.lane.b32.xlu0 %v5540_v16, %s4566_s22 }
 0x1af   : > { %2759 = vrot.lane.b32.xlu1 %v2546_v23, %s4567_s27 }
 0x1b2   : > { %2647 = vrot.lane.b32.xlu0 %v2546_v23, %s4558_s8 }
 0x1b3   : > { %2649 = vrot.lane.b32.xlu1 %v5540_v16, %s4558_s8 }
 0x1b7   : > { %2792 = vrot.lane.b32.xlu1 %v5546_v6, %s4568_s9 }
 0x1bd   : > { %v4261_v25 = vpop.f32.mrb[8].mxu0 }
 0x1be   : > { %v2088_v36 = vadd.f32 %v4261_v25, %v5420_v17  ;;  %v2079_v18 = vpop.f32.mrb[9].mxu0 }
 0x1bf   : > { %v2080_v46 = vadd.f32 %v5420_v17, %v2079_v18  ;;  %v4262_v3 = vpop.f32.mrb[10].mxu0 }
 0x1c0   : > { %v2184_v2 = vmax.f32 %v2088_v36, 0.0  ;;  %v2091_v45 = vadd.f32 %v4262_v3, %v5420_v17  ;;  %v2082_v20 = vpop.f32.mrb[11].mxu0 }
 0x1c1   : > { %v2182_v50 = vmax.f32 %v2080_v46, 0.0  ;;  %v2083_v37 = vadd.f32 %v5420_v17, %v2082_v20 }
 0x1c2   : > { %v2248_v13 = vmul.f32 %v4772_v9, %v2184_v2  ;;  %v2185_v60 = vmax.f32 %v2091_v45, 0.0  ;;  %v2319_v8 = vrot.slane %v2184_v2, 7 }
 0x1c3   : > { %v2246_v29 = vmul.f32 %v4745_v47, %v2182_v50  ;;  %v2315_v55 = vrot.slane %v2182_v50, 7  ;;  %v2183_v62 = vmax.f32 %v2083_v37, 0.0 }
 0x1c4   : > { %v2470_v22 = vrot.slane %v2248_v13, 1  ;;  %v2217_v27 = vmul.f32 %v4801_v33, %v2185_v60  ;;  %v5567_v44 = vpack.c.bf16 %v2185_v60, %v2184_v2  ;;  %v2472_v24 = vrot.slane %v2185_v60, 1 }
 0x1c5   : > { %v2466_v26 = vrot.slane %v2246_v29, 1  ;;  %v2215_v59 = vmul.f32 %v4755_v54, %v2183_v62  ;;  %v5570_v40 = vpack.c.bf16 %v2183_v62, %v2182_v50  ;;  %v2468_v19 = vrot.slane %v2183_v62, 1 }
 0x1c6   : > { %v2321_v57 = vrot.slane %v2217_v27, 7  ;;  %v2316_v9 = vsel %vm1079_vm1, %v2313_v15, %v2315_v55  ;;  %v2473_v47 = vsel %vm1232_vm0, %v2470_v22, %v2472_v24 }
 0x1c7   : > { %v2317_v35 = vrot.slane %v2215_v59, 7  ;;  %v2467_v33 = vsel %vm1232_vm0, %v2464_v12, %v2466_v26  ;;  %v2469_v42 = vsel %vm1232_vm0, %v2466_v26, %v2468_v19  ;;  %v2471_v34 = vsel %vm1232_vm0, %v2468_v19, %v2470_v22 }
 0x1c8   : > { %v5579_v38 = vpack.c.bf16 %v2467_v33, %v2465_v43  ;;  %v5581_v54 = vpack.c.bf16 %v2471_v34, %v2469_v42  ;;  %v2322_v5 = vsel %vm1079_vm1, %v2319_v8, %v2321_v57  ;;  %v5625_v34 = vpop.permute.xlu1 %2852 }
 0x1c9   : > { %v2318_v49 = vsel %vm1079_vm1, %v2315_v55, %v2317_v35  ;;  %v2320_v15 = vsel %vm1079_vm1, %v2317_v35, %v2319_v8 }
 0x1ca   : > { %v5586_v63 = vpack.c.bf16 %v2318_v49, %v2316_v9  ;;  %v5588_v21 = vpack.c.bf16 %v2322_v5, %v2320_v15 }
 0x1cc   : > { %v5627_v5 = vpop.permute.xlu1 %2884 }
 0x1dd   : > { %v4265_v4 = vpop.f32.mrb[12].mxu0 }
 0x1de   : > { %v2104_v12 = vadd.f32 %v4265_v4, %v5420_v17  ;;  %v2095_v23 = vpop.f32.mrb[13].mxu0 }
 0x1df   : > { %v2096_v28 = vadd.f32 %v5420_v17, %v2095_v23  ;;  %v4266_v43 = vpop.f32.mrb[14].mxu0 }
 0x1e0   : > { %v2188_v0 = vmax.f32 %v2104_v12, 0.0  ;;  %v2107_v11 = vadd.f32 %v4266_v43, %v5420_v17  ;;  %v2098_v56 = vpop.f32.mrb[15].mxu0 }
 0x1e1   : > { %v2186_v25 = vmax.f32 %v2096_v28, 0.0  ;;  %v2099_v36 = vadd.f32 %v5420_v17, %v2098_v56 }
 0x1e2   : > { %v2252_v18 = vmul.f32 %v4839_v14, %v2188_v0  ;;  %v5595_v46 = vmax.f32 %v2107_v11, 0.0  ;;  %v2327_v62 = vrot.slane %v2188_v0, 7 }
 0x1e3   : > { %v2250_v3 = vmul.f32 %v4812_v48, %v2186_v25  ;;  %v2323_v2 = vrot.slane %v2186_v25, 7  ;;  %v2187_v45 = vmax.f32 %v2099_v36, 0.0 }
 0x1e4   : > { %v2478_v20 = vrot.slane %v2252_v18, 1  ;;  %v2221_v50 = vmul.f32 %v4860_v39, %v5595_v46  ;;  %v5601_v37 = vpack.c.bf16 %v5595_v46, %v2188_v0  ;;  %v2480_v13 = vrot.slane %v5595_v46, 1 }
 0x1e5   : > { %v2474_v60 = vrot.slane %v2250_v3, 1  ;;  %v2219_v29 = vmul.f32 %v4822_v58, %v2187_v45  ;;  %v5605_v55 = vpack.c.bf16 %v2187_v45, %v2186_v25  ;;  %v2476_v14 = vrot.slane %v2187_v45, 1 }
 0x1e6   : > { %v2329_v22 = vrot.slane %v2221_v50, 7  ;;  %2611 = vrot.lane.b32.xlu0 %v5601_v37, %s4559_s11  ;;  %v2481_v48 = vsel %vm1232_vm0, %v2478_v20, %v2480_v13  ;;  %v2324_v39 = vsel %vm1079_vm1, %v2321_v57, %v2323_v2 }
 0x1e7   : > { %v2325_v27 = vrot.slane %v2219_v29, 7  ;;  %v2475_v26 = vsel %vm1232_vm0, %v2472_v24, %v2474_v60  ;;  %v2477_v59 = vsel %vm1232_vm0, %v2474_v60, %v2476_v14  ;;  %v2479_v19 = vsel %vm1232_vm0, %v2476_v14, %v2478_v20  ;;  %v2596_v24 = vpop.permute.xlu0 %2595  ;;  %v6418_v29 = vld [vmem:[#allocation4_spill] sm:$0xff] }
 0x1e8   : > { %v2330_v58 = vsel %vm1079_vm1, %v2327_v62, %v2329_v22  ;;  %v5615_v8 = vpack.c.bf16 %v2475_v26, %v2473_v47  ;;  %v5617_v9 = vpack.c.bf16 %v2479_v19, %v2477_v59  ;;  %v6419_v26 = vld [vmem:[#allocation3_spill] sm:$0xff] }
 0x1e9   : > { %v2328_v35 = vsel %vm1079_vm1, %v2325_v27, %v2327_v62  ;;  %v2326_v33 = vsel %vm1079_vm1, %v2323_v2, %v2325_v27 }
 0x1ea   : > { %v5621_v42 = vpack.c.bf16 %v2330_v58, %v2328_v35  ;;  %v5623_v57 = vpack.c.bf16 %v2326_v33, %v2324_v39 }
 0x1f8   : > { %v5629_v49 = vpop.permute.xlu0 %2822  ;;  %v5631_v47 = vpop.permute.xlu1 %2726 }
 0x1fc   : > { %v2725_v15 = vpop.permute.xlu0 %2724  ;;  %v5640_v2 = vpop.permute.xlu1 %2599 }
 0x1fd   : > { %v4269_v4 = vpop.f32.mrb[16].mxu0 }
 0x1fe   : > { %v2120_v12 = vadd.f32 %v4269_v4, %v5420_v17  ;;  %v2111_v23 = vpop.f32.mrb[17].mxu0 }
 0x1ff   : > { %v2112_v28 = vadd.f32 %v5420_v17, %v2111_v23  ;;  %v4270_v43 = vpop.f32.mrb[18].mxu0 }
 0x200   : > { %v2192_v0 = vmax.f32 %v2120_v12, 0.0  ;;  %v2123_v11 = vadd.f32 %v4270_v43, %v5420_v17  ;;  %v2114_v56 = vpop.f32.mrb[19].mxu0  ;;  %v2644_v36 = vpop.permute.xlu0 %2643 }
 0x201   : > { %v2190_v25 = vmax.f32 %v2112_v28, 0.0  ;;  %v2115_v18 = vadd.f32 %v5420_v17, %v2114_v56  ;;  %v2598_v56 = vpop.permute.xlu1 %2597 }
 0x202   : > { %v2256_v46 = vmul.f32 %v4901_v31, %v2192_v0  ;;  %v5638_v3 = vmax.f32 %v2123_v11, 0.0  ;;  %v2335_v58 = vrot.slane %v2192_v0, 7 }
 0x203   : > { %v2254_v45 = vmul.f32 %v4871_v53, %v2190_v25  ;;  %v2331_v20 = vrot.slane %v2190_v25, 7  ;;  %v2191_v50 = vmax.f32 %v2115_v18, 0.0 }
 0x204   : > { %v2486_v60 = vrot.slane %v2256_v46, 1  ;;  %v5645_v14 = vmul.f32 %v6418_v29, %v5638_v3  ;;  %v2414_v62 = vpack.c.bf16 %v5638_v3, %v2192_v0  ;;  %v2488_v39 = vrot.slane %v5638_v3, 1  ;;  %v2758_v12 = vpop.permute.xlu0 %2757 }
 0x205   : > { %v2482_v27 = vrot.slane %v2254_v45, 1  ;;  %v2223_v31 = vmul.f32 %v6419_v26, %v2191_v50  ;;  %v5650_v59 = vpack.c.bf16 %v2191_v50, %v2190_v25  ;;  %v2484_v19 = vrot.slane %v2191_v50, 1  ;;  %v2646_v50 = vpop.permute.xlu1 %2645 }
 0x206   : > { %v2337_v53 = vrot.slane %v5645_v14, 7  ;;  %2838 = vrot.lane.b32.xlu0 %v2414_v62, %s4565_s21  ;;  %2742 = vrot.lane.b32.xlu1 %v2414_v62, %s4564_s18  ;;  %v2332_v35 = vsel %vm1079_vm1, %v2329_v22, %v2331_v20  ;;  %v5659_v33 = vsel %vm1232_vm0, %v2486_v60, %v2488_v39  ;;  %v2887_v46 = vsel %vm1718_vm11, 0.0|0.0, %v2596_v24 }
 0x207   : > { %v2333_v4 = vrot.slane %v2223_v31, 7  ;;  %v2483_v23 = vsel %vm1232_vm0, %v2480_v13, %v2482_v27  ;;  %v2485_v28 = vsel %vm1232_vm0, %v2482_v27, %v2484_v19  ;;  %v2487_v43 = vsel %vm1232_vm0, %v2484_v19, %v2486_v60 }
 0x208   : > { %v5664_v0 = vpack.c.bf16 %v2483_v23, %v2481_v48  ;;  %v5666_v11 = vpack.c.bf16 %v2487_v43, %v2485_v28  ;;  %v2338_v22 = vsel %vm1079_vm1, %v2335_v58, %v2337_v53  ;;  %v2692_v45 = vpop.permute.xlu0 %2691 }
 0x209   : > { %v2336_v25 = vsel %vm1079_vm1, %v2333_v4, %v2335_v58  ;;  %v2334_v18 = vsel %vm1079_vm1, %v2331_v20, %v2333_v4  ;;  %v2934_v20 = vsel %vm1784_vm15, %v2887_v46, %v2644_v36  ;;  %v2694_v29 = vpop.permute.xlu1 %2693 }
 0x20a   : > { %2615 = vrot.lane.b32.xlu1 %v2414_v62, %s4559_s11  ;;  %2740 = vrot.lane.b32.xlu0 %v5650_v59, %s4564_s18  ;;  %v5676_v13 = vpack.c.bf16 %v2338_v22, %v2336_v25  ;;  %v5678_v48 = vpack.c.bf16 %v2334_v18, %v2332_v35  ;;  %v2966_v60 = vsel %vm1850_vm3, %v2934_v20, %v2692_v45 }
 0x20b   : > { %v2998_v24 = vsel %vm1916_vm5, %v2966_v60, %v2725_v15  ;;  %v6420_v60 = vld [vmem:[#allocation7_spill] sm:$0xff] }
 0x20c   : > { %v3031_v62 = vsel %vm3029_vm2, %v2998_v24, %v2758_v12  ;;  %v2791_v27 = vpop.permute.xlu0 %2790 }
 0x20d   : > { %v3064_v36 = vsel %vm3062_vm4, %v3031_v62, %v2791_v27 }
 0x20e   : > { %2613 = vrot.lane.b32.xlu1 %v5650_v59, %s4559_s11  ;;  %2659 = vrot.lane.b32.xlu0 %v5664_v0, %s4558_s8  ;;  %v3097_v15 = vsel %vm3095_vm7, %v3064_v36, %v5629_v49  ;;  %v2890_v49 = vsel %vm1718_vm11, %v5475_v32, %v2598_v56  ;;  %v6421_v36 = vld [vmem:[#allocation5_spill] sm:$0xff] }
 0x20f   : > { %v2936_v20 = vsel %vm1784_vm15, %v2890_v49, %v2646_v50 }
 0x210   : > { %v2968_v27 = vsel %vm1850_vm3, %v2936_v20, %v2694_v29 }
 0x212   : > { %2661 = vrot.lane.b32.xlu1 %v5666_v11, %s4558_s8  ;;  %2773 = vrot.lane.b32.xlu0 %v5666_v11, %s4567_s27 }
 0x216   : > { %2709 = vrot.lane.b32.xlu1 %v5676_v13, %s4562_s16  ;;  %2707 = vrot.lane.b32.xlu0 %v5678_v48, %s4562_s16 }
 0x219   : > { %v5698_v26 = vpop.permute.xlu1 %2824 }
 0x21a   : > { %2806 = vrot.lane.b32.xlu0 %v5676_v13, %s4568_s9 }
 0x21c   : > { %v2855_v31 = vpop.permute.xlu0 %2854 }
 0x21d   : > { %v3130_v19 = vsel %vm3128_vm9, %v3097_v15, %v2855_v31  ;;  %v4273_v58 = vpop.f32.mrb[20].mxu0  ;;  %v5705_v35 = vpop.permute.xlu1 %2601 }
 0x21e   : > { %v2136_v4 = vadd.f32 %v4273_v58, %v5420_v17  ;;  %v2127_v12 = vpop.f32.mrb[21].mxu0  ;;  %4293 = vmatprep.mubr.msk.bf16.mxu0 %vm3204_vm12, %v3130_v19 }
 0x21f   : > { %v2128_v23 = vadd.f32 %v5420_v17, %v2127_v12  ;;  %v4274_v28 = vpop.f32.mrb[22].mxu0 }
 0x220   : > { %v2196_v43 = vmax.f32 %v2136_v4, 0.0  ;;  %v2139_v22 = vadd.f32 %v4274_v28, %v5420_v17  ;;  %v2130_v25 = vpop.f32.mrb[23].mxu0  ;;  %v6422_v4 = vld [vmem:[#allocation8_spill] sm:$0xff] }
 0x221   : > { %v2194_v18 = vmax.f32 %v2128_v23, 0.0  ;;  %v2131_v46 = vadd.f32 %v5420_v17, %v2130_v25  ;;  %v2760_v45 = vpop.permute.xlu1 %2759  ;;  %v6423_v23 = vld [vmem:[#allocation6_spill] sm:$0xff] }
 0x222   : > { %v2260_v24 = vmul.f32 %v6420_v60, %v2196_v43  ;;  %v5716_v62 = vmax.f32 %v2139_v22, 0.0  ;;  %v2343_v29 = vrot.slane %v2196_v43, 7 }
 0x223   : > { %v2258_v15 = vmul.f32 %v6421_v36, %v2194_v18  ;;  %v2339_v31 = vrot.slane %v2194_v18, 7  ;;  %v2195_v19 = vmax.f32 %v2131_v46, 0.0  ;;  %v3000_v46 = vsel %vm1916_vm5, %v2968_v27, %v5631_v47 }
 0x224   : > { %v2494_v58 = vrot.slane %v2260_v24, 1  ;;  %v5722_v32 = vmul.f32 %v6422_v4, %v5716_v62  ;;  %v2416_v56 = vpack.c.bf16 %v5716_v62, %v2196_v43  ;;  %v2496_v12 = vrot.slane %v5716_v62, 1 }
 0x225   : > { %v2490_v50 = vrot.slane %v2258_v15, 1  ;;  %v2227_v28 = vmul.f32 %v6423_v23, %v2195_v19  ;;  %v2415_v22 = vpack.c.bf16 %v2195_v19, %v2194_v18  ;;  %v2492_v25 = vrot.slane %v2195_v19, 1  ;;  %v5727_v49 = vpop.permute.xlu1 %2649  ;;  %v2857_v23 = vpop.permute.xlu0 %2856 }
 0x226   : > { %v2345_v20 = vrot.slane %v5722_v32, 7  ;;  %2842 = vrot.lane.b32.xlu0 %v2416_v56, %s4565_s21  ;;  %2746 = vrot.lane.b32.xlu1 %v2416_v56, %s4564_s18  ;;  %v2340_v60 = vsel %vm1079_vm1, %v2337_v53, %v2339_v31  ;;  %v2497_v14 = vsel %vm1232_vm0, %v2494_v58, %v2496_v12  ;;  %v3033_v53 = vsel %vm3029_vm2, %v3000_v46, %v2760_v45 }
 0x227   : > { %v2341_v24 = vrot.slane %v2227_v28, 7  ;;  %v2491_v18 = vsel %vm1232_vm0, %v2488_v39, %v2490_v50  ;;  %v2493_v43 = vsel %vm1232_vm0, %v2490_v50, %v2492_v25  ;;  %v2495_v36 = vsel %vm1232_vm0, %v2492_v25, %v2494_v58 }
 0x228   : > { %v2554_v15 = vpack.c.bf16 %v2491_v18, %v5659_v33  ;;  %v2555_v47 = vpack.c.bf16 %v2495_v36, %v2493_v43  ;;  %v2346_v27 = vsel %vm1079_vm1, %v2343_v29, %v2345_v20  ;;  %v6424_v18 = vld [vmem:[#allocation11_spill] sm:$0xff] }
 0x229   : > { %v2793_v3 = vpop.permute.xlu1 %2792  ;;  %v2342_v39 = vsel %vm1079_vm1, %v2339_v31, %v2341_v24  ;;  %v2344_v19 = vsel %vm1079_vm1, %v2341_v24, %v2343_v29 }
 0x22a   : > { %v3066_v4 = vsel %vm3062_vm4, %v3033_v53, %v2793_v3  ;;  %2619 = vrot.lane.b32.xlu1 %v2416_v56, %s4559_s11  ;;  %2744 = vrot.lane.b32.xlu0 %v2415_v22, %s4564_s18  ;;  %v5755_v33 = vpack.c.bf16 %v2342_v39, %v2340_v60  ;;  %v5757_v50 = vpack.c.bf16 %v2346_v27, %v2344_v19  ;;  %v6426_v39 = vld [vmem:[#allocation12_spill] sm:$0xff] }
 0x22b   : > { %v3099_v58 = vsel %vm3095_vm7, %v3066_v4, %v5698_v26 }
 0x22c   : > { %v3132_v45 = vsel %vm3128_vm9, %v3099_v58, %v2857_v23 }
 0x22d   : > { %4294 = vmatmul.mubr.msk.bf16.vlgmr.msra.gmra.mrb[32].mxu0 %vm3204_vm12, %v3132_v45  ;;  %v6427_v45 = vld [vmem:[#allocation10_spill] sm:$0xff] }
 0x22e   : > { %2840 = vrot.lane.b32.xlu1 %v2415_v22, %s4565_s21  ;;  %2870 = vrot.lane.b32.xlu0 %v2554_v15, %s4566_s22 }
 0x232   : > { %2617 = vrot.lane.b32.xlu1 %v2415_v22, %s4559_s11  ;;  %2872 = vrot.lane.b32.xlu0 %v2555_v47, %s4566_s22 }
 0x236   : > { %2663 = vrot.lane.b32.xlu0 %v2554_v15, %s4558_s8  ;;  %2775 = vrot.lane.b32.xlu1 %v2554_v15, %s4567_s27  ;;  %v6425_v15 = vld [vmem:[#allocation9_spill] sm:$0xff] }
 0x23a   : > { %2777 = vrot.lane.b32.xlu0 %v2555_v47, %s4567_s27  ;;  %2665 = vrot.lane.b32.xlu1 %v2555_v47, %s4558_s8 }
 0x23d   : > { %v4277_v26 = vpop.f32.mrb[24].mxu0 }
 0x23e   : > { %v2152_v31 = vadd.f32 %v4277_v26, %v5420_v17  ;;  %2711 = vrot.lane.b32.xlu0 %v5755_v33, %s4562_s16  ;;  %2808 = vrot.lane.b32.xlu1 %v5755_v33, %s4568_s9  ;;  %v2143_v56 = vpop.f32.mrb[25].mxu0 }
 0x23f   : > { %v2144_v28 = vadd.f32 %v5420_v17, %v2143_v56  ;;  %v4278_v22 = vpop.f32.mrb[26].mxu0 }
 0x240   : > { %v2200_v25 = vmax.f32 %v2152_v31, 0.0  ;;  %v2155_v29 = vadd.f32 %v4278_v22, %v5420_v17  ;;  %v2146_v46 = vpop.f32.mrb[27].mxu0 }
 0x241   : > { %v2198_v60 = vmax.f32 %v2144_v28, 0.0  ;;  %v2147_v24 = vadd.f32 %v5420_v17, %v2146_v46 }
 0x242   : > { %v2264_v43 = vmul.f32 %v6424_v18, %v2200_v25  ;;  %v5780_v36 = vmax.f32 %v2155_v29, 0.0  ;;  %2810 = vrot.lane.b32.xlu0 %v5757_v50, %s4568_s9  ;;  %2713 = vrot.lane.b32.xlu1 %v5757_v50, %s4562_s16  ;;  %v2351_v28 = vrot.slane %v2200_v25, 7 }
 0x243   : > { %v2262_v47 = vmul.f32 %v6425_v15, %v2198_v60  ;;  %v2347_v27 = vrot.slane %v2198_v60, 7  ;;  %v2199_v53 = vmax.f32 %v2147_v24, 0.0 }
 0x244   : > { %v2502_v3 = vrot.slane %v2264_v43, 1  ;;  %v5789_v19 = vmul.f32 %v6426_v39, %v5780_v36  ;;  %v2418_v4 = vpack.c.bf16 %v5780_v36, %v2200_v25  ;;  %v2504_v23 = vrot.slane %v5780_v36, 1 }
 0x245   : > { %v2498_v58 = vrot.slane %v2262_v47, 1  ;;  %v2231_v26 = vmul.f32 %v6427_v45, %v2199_v53  ;;  %v2417_v31 = vpack.c.bf16 %v2199_v53, %v2198_v60  ;;  %v2500_v56 = vrot.slane %v2199_v53, 1 }
 0x246   : > { %v2353_v22 = vrot.slane %v5789_v19, 7  ;;  %2846 = vrot.lane.b32.xlu0 %v2418_v4, %s4565_s21  ;;  %2750 = vrot.lane.b32.xlu1 %v2418_v4, %s4564_s18  ;;  %v2348_v29 = vsel %vm1079_vm1, %v2345_v20, %v2347_v27  ;;  %v2505_v46 = vsel %vm1232_vm0, %v2502_v3, %v2504_v23 }
 0x247   : > { %v2349_v24 = vrot.slane %v2231_v26, 7  ;;  %v2499_v60 = vsel %vm1232_vm0, %v2496_v12, %v2498_v58  ;;  %v2501_v25 = vsel %vm1232_vm0, %v2498_v58, %v2500_v56  ;;  %v2503_v18 = vsel %vm1232_vm0, %v2500_v56, %v2502_v3 }
 0x248   : > { %v2556_v43 = vpack.c.bf16 %v2499_v60, %v2497_v14  ;;  %v2557_v15 = vpack.c.bf16 %v2503_v18, %v2501_v25  ;;  %v2354_v47 = vsel %vm1079_vm1, %v2351_v28, %v2353_v22 }
 0x249   : > { %v2350_v32 = vsel %vm1079_vm1, %v2347_v27, %v2349_v24  ;;  %v2352_v20 = vsel %vm1079_vm1, %v2349_v24, %v2351_v28 }
 0x24a   : > { %2623 = vrot.lane.b32.xlu1 %v2418_v4, %s4559_s11  ;;  %2748 = vrot.lane.b32.xlu0 %v2417_v31, %s4564_s18  ;;  %v5813_v53 = vpack.c.bf16 %v2350_v32, %v2348_v29  ;;  %v5815_v62 = vpack.c.bf16 %v2354_v47, %v2352_v20  ;;  %v6428_v29 = vld [vmem:[#allocation13_spill] sm:$0xff] }
 0x24e   : > { %2844 = vrot.lane.b32.xlu1 %v2417_v31, %s4565_s21  ;;  %2874 = vrot.lane.b32.xlu0 %v2556_v43, %s4566_s22 }
 0x252   : > { %2621 = vrot.lane.b32.xlu1 %v2417_v31, %s4559_s11  ;;  %2876 = vrot.lane.b32.xlu0 %v2557_v15, %s4566_s22 }
 0x256   : > { %2667 = vrot.lane.b32.xlu0 %v2556_v43, %s4558_s8  ;;  %2779 = vrot.lane.b32.xlu1 %v2556_v43, %s4567_s27 }
 0x25a   : > { %2781 = vrot.lane.b32.xlu0 %v2557_v15, %s4567_s27  ;;  %2669 = vrot.lane.b32.xlu1 %v2557_v15, %s4558_s8 }
 0x25e   : > { %2715 = vrot.lane.b32.xlu0 %v5813_v53, %s4562_s16  ;;  %2812 = vrot.lane.b32.xlu1 %v5813_v53, %s4568_s9  ;;  %v4281_v12 = vpop.f32.mrb[28].mxu0 }
 0x25f   : > { %v2168_v14 = vadd.f32 %v4281_v12, %v5420_v17  ;;  %v2159_v27 = vpop.f32.mrb[29].mxu0 }
 0x260   : > { %v2160_v3 = vadd.f32 %v5420_v17, %v2159_v27  ;;  %v4282_v39 = vpop.f32.mrb[30].mxu0 }
 0x261   : > { %v2204_v19 = vmax.f32 %v2168_v14, 0.0  ;;  %v2171_v4 = vadd.f32 %v4282_v39, %v5420_v17  ;;  %v2162_v58 = vpop.f32.mrb[31].mxu0 }
 0x262   : > { %v2202_v45 = vmax.f32 %v2160_v3, 0.0  ;;  %v2163_v26 = vadd.f32 %v5420_v17, %v2162_v58  ;;  %2814 = vrot.lane.b32.xlu0 %v5815_v62, %s4568_s9  ;;  %2717 = vrot.lane.b32.xlu1 %v5815_v62, %s4562_s16 }
 0x263   : > { %v2268_v31 = vmul.f32 %v5262_v30, %v2204_v19  ;;  %v2205_v56 = vmax.f32 %v2171_v4, 0.0  ;;  %v2562_v28 = vrot.slane %v2204_v19, 7 }
 0x264   : > { %v2266_v24 = vmul.f32 %v6428_v29, %v2202_v45  ;;  %v2355_v60 = vrot.slane %v2202_v45, 7  ;;  %v2203_v25 = vmax.f32 %v2163_v26, 0.0 }
 0x265   : > { %v2510_v18 = vrot.slane %v2268_v31, 1  ;;  %v2237_v43 = vmul.f32 %v5298_v1, %v2205_v56  ;;  %v2569_v15 = vpack.c.bf16 %v2205_v56, %v2204_v19  ;;  %v2571_v47 = vrot.slane %v2205_v56, 1 }
 0x266   : > { %v2506_v17 = vrot.slane %v2266_v24, 1  ;;  %v2235_v32 = vmul.f32 %v5223_v7, %v2203_v25  ;;  %v2419_v20 = vpack.c.bf16 %v2203_v25, %v2202_v45  ;;  %v2508_v12 = vrot.slane %v2203_v25, 1 }
 0x267   : > { %v2564_v14 = vrot.slane %v2237_v43, 7  ;;  %v2575_v27 = vsel %vm1232_vm0, %v2571_v47, 0.0  ;;  %2850 = vrot.lane.b32.xlu0 %v2569_v15, %s4565_s21  ;;  %2754 = vrot.lane.b32.xlu1 %v2569_v15, %s4564_s18  ;;  %v2572_v30 = vsel %vm1232_vm0, %v2510_v18, %v2571_v47  ;;  %v2356_v3 = vsel %vm1079_vm1, %v2353_v22, %v2355_v60 }
 0x268   : > { %v2357_v39 = vrot.slane %v2235_v32, 7  ;;  %v2576_v1 = vpack.c.bf16 %v2575_v27, %v2572_v30  ;;  %v2507_v19 = vsel %vm1232_vm0, %v2504_v23, %v2506_v17  ;;  %v2509_v7 = vsel %vm1232_vm0, %v2506_v17, %v2508_v12  ;;  %v5860_v23 = vpop.permute.xlu0 %2647 }
 0x269   : > { %v2558_v4 = vpack.c.bf16 %v2507_v19, %v2505_v46  ;;  %v2511_v58 = vsel %vm1232_vm0, %v2508_v12, %v2510_v18  ;;  %v2565_v45 = vsel %vm1079_vm1, %v2562_v28, %v2564_v14  ;;  %v2578_v29 = vsel %vm1079_vm1, %v2564_v14, 0.0  ;;  %v5873_v18 = vld [vmem:[%s6375_s3] sm:$0x3] }
 0x26a   : > { %v2559_v26 = vpack.c.bf16 %v2511_v58, %v2509_v7  ;;  %v2358_v31 = vsel %vm1079_vm1, %v2355_v60, %v2357_v39  ;;  %v2563_v56 = vsel %vm1079_vm1, %v2357_v39, %v2562_v28  ;;  %v2579_v25 = vpack.c.bf16 %v6405_v61, %v2578_v29  ;;  %4468 = vmatprep.subr.msk.bf16.mxu1 %vm2009_vm13, %v5873_v18 }
 0x26b   : > { %2752 = vrot.lane.b32.xlu0 %v2419_v20, %s4564_s18  ;;  %2848 = vrot.lane.b32.xlu1 %v2419_v20, %s4565_s21  ;;  %v5856_v22 = vpack.c.bf16 %v2358_v31, %v2356_v3  ;;  %v2568_v36 = vpack.c.bf16 %v2565_v45, %v2563_v56 }
 0x26c   : > { %v2612_v46 = vpop.permute.xlu0 %2611 }
 0x26f   : > { %2882 = vrot.lane.b32.xlu0 %v2576_v1, %s4566_s22  ;;  %2625 = vrot.lane.b32.xlu1 %v2419_v20, %s4559_s11  ;;  %v2911_v20 = vsel %vm1718_vm11, %v5621_v42, %v2612_v46 }
 0x273   : > { %2787 = vrot.lane.b32.xlu1 %v2576_v1, %s4567_s27  ;;  %2878 = vrot.lane.b32.xlu0 %v2558_v4, %s4566_s22 }
 0x277   : > { %2880 = vrot.lane.b32.xlu0 %v2559_v26, %s4566_s22  ;;  %2783 = vrot.lane.b32.xlu1 %v2558_v4, %s4567_s27 }
 0x278   : > { %v2839_v28 = vpop.permute.xlu0 %2838  ;;  %v2743_v24 = vpop.permute.xlu1 %2742 }
 0x27b   : > { %2671 = vrot.lane.b32.xlu0 %v2558_v4, %s4558_s8  ;;  %2673 = vrot.lane.b32.xlu1 %v2559_v26, %s4558_s8 }
 0x27c   : > { %v2741_v60 = vpop.permute.xlu0 %2740  ;;  %v2616_v43 = vpop.permute.xlu1 %2615 }
 0x27f   : > { %2785 = vrot.lane.b32.xlu0 %v2559_v26, %s4567_s27  ;;  %2820 = vrot.lane.b32.xlu1 %v2579_v25, %s4568_s9 }
 0x280   : > { %v2660_v15 = vpop.permute.xlu0 %2659  ;;  %v2614_v61 = vpop.permute.xlu1 %2613 }
 0x281   : > { %v2950_v12 = vsel %vm1784_vm15, %v2911_v20, %v2660_v15  ;;  %v2914_v46 = vsel %vm1718_vm11, %v5678_v48, %v2614_v61 }
 0x283   : > { %2719 = vrot.lane.b32.xlu0 %v5856_v22, %s4562_s16  ;;  %2816 = vrot.lane.b32.xlu1 %v5856_v22, %s4568_s9 }
 0x284   : > { %v2774_v47 = vpop.permute.xlu0 %2773  ;;  %v2662_v17 = vpop.permute.xlu1 %2661 }
 0x287   : > { %2818 = vrot.lane.b32.xlu0 %v2568_v36, %s4568_s9  ;;  %2721 = vrot.lane.b32.xlu1 %v2568_v36, %s4562_s16 }
 0x288   : > { %v2708_v32 = vpop.permute.xlu0 %2707  ;;  %v2710_v27 = vpop.permute.xlu1 %2709 }
 0x289   : > { %v2982_v14 = vsel %vm1850_vm3, %v2950_v12, %v2708_v32  ;;  %v2917_v32 = vsel %vm1718_vm11, %v5676_v13, %v2616_v43 }
 0x28b   : > { %2695 = vrot.lane.b32.xlu0 %v5546_v6, %s4562_s16  ;;  %2697 = vrot.lane.b32.xlu1 %v5548_v52, %s4562_s16 }
 0x28c   : > { %v2807_v30 = vpop.permute.xlu0 %2806 }
 0x28f   : > { %2728 = vrot.lane.b32.xlu0 %v5520_v41, %s4564_s18  ;;  %2730 = vrot.lane.b32.xlu1 %v5513_v10, %s4564_s18  ;;  %v3014_v41 = vsel %vm1916_vm5, %v2982_v14, %v2741_v60 }
 0x293   : > { %2761 = vrot.lane.b32.xlu0 %v5540_v16, %s4567_s27  ;;  %2763 = vrot.lane.b32.xlu1 %v5579_v38, %s4567_s27  ;;  %v3047_v16 = vsel %vm3029_vm2, %v3014_v41, %v2774_v47 }
 0x294   : > { %v3080_v7 = vsel %vm3062_vm4, %v3047_v16, %v2807_v30 }
 0x295   : > { %v3113_v45 = vsel %vm3095_vm7, %v3080_v7, %v2839_v28  ;;  %v2952_v28 = vsel %vm1784_vm15, %v2914_v46, %v2662_v17 }
 0x296   : > { %v2984_v29 = vsel %vm1850_vm3, %v2952_v28, %v2710_v27 }
 0x297   : > { %2794 = vrot.lane.b32.xlu0 %v5548_v52, %s4568_s9  ;;  %2796 = vrot.lane.b32.xlu1 %v5586_v63, %s4568_s9  ;;  %v3016_v25 = vsel %vm1916_vm5, %v2984_v29, %v2743_v24  ;;  %v3539_v24 = vsel %vm2009_vm13, %v5873_v18, 0 }
 0x298   : > { %v5906_v3 = vpop.permute.xlu0 %2842  ;;  %v5908_v39 = vpop.permute.xlu1 %2746 }
 0x29b   : > { %2826 = vrot.lane.b32.xlu0 %v5513_v10, %s4565_s21  ;;  %2828 = vrot.lane.b32.xlu1 %v5570_v40, %s4565_s21 }
 0x29c   : > { %v2745_v1 = vpop.permute.xlu0 %2744  ;;  %v5915_v19 = vpop.permute.xlu1 %2619 }
 0x29f   : > { %2858 = vrot.lane.b32.xlu0 %v5579_v38, %s4566_s22  ;;  %2603 = vrot.lane.b32.xlu1 %v5513_v10, %s4559_s11 }
 0x2a0   : > { %v2871_v4 = vpop.permute.xlu0 %2870  ;;  %v2841_v58 = vpop.permute.xlu1 %2840 }
 0x2a1   : > { %v3146_v26 = vsel %vm3128_vm9, %v3113_v45, %v2871_v4 }
 0x2a2   : > { %4309 = vmatprep.mubr.msk.bf16.mxu1 %vm3204_vm12, %v3146_v26 }
 0x2a3   : > { %2860 = vrot.lane.b32.xlu0 %v5581_v54, %s4566_s22  ;;  %2605 = vrot.lane.b32.xlu1 %v5570_v40, %s4559_s11 }
 0x2a4   : > { %v2873_v31 = vpop.permute.xlu0 %2872  ;;  %v2618_v56 = vpop.permute.xlu1 %2617 }
 0x2a7   : > { %2651 = vrot.lane.b32.xlu0 %v5579_v38, %s4558_s8  ;;  %2653 = vrot.lane.b32.xlu1 %v5581_v54, %s4558_s8 }
 0x2a8   : > { %v2664_v10 = vpop.permute.xlu0 %2663  ;;  %v2776_v36 = vpop.permute.xlu1 %2775 }
 0x2a9   : > { %v3049_v15 = vsel %vm3029_vm2, %v3016_v25, %v2776_v36  ;;  %v2954_v12 = vsel %vm1784_vm15, %v2917_v32, %v2664_v10  ;;  %v2920_v10 = vsel %vm1718_vm11, %v5755_v33, %v2618_v56 }
 0x2ab   : > { %2699 = vrot.lane.b32.xlu0 %v5586_v63, %s4562_s16  ;;  %2701 = vrot.lane.b32.xlu1 %v5588_v21, %s4562_s16 }
 0x2ac   : > { %v2778_v60 = vpop.permute.xlu0 %2777  ;;  %v2666_v38 = vpop.permute.xlu1 %2665 }
 0x2ad   : > { %v2956_v36 = vsel %vm1784_vm15, %v2920_v10, %v2666_v38 }
 0x2af   : > { %2732 = vrot.lane.b32.xlu0 %v5570_v40, %s4564_s18  ;;  %2734 = vrot.lane.b32.xlu1 %v5567_v44, %s4564_s18 }
 0x2b0   : > { %v2712_v61 = vpop.permute.xlu0 %2711  ;;  %v2809_v47 = vpop.permute.xlu1 %2808 }
 0x2b1   : > { %v3082_v17 = vsel %vm3062_vm4, %v3049_v15, %v2809_v47  ;;  %v2986_v14 = vsel %vm1850_vm3, %v2954_v12, %v2712_v61  ;;  %v2923_v61 = vsel %vm1718_vm11, %v5757_v50, %v5915_v19 }
 0x2b2   : > { %v3115_v20 = vsel %vm3095_vm7, %v3082_v17, %v2841_v58  ;;  %v3018_v43 = vsel %vm1916_vm5, %v2986_v14, %v2745_v1 }
 0x2b3   : > { %2765 = vrot.lane.b32.xlu0 %v5581_v54, %s4567_s27  ;;  %2767 = vrot.lane.b32.xlu1 %v5615_v8, %s4567_s27  ;;  %v3148_v40 = vsel %vm3128_vm9, %v3115_v20, %v2873_v31  ;;  %v3051_v30 = vsel %vm3029_vm2, %v3018_v43, %v2778_v60 }
 0x2b4   : > { %v2811_v27 = vpop.permute.xlu0 %2810  ;;  %4310 = vmatmul.mubr.msk.bf16.vlgmr.msra.gmra.mrb[0].mxu1 %vm3204_vm12, %v3148_v40  ;;  %v2714_v13 = vpop.permute.xlu1 %2713 }
 0x2b5   : > { %4326 = vmatpush3.bf16.msra.mxu1 %v3539_v24  ;;  %v3084_v1 = vsel %vm3062_vm4, %v3051_v30, %v2811_v27  ;;  %v2988_v46 = vsel %vm1850_vm3, %v2956_v36, %v2714_v13 }
 0x2b6   : > { %v3117_v4 = vsel %vm3095_vm7, %v3084_v1, %v5906_v3  ;;  %v3020_v29 = vsel %vm1916_vm5, %v2988_v46, %v5908_v39 }
 0x2b7   : > { %2798 = vrot.lane.b32.xlu0 %v5588_v21, %s4568_s9  ;;  %2800 = vrot.lane.b32.xlu1 %v5623_v57, %s4568_s9 }
 0x2b8   : > { %v5966_v54 = vpop.permute.xlu0 %2846  ;;  %v5968_v18 = vpop.permute.xlu1 %2750 }
 0x2bb   : > { %2830 = vrot.lane.b32.xlu0 %v5567_v44, %s4565_s21  ;;  %2832 = vrot.lane.b32.xlu1 %v5605_v55, %s4565_s21 }
 0x2bc   : > { %v2749_v41 = vpop.permute.xlu0 %2748  ;;  %v5975_v16 = vpop.permute.xlu1 %2623 }
 0x2bf   : > { %2862 = vrot.lane.b32.xlu0 %v5615_v8, %s4566_s22  ;;  %2607 = vrot.lane.b32.xlu1 %v5567_v44, %s4559_s11 }
 0x2c0   : > { %v2875_v7 = vpop.permute.xlu0 %2874  ;;  %v2845_v58 = vpop.permute.xlu1 %2844 }
 0x2c1   : > { %v3150_v45 = vsel %vm3128_vm9, %v3117_v4, %v2875_v7 }
 0x2c2   : > { %4313 = vmatprep.mubr.msk.bf16.mxu1 %vm3204_vm12, %v3150_v45 }
 0x2c3   : > { %2864 = vrot.lane.b32.xlu0 %v5617_v9, %s4566_s22  ;;  %2609 = vrot.lane.b32.xlu1 %v5605_v55, %s4559_s11 }
 0x2c4   : > { %v2877_v26 = vpop.permute.xlu0 %2876  ;;  %v2622_v31 = vpop.permute.xlu1 %2621 }
 0x2c7   : > { %2655 = vrot.lane.b32.xlu0 %v5615_v8, %s4558_s8  ;;  %2657 = vrot.lane.b32.xlu1 %v5617_v9, %s4558_s8 }
 0x2c8   : > { %v2668_v44 = vpop.permute.xlu0 %2667  ;;  %v2780_v3 = vpop.permute.xlu1 %2779 }
 0x2c9   : > { %v3053_v33 = vsel %vm3029_vm2, %v3020_v29, %v2780_v3 }
 0x2cb   : > { %2703 = vrot.lane.b32.xlu0 %v5623_v57, %s4562_s16  ;;  %2705 = vrot.lane.b32.xlu1 %v5621_v42, %s4562_s16 }
 0x2cc   : > { %v2782_v28 = vpop.permute.xlu0 %2781  ;;  %v2670_v8 = vpop.permute.xlu1 %2669 }
 0x2cf   : > { %2736 = vrot.lane.b32.xlu0 %v5605_v55, %s4564_s18  ;;  %2738 = vrot.lane.b32.xlu1 %v5601_v37, %s4564_s18  ;;  %s4187_s18 = sshll.u32 %s6430_s25, 6 }
 0x2d0   : > { %v2716_v56 = vpop.permute.xlu0 %2715  ;;  %v2813_v60 = vpop.permute.xlu1 %2812 }
 0x2d1   : > { %v3086_v38 = vsel %vm3062_vm4, %v3053_v33, %v2813_v60 }
 0x2d2   : > { %v3119_v25 = vsel %vm3095_vm7, %v3086_v38, %v2845_v58 }
 0x2d3   : > { %2769 = vrot.lane.b32.xlu0 %v5617_v9, %s4567_s27  ;;  %2771 = vrot.lane.b32.xlu1 %v5664_v0, %s4567_s27  ;;  %v3152_v39 = vsel %vm3128_vm9, %v3119_v25, %v2877_v26  ;;  %v2958_v9 = vsel %vm1784_vm15, %v2923_v61, %v2668_v44  ;;  %s6250_s27 = scalar_lea.vmem %s6379_s7, %s4187_s18 }
 0x2d4   : > { %v2815_v55 = vpop.permute.xlu0 %2814  ;;  %4314 = vmatmul.mubr.msk.bf16.gmra.mrb[4].mxu1 %vm3204_vm12, %v3152_v39  ;;  %v2718_v15 = vpop.permute.xlu1 %2717  ;;  %v2990_v47 = vsel %vm1850_vm3, %v2958_v9, %v2716_v56 }
 0x2d5   : > { %v3022_v50 = vsel %vm1916_vm5, %v2990_v47, %v2749_v41 }
 0x2d7   : > { %2802 = vrot.lane.b32.xlu0 %v5621_v42, %s4568_s9  ;;  %2804 = vrot.lane.b32.xlu1 %v5678_v48, %s4568_s9  ;;  %v3055_v42 = vsel %vm3029_vm2, %v3022_v50, %v2782_v28 }
 0x2d8   : > { %v3088_v12 = vsel %vm3062_vm4, %v3055_v42, %v2815_v55 }
 0x2d9   : > { %v2851_v17 = vpop.permute.xlu0 %2850  ;;  %v2755_v32 = vpop.permute.xlu1 %2754 }
 0x2db   : > { %2834 = vrot.lane.b32.xlu0 %v5601_v37, %s4565_s21  ;;  %2836 = vrot.lane.b32.xlu1 %v5650_v59, %s4565_s21  ;;  %v3121_v59 = vsel %vm3095_vm7, %v3088_v12, %v5966_v54  ;;  %v2929_v54 = vsel %vm1718_vm11, %v5815_v62, %v5975_v16  ;;  %v2893_v12 = vsel %vm1718_vm11, %v5477_v51, %v5640_v2 }
 0x2dd   : > { %v2753_v19 = vpop.permute.xlu0 %2752  ;;  %v2849_v20 = vpop.permute.xlu1 %2848 }
 0x2df   : > { %2866 = vrot.lane.b32.xlu0 %v5664_v0, %s4566_s22  ;;  %2868 = vrot.lane.b32.xlu1 %v5666_v11, %s4566_s22  ;;  %v2926_v11 = vsel %vm1718_vm11, %v5813_v53, %v2622_v31 }
 0x2e0   : > { %v2960_v30 = vsel %vm1784_vm15, %v2926_v11, %v2670_v8 }
 0x2e1   : > { %v2883_v48 = vpop.permute.xlu0 %2882  ;;  %v2626_v24 = vpop.permute.xlu1 %2625  ;;  %v2992_v41 = vsel %vm1850_vm3, %v2960_v30, %v2718_v15  ;;  %v4531_v15 = vld [vmem:[%s4631_s30] sm:$0xff]  }
 0x2e2   : > { %v3024_v4 = vsel %vm1916_vm5, %v2992_v41, %v5968_v18  ;;  %v2932_v62 = vsel %vm1718_vm11, %v5856_v22, %v2626_v24 }
 0x2e5   : > { %v2879_v37 = vpop.permute.xlu0 %2878  ;;  %v2788_v40 = vpop.permute.xlu1 %2787 }
 0x2e6   : > { %v3154_v14 = vsel %vm3128_vm9, %v3121_v59, %v2879_v37  ;;  %v2938_v37 = vsel %vm1784_vm15, %v2893_v12, %v5860_v23 }
 0x2e7   : > { %4317 = vmatprep.mubr.msk.bf16.mxu1 %vm3204_vm12, %v3154_v14  ;;  %v4534_v14 = vld [vmem:[%s4631_s30 + $0x18] sm:$0xff]  }
 0x2e9   : > { %v2881_v27 = vpop.permute.xlu0 %2880  ;;  %v2784_v13 = vpop.permute.xlu1 %2783 }
 0x2ea   : > { %v3057_v58 = vsel %vm3029_vm2, %v3024_v4, %v2784_v13 }
 0x2ed   : > { %v2672_v43 = vpop.permute.xlu0 %2671  ;;  %v2674_v0 = vpop.permute.xlu1 %2673 }
 0x2ee   : > { %v2962_v45 = vsel %vm1784_vm15, %v2929_v54, %v2672_v43  ;;  %v2964_v36 = vsel %vm1784_vm15, %v2932_v62, %v2674_v0  ;;  %v4535_v43 = vld [vmem:[%s4631_s30 + $0x20] sm:$0xff]   ;;  %v2896_v0 = vsel %vm1718_vm11, %v5546_v6, %v5705_v35 }
 0x2ef   : > { %v2940_v51 = vsel %vm1784_vm15, %v2896_v0, %v5727_v49 }
 0x2f1   : > { %v2786_v1 = vpop.permute.xlu0 %2785  ;;  %v2821_v7 = vpop.permute.xlu1 %2820 }
 0x2f5   : > { %v2720_v26 = vpop.permute.xlu0 %2719  ;;  %v2817_v44 = vpop.permute.xlu1 %2816 }
 0x2f6   : > { %v2994_v53 = vsel %vm1850_vm3, %v2962_v45, %v2720_v26  ;;  %v3090_v31 = vsel %vm3062_vm4, %v3057_v58, %v2817_v44  ;;  %v4536_v58 = vld [vmem:[%s4631_s30 + $0x28] sm:$0xff]   ;;  %v4537_v44 = vld [vmem:[%s4631_s30 + $0x30] sm:$0xff]  }
 0x2f7   : > { %v3026_v3 = vsel %vm1916_vm5, %v2994_v53, %v2753_v19  ;;  %v3123_v10 = vsel %vm3095_vm7, %v3090_v31, %v2849_v20 }
 0x2f8   : > { %v3059_v16 = vsel %vm3029_vm2, %v3026_v3, %v2786_v1  ;;  %v3156_v18 = vsel %vm3128_vm9, %v3123_v10, %v2881_v27  ;;  %v4538_v10 = vld [vmem:[%s4631_s30 + $0x38] sm:$0xff]  }
 0x2f9   : > { %v2819_v46 = vpop.permute.xlu0 %2818  ;;  %4318 = vmatmul.mubr.msk.bf16.gmra.mrb[8].mxu1 %vm3204_vm12, %v3156_v18  ;;  %v2722_v28 = vpop.permute.xlu1 %2721 }
 0x2fa   : > { %v3092_v8 = vsel %vm3062_vm4, %v3059_v16, %v2819_v46  ;;  %v2996_v29 = vsel %vm1850_vm3, %v2964_v36, %v2722_v28  ;;  %v4539_v16 = vld [vmem:[%s4631_s30 + $0x40] sm:$0xff]   ;;  %v4540_v28 = vld [vmem:[%s4631_s30 + $0x48] sm:$0xff]  }
 0x2fb   : > { %v3125_v33 = vsel %vm3095_vm7, %v3092_v8, %v2851_v17  ;;  %v3028_v56 = vsel %vm1916_vm5, %v2996_v29, %v2755_v32  ;;  %v4541_v29 = vld [vmem:[%s4631_s30 + $0x50] sm:$0xff]  }
 0x2fc   : > { %v3061_v22 = vsel %vm3029_vm2, %v3028_v56, %v2788_v40  ;;  %v3158_v60 = vsel %vm3128_vm9, %v3125_v33, %v2883_v48 }
 0x2fd   : > { %v2696_v38 = vpop.permute.xlu0 %2695  ;;  %4321 = vmatprep.mubr.msk.bf16.mxu1 %vm3204_vm12, %v3158_v60  ;;  %v2698_v25 = vpop.permute.xlu1 %2697  ;;  %v3094_v39 = vsel %vm3062_vm4, %v3061_v22, %v2821_v7 }
 0x2fe   : > { %v3127_v55 = vsel %vm3095_vm7, %v3094_v39, %v5625_v34  ;;  %v4532_v34 = vld [vmem:[%s4631_s30 + $0x8] sm:$0xff]   ;;  %v2970_v59 = vsel %vm1850_vm3, %v2938_v37, %v2696_v38  ;;  %v2972_v23 = vsel %vm1850_vm3, %v2940_v51, %v2698_v25  ;;  %v4542_v39 = vld [vmem:[%s4631_s30 + $0x58] sm:$0xff]  }
 0x2ff   : > { %v3160_v61 = vsel %vm3128_vm9, %v3127_v55, %v5627_v5  ;;  %v4533_v5 = vld [vmem:[%s4631_s30 + $0x10] sm:$0xff]  }
 0x300   : > { %v6075_v9 = vpop.f32.mrb[32].mxu0 }
 0x301   : > { %v2729_v47 = vpop.permute.xlu0 %2728  ;;  %v6077_v17 = vpop.f32.mrb[33].mxu0  ;;  %4322 = vmatmul.mubr.msk.bf16.gmra.mrb[12].mxu1 %vm3204_vm12, %v3160_v61  ;;  %v4543_v61 = vld [vmem:[%s4631_s30 + $0x60] sm:$0xff]  }
 0x302   : > { %v2731_v32 = vpop.permute.xlu1 %2730  ;;  %v6080_v50 = vpop.f32.mrb[34].mxu0  ;;  %4327 = vmatprep.mubr.msk.bf16.mxu1 %vm1669_vm10, %v4531_v15  ;;  %v3002_v27 = vsel %vm1916_vm5, %v2970_v59, %v2729_v47 }
 0x303   : > { %v6083_v19 = vpop.f32.mrb[35].mxu0  ;;  %v3004_v1 = vsel %vm1916_vm5, %v2972_v23, %v2731_v32 }
 0x305   : > { %v2762_v20 = vpop.permute.xlu0 %2761 }
 0x306   : > { %v2764_v42 = vpop.permute.xlu1 %2763  ;;  %v3035_v11 = vsel %vm3029_vm2, %v3002_v27, %v2762_v20 }
 0x307   : > { %v3037_v49 = vsel %vm3029_vm2, %v3004_v1, %v2764_v42 }
 0x309   : > { %v2795_v48 = vpop.permute.xlu0 %2794  ;;  %4328 = vmatmul.mubr.msk.bf16.vlgmr.msra.gmra.mrb[16].mxu1 %vm1669_vm10, %v4532_v34 }
 0x30a   : > { %v2797_v24 = vpop.permute.xlu1 %2796  ;;  %4331 = vmatprep.mubr.msk.bf16.mxu1 %vm1669_vm10, %v4533_v5  ;;  %v3068_v2 = vsel %vm3062_vm4, %v3035_v11, %v2795_v48 }
 0x30b   : > { %v3070_v7 = vsel %vm3062_vm4, %v3037_v49, %v2797_v24 }
 0x30d   : > { %v2827_v40 = vpop.permute.xlu0 %2826 }
 0x30e   : > { %v2829_v13 = vpop.permute.xlu1 %2828  ;;  %v3101_v30 = vsel %vm3095_vm7, %v3068_v2, %v2827_v40  ;;  %v4546_v2 = vld [vmem:[%s4631_s30 + $0x78] sm:$0xff]  }
 0x30f   : > { %v3103_v54 = vsel %vm3095_vm7, %v3070_v7, %v2829_v13 }
 0x311   : > { %v2859_v41 = vpop.permute.xlu0 %2858  ;;  %4332 = vmatmul.mubr.msk.bf16.gmra.mrb[20].mxu1 %vm1669_vm10, %v4534_v14  ;;  %v4544_v14 = vld [vmem:[%s4631_s30 + $0x68] sm:$0xff]  }
 0x312   : > { %v3134_v6 = vsel %vm3128_vm9, %v3101_v30, %v2859_v41  ;;  %v2604_v35 = vpop.permute.xlu1 %2603  ;;  %4335 = vmatprep.mubr.msk.bf16.mxu1 %vm1669_vm10, %v4535_v43  ;;  %v4545_v43 = vld [vmem:[%s4631_s30 + $0x70] sm:$0xff]  }
 0x313   : > { %4297 = vmatprep.mubr.msk.bf16.mxu0 %vm3204_vm12, %v3134_v6  ;;  %v2899_v22 = vsel %vm1718_vm11, %v5548_v52, %v2604_v35 }
 0x315   : > { %v2861_v4 = vpop.permute.xlu0 %2860 }
 0x316   : > { %v3136_v45 = vsel %vm3128_vm9, %v3103_v54, %v2861_v4  ;;  %v2606_v26 = vpop.permute.xlu1 %2605 }
 0x317   : > { %4298 = vmatmul.mubr.msk.bf16.gmra.mrb[36].mxu0 %vm3204_vm12, %v3136_v45  ;;  %v2902_v47 = vsel %vm1718_vm11, %v5586_v63, %v2606_v26 }
 0x319   : > { %v2652_v53 = vpop.permute.xlu0 %2651  ;;  %4336 = vmatmul.mubr.msk.bf16.gmra.mrb[24].mxu1 %vm1669_vm10, %v4536_v58 }
 0x31a   : > { %v2654_v31 = vpop.permute.xlu1 %2653  ;;  %4339 = vmatprep.mubr.msk.bf16.mxu1 %vm1669_vm10, %v4537_v44  ;;  %v2942_v60 = vsel %vm1784_vm15, %v2899_v22, %v2652_v53  ;;  %v6191_v22 = vld [vmem:[%s6378_s6] ss:$0 sm:$0xff] }
 0x31b   : > { %v2944_v34 = vsel %vm1784_vm15, %v2902_v47, %v2654_v31 }
 0x31d   : > { %v2700_v3 = vpop.permute.xlu0 %2699 }
 0x31e   : > { %v2702_v62 = vpop.permute.xlu1 %2701  ;;  %v2974_v38 = vsel %vm1850_vm3, %v2942_v60, %v2700_v3 }
 0x31f   : > { %v2976_v20 = vsel %vm1850_vm3, %v2944_v34, %v2702_v62 }
 0x321   : > { %v2733_v18 = vpop.permute.xlu0 %2732  ;;  %4340 = vmatmul.mubr.msk.bf16.gmra.mrb[28].mxu1 %vm1669_vm10, %v4538_v10 }
 0x322   : > { %v2735_v36 = vpop.permute.xlu1 %2734  ;;  %4343 = vmatprep.mubr.msk.bf16.mxu1 %vm1669_vm10, %v4539_v16  ;;  %v3006_v55 = vsel %vm1916_vm5, %v2974_v38, %v2733_v18 }
 0x323   : > { %v3008_v48 = vsel %vm1916_vm5, %v2976_v20, %v2735_v36 }
 0x325   : > { %v2766_v46 = vpop.permute.xlu0 %2765 }
 0x326   : > { %v2768_v8 = vpop.permute.xlu1 %2767  ;;  %v3039_v32 = vsel %vm3029_vm2, %v3006_v55, %v2766_v46 }
 0x327   : > { %v3041_v12 = vsel %vm3029_vm2, %v3008_v48, %v2768_v8 }
 0x329   : > { %v2799_v33 = vpop.permute.xlu0 %2798  ;;  %4344 = vmatmul.mubr.msk.bf16.gmra.mrb[0].mxu1 %vm1669_vm10, %v4540_v28 }
 0x32a   : > { %v2801_v56 = vpop.permute.xlu1 %2800  ;;  %4347 = vmatprep.mubr.msk.bf16.mxu1 %vm1669_vm10, %v4541_v29  ;;  %v3072_v52 = vsel %vm3062_vm4, %v3039_v32, %v2799_v33  ;;  %v6182_v29 = vld [vmem:[%s6377_s5] ss:$0 sm:$0xff] }
 0x32b   : > { %v3074_v37 = vsel %vm3062_vm4, %v3041_v12, %v2801_v56  ;;  %v3287_v33 = vadd.f32 %v6080_v50, %v6182_v29  ;;  %v3279_v56 = vadd.f32 %v6182_v29, %v6083_v19  ;;  %v3284_v60 = vadd.f32 %v6075_v9, %v6182_v29 }
 0x32c   : > { %v3276_v38 = vadd.f32 %v6182_v29, %v6077_v17 }
 0x32d   : > { %v2831_v25 = vpop.permute.xlu0 %2830  ;;  %v4379_v19 = vadd.f32 %v6191_v22, %v3279_v56 }
 0x32e   : > { %v2833_v15 = vpop.permute.xlu1 %2832  ;;  %v3105_v42 = vsel %vm3095_vm7, %v3072_v52, %v2831_v25 }
 0x32f   : > { %v3107_v59 = vsel %vm3095_vm7, %v3074_v37, %v2833_v15  ;;  %v4376_v15 = vadd.f32 %v6191_v22, %v3287_v33 }
 0x331   : > { %v2863_v5 = vpop.permute.xlu0 %2862  ;;  %4348 = vmatmul.mubr.msk.bf16.gmra.mrb[4].mxu1 %vm1669_vm10, %v4542_v39 }
 0x332   : > { %v3138_v24 = vsel %vm3128_vm9, %v3105_v42, %v2863_v5  ;;  %v2608_v63 = vpop.permute.xlu1 %2607  ;;  %4351 = vmatprep.mubr.msk.bf16.mxu1 %vm1669_vm10, %v4543_v61 }
 0x333   : > { %4301 = vmatprep.mubr.msk.bf16.mxu0 %vm3204_vm12, %v3138_v24  ;;  %v2905_v7 = vsel %vm1718_vm11, %v5588_v21, %v2608_v63 }
 0x335   : > { %v2865_v40 = vpop.permute.xlu0 %2864 }
 0x336   : > { %v3140_v27 = vsel %vm3128_vm9, %v3107_v59, %v2865_v40  ;;  %v2610_v13 = vpop.permute.xlu1 %2609 }
 0x337   : > { %4302 = vmatmul.mubr.msk.bf16.gmra.mrb[40].mxu0 %vm3204_vm12, %v3140_v27  ;;  %v2908_v54 = vsel %vm1718_vm11, %v5623_v57, %v2610_v13 }
 0x339   : > { %v2656_v0 = vpop.permute.xlu0 %2655  ;;  %4352 = vmatmul.mubr.msk.bf16.gmra.mrb[8].mxu1 %vm1669_vm10, %v4544_v14 }
 0x33a   : > { %v2658_v11 = vpop.permute.xlu1 %2657  ;;  %4355 = vmatprep.mubr.msk.bf16.mxu1 %vm1669_vm10, %v4545_v43  ;;  %v2946_v4 = vsel %vm1784_vm15, %v2905_v7, %v2656_v0 }
 0x33b   : > { %v2948_v58 = vsel %vm1784_vm15, %v2908_v54, %v2658_v11 }
 0x33d   : > { %v2704_v51 = vpop.permute.xlu0 %2703 }
 0x33e   : > { %v2706_v23 = vpop.permute.xlu1 %2705  ;;  %v2978_v45 = vsel %vm1850_vm3, %v2946_v4, %v2704_v51 }
 0x33f   : > { %v2980_v44 = vsel %vm1850_vm3, %v2948_v58, %v2706_v23 }
 0x341   : > { %v2737_v30 = vpop.permute.xlu0 %2736  ;;  %4356 = vmatmul.mubr.msk.bf16.gmra.mrb[12].mxu1 %vm1669_vm10, %v4546_v2 }
 0x342   : > { %v2739_v41 = vpop.permute.xlu1 %2738  ;;  %v3010_v53 = vsel %vm1916_vm5, %v2978_v45, %v2737_v30 }
 0x343   : > { %v3012_v3 = vsel %vm1916_vm5, %v2980_v44, %v2739_v41 }
 0x345   : > { %v2770_v1 = vpop.permute.xlu0 %2769 }
 0x346   : > { %v2772_v6 = vpop.permute.xlu1 %2771  ;;  %v3043_v10 = vsel %vm3029_vm2, %v3010_v53, %v2770_v1 }
 0x347   : > { %v3045_v21 = vsel %vm3029_vm2, %v3012_v3, %v2772_v6 }
 0x349   : > { %v2803_v35 = vpop.permute.xlu0 %2802 }
 0x34a   : > { %v2805_v49 = vpop.permute.xlu1 %2804  ;;  %v3076_v57 = vsel %vm3062_vm4, %v3043_v10, %v2803_v35 }
 0x34b   : > { %v3078_v62 = vsel %vm3062_vm4, %v3045_v21, %v2805_v49 }
 0x34d   : > { %v2835_v26 = vpop.permute.xlu0 %2834 }
 0x34e   : > { %v2837_v31 = vpop.permute.xlu1 %2836  ;;  %v3109_v16 = vsel %vm3095_vm7, %v3076_v57, %v2835_v26 }
 0x34f   : > { %v3111_v36 = vsel %vm3095_vm7, %v3078_v62, %v2837_v31 }
 0x351   : > { %v2867_v18 = vpop.permute.xlu0 %2866 }
 0x352   : > { %v3142_v46 = vsel %vm3128_vm9, %v3109_v16, %v2867_v18  ;;  %v2869_v28 = vpop.permute.xlu1 %2868 }
 0x353   : > { %v3144_v8 = vsel %vm3128_vm9, %v3111_v36, %v2869_v28  ;;  %4305 = vmatprep.mubr.msk.bf16.mxu0 %vm3204_vm12, %v3142_v46 }
 0x354   : > { %4306 = vmatmul.mubr.msk.bf16.gmra.mrb[44].mxu0 %vm3204_vm12, %v3144_v8 }
 0x3dc   : > { %v4329_v25 = vpop.f32.mrb[16].mxu1 }
 0x3dd   : > { %v4370_v39 = vadd.f32 %v4329_v25, %v3284_v60  ;;  %v3575_v55 = vpop.f32.mrb[17].mxu1 }
 0x3de   : > { %v4373_v50 = vadd.f32 %v3575_v55, %v3276_v38  ;;  %v4330_v61 = vpop.f32.mrb[18].mxu1 }
 0x3df   : > { %v4371_v47 = vadd.f32 %v4370_v39, %v6191_v22  ;;  %v4377_v32 = vadd.f32 %v4376_v15, %v4330_v61  ;;  %v3578_v34 = vpop.f32.mrb[19].mxu1  ;;  %v6245_v15 = vadd.f32 %v6191_v22, %v6182_v29 }
 0x3e0   : > { %v4374_v52 = vadd.f32 %v4373_v50, %v6191_v22  ;;  %v4380_v20 = vadd.f32 %v4379_v19, %v3578_v34 }
 0x3e1   : > { %v3769_v9 = vrot.slane %v4371_v47, 1  ;;  %v3771_v42 = vrot.slane %v4377_v32, 1 }
 0x3e2   : > { %v3766_v5 = vrot.slane %v4374_v52, 1  ;;  %v3767_v17 = vrot.slane %v4380_v20, 1 }
 0x3e3   : > { %v3772_v48 = vsel %vm1232_vm0, %v3769_v9, %v3771_v42 }
 0x3e4   : > { %v3768_v24 = vsel %vm1232_vm0, %v3766_v5, %v3767_v17  ;;  %v3770_v63 = vsel %vm1232_vm0, %v3767_v17, %v3769_v9  ;;  %v4333_v12 = vpop.f32.mrb[20].mxu1 }
 0x3e5   : > { %v3862_v37 = vadd.f32 %v4374_v52, %v3768_v24  ;;  %v3863_v59 = vadd.f32 %v4380_v20, %v3770_v63  ;;  %v3591_v40 = vpop.f32.mrb[21].mxu1 }
 0x3e6   : > { %v4334_v14 = vpop.f32.mrb[22].mxu1 }
 0x3e7   : > { %v3894_v27 = vadd.f32 %v4371_v47, %v3862_v37  ;;  %v3895_v13 = vadd.f32 %v4377_v32, %v3863_v59  ;;  %v3594_v43 = vpop.f32.mrb[23].mxu1 }
 0x3e9   : > { %v3926_v0 = vadd.f32 %v3894_v27, %v3772_v48 }
 0x3ea   : > { %v4299_v11 = vpop.f32.mrb[36].mxu0 }
 0x3eb   : > { %v3300_v51 = vadd.f32 %v4299_v11, %v6182_v29  ;;  %v3291_v2 = vpop.f32.mrb[37].mxu0  ;;  %3958 = vst.msk [vmem:[#allocation2] sm:$0xff] %vm1718_vm11, %v3926_v0 }
 0x3ec   : > { %v3292_v23 = vadd.f32 %v6182_v29, %v3291_v2  ;;  %v4300_v30 = vpop.f32.mrb[38].mxu0  ;;  %v6207_v41 = vpop.f32.mrb[24].mxu1 }
 0x3ed   : > { %v3303_v1 = vadd.f32 %v4300_v30, %v6182_v29  ;;  %v3294_v6 = vpop.f32.mrb[39].mxu0  ;;  %v4382_v35 = vadd.f32 %v6191_v22, %v3300_v51  ;;  %v6211_v49 = vpop.f32.mrb[25].mxu1 }
 0x3ee   : > { %v3295_v7 = vadd.f32 %v6182_v29, %v3294_v6  ;;  %v4385_v54 = vadd.f32 %v6191_v22, %v3292_v23  ;;  %v6215_v4 = vpop.f32.mrb[26].mxu1 }
 0x3ef   : > { %v4383_v58 = vadd.f32 %v4382_v35, %v4333_v12  ;;  %v4388_v45 = vadd.f32 %v6191_v22, %v3303_v1  ;;  %v6218_v26 = vpop.f32.mrb[27].mxu1 }
 0x3f0   : > { %v4386_v44 = vadd.f32 %v4385_v54, %v3591_v40  ;;  %v4391_v53 = vadd.f32 %v6191_v22, %v3295_v7 }
 0x3f1   : > { %v6221_v31 = vadd.f32 %v4388_v45, %v4334_v14  ;;  %v3777_v21 = vrot.slane %v4383_v58, 1 }
 0x3f2   : > { %v3773_v3 = vrot.slane %v4386_v44, 1  ;;  %v4392_v10 = vadd.f32 %v4391_v53, %v3594_v43 }
 0x3f3   : > { %v3779_v57 = vrot.slane %v6221_v31, 1 }
 0x3f4   : > { %v3774_v62 = vsel %vm1232_vm0, %v3771_v42, %v3773_v3  ;;  %v3775_v16 = vrot.slane %v4392_v10, 1  ;;  %v6225_v18 = vpop.f32.mrb[28].mxu1 }
 0x3f5   : > { %v3780_v36 = vsel %vm1232_vm0, %v3777_v21, %v3779_v57  ;;  %v3927_v46 = vadd.f32 %v3895_v13, %v3774_v62  ;;  %v6230_v28 = vpop.f32.mrb[29].mxu1 }
 0x3f6   : > { %v3776_v8 = vsel %vm1232_vm0, %v3773_v3, %v3775_v16  ;;  %v3778_v33 = vsel %vm1232_vm0, %v3775_v16, %v3777_v21  ;;  %v6234_v56 = vpop.f32.mrb[30].mxu1 }
 0x3f7   : > { %v3866_v60 = vadd.f32 %v4386_v44, %v3776_v8  ;;  %v3867_v38 = vadd.f32 %v4392_v10, %v3778_v33  ;;  %3959 = vst.msk [vmem:[#allocation2 + $0x8] sm:$0xff] %vm1718_vm11, %v3927_v46  ;;  %v6237_v25 = vpop.f32.mrb[31].mxu1 }
 0x3f9   : > { %v3898_v39 = vadd.f32 %v4383_v58, %v3866_v60  ;;  %v6241_v55 = vadd.f32 %v6221_v31, %v3867_v38 }
 0x3fb   : > { %v3930_v50 = vadd.f32 %v3898_v39, %v3780_v36 }
 0x3fc   : > { %v4345_v61 = vpop.f32.mrb[0].mxu1 }
 0x3fd   : > { %3962 = vst.msk [vmem:[#allocation2 + $0x20] sm:$0xff] %vm1718_vm11, %v3930_v50  ;;  %v4418_v19 = vadd.f32 %v6245_v15, %v4345_v61  ;;  %v3639_v47 = vpop.f32.mrb[1].mxu1 }
 0x3fe   : > { %v3990_v32 = vld [vmem:[#allocation2] ss:$2 sm:$0xff]  ;;  %v6255_v34 = vadd.f32 %v6245_v15, %v3639_v47  ;;  %v4346_v52 = vpop.f32.mrb[2].mxu1 }
 0x3ff   : > { %4005 = vst.msk [vmem:[%s6250_s27] sm:$0xff] %vm1718_vm11, %v3990_v32  ;;  %v4422_v20 = vadd.f32 %v6245_v15, %v4346_v52  ;;  %v3642_v9 = vpop.f32.mrb[3].mxu1  ;;  %v3801_v5 = vrot.slane %v4418_v19, 1 }
 0x400   : > { %v4424_v42 = vadd.f32 %v6245_v15, %v3642_v9  ;;  %v3797_v48 = vrot.slane %v6255_v34, 1 }
 0x401   : > { %v3803_v17 = vrot.slane %v4422_v20, 1 }
 0x402   : > { %v3799_v24 = vrot.slane %v4424_v42, 1 }
 0x403   : > { %v3804_v63 = vsel %vm1232_vm0, %v3801_v5, %v3803_v17 }
 0x404   : > { %v3800_v12 = vsel %vm1232_vm0, %v3797_v48, %v3799_v24  ;;  %v3802_v37 = vsel %vm1232_vm0, %v3799_v24, %v3801_v5  ;;  %v4349_v59 = vpop.f32.mrb[4].mxu1 }
 0x405   : > { %v3878_v40 = vadd.f32 %v6255_v34, %v3800_v12  ;;  %v3879_v14 = vadd.f32 %v4424_v42, %v3802_v37  ;;  %v4426_v27 = vadd.f32 %v6245_v15, %v4349_v59  ;;  %v3655_v13 = vpop.f32.mrb[5].mxu1 }
 0x406   : > { %v4428_v43 = vadd.f32 %v6245_v15, %v3655_v13  ;;  %v4350_v0 = vpop.f32.mrb[6].mxu1 }
 0x407   : > { %v3911_v11 = vadd.f32 %v4422_v20, %v3879_v14  ;;  %v3910_v51 = vadd.f32 %v4418_v19, %v3878_v40  ;;  %v4430_v2 = vadd.f32 %v6245_v15, %v4350_v0  ;;  %v3658_v23 = vpop.f32.mrb[7].mxu1  ;;  %v3809_v6 = vrot.slane %v4426_v27, 1 }
 0x408   : > { %v3805_v30 = vrot.slane %v4428_v43, 1  ;;  %v4432_v1 = vadd.f32 %v6245_v15, %v3658_v23 }
 0x409   : > { %v3942_v35 = vadd.f32 %v3910_v51, %v3804_v63  ;;  %v3811_v7 = vrot.slane %v4430_v2, 1 }
 0x40a   : > { %v3806_v54 = vsel %vm1232_vm0, %v3803_v17, %v3805_v30  ;;  %v3807_v58 = vrot.slane %v4432_v1, 1  ;;  %v4303_v45 = vpop.f32.mrb[40].mxu0 }
 0x40b   : > { %3974 = vst.msk [vmem:[#allocation2 + $0x80] sm:$0xff] %vm1718_vm11, %v3942_v35  ;;  %v3943_v44 = vadd.f32 %v3911_v11, %v3806_v54  ;;  %v3316_v53 = vadd.f32 %v4303_v45, %v6182_v29  ;;  %v3307_v3 = vpop.f32.mrb[41].mxu0  ;;  %v3812_v10 = vsel %vm1232_vm0, %v3809_v6, %v3811_v7 }
 0x40c   : > { %v3808_v21 = vsel %vm1232_vm0, %v3805_v30, %v3807_v58  ;;  %v3810_v62 = vsel %vm1232_vm0, %v3807_v58, %v3809_v6  ;;  %v3308_v16 = vadd.f32 %v6182_v29, %v3307_v3  ;;  %v4304_v36 = vpop.f32.mrb[42].mxu0  ;;  %v4353_v46 = vpop.f32.mrb[8].mxu1 }
 0x40d   : > { %v3882_v8 = vadd.f32 %v4428_v43, %v3808_v21  ;;  %v3883_v33 = vadd.f32 %v4432_v1, %v3810_v62  ;;  %3975 = vst.msk [vmem:[#allocation2 + $0x88] sm:$0xff] %vm1718_vm11, %v3943_v44  ;;  %v3310_v60 = vpop.f32.mrb[43].mxu0  ;;  %v3671_v38 = vpop.f32.mrb[9].mxu1  ;;  %v4394_v39 = vadd.f32 %v6191_v22, %v3316_v53  ;;  %v3319_v61 = vadd.f32 %v4304_v36, %v6182_v29 }
 0x40e   : > { %v4397_v50 = vadd.f32 %v6191_v22, %v3308_v16  ;;  %v4434_v19 = vadd.f32 %v6245_v15, %v4353_v46  ;;  %v4354_v47 = vpop.f32.mrb[10].mxu1  ;;  %v3311_v52 = vadd.f32 %v6182_v29, %v3310_v60  ;;  %v4436_v20 = vadd.f32 %v6245_v15, %v3671_v38 }
 0x40f   : > { %v3915_v32 = vadd.f32 %v4430_v2, %v3883_v33  ;;  %v3674_v9 = vpop.f32.mrb[11].mxu1  ;;  %v4395_v42 = vadd.f32 %v4394_v39, %v6207_v41  ;;  %v4400_v17 = vadd.f32 %v6191_v22, %v3319_v61  ;;  %v3914_v12 = vadd.f32 %v4426_v27, %v3882_v8 }
 0x410   : > { %v4398_v5 = vadd.f32 %v4397_v50, %v6211_v49  ;;  %v4403_v24 = vadd.f32 %v6191_v22, %v3311_v52  ;;  %v3813_v63 = vrot.slane %v4436_v20, 1  ;;  %v3817_v40 = vrot.slane %v4434_v19, 1 }
 0x411   : > { %v6291_v59 = vadd.f32 %v4400_v17, %v6215_v4  ;;  %v3946_v13 = vadd.f32 %v3914_v12, %v3812_v10  ;;  %v4438_v43 = vadd.f32 %v6245_v15, %v4354_v47  ;;  %v4440_v41 = vadd.f32 %v6245_v15, %v3674_v9 }
 0x412   : > { %v3781_v37 = vrot.slane %v4398_v5, 1  ;;  %v4404_v14 = vadd.f32 %v4403_v24, %v6218_v26  ;;  %v3785_v0 = vrot.slane %v4395_v42, 1  ;;  %v3814_v51 = vsel %vm1232_vm0, %v3811_v7, %v3813_v63 }
 0x413   : > { %v3787_v11 = vrot.slane %v6291_v59, 1  ;;  %3978 = vst.msk [vmem:[#allocation2 + $0xa0] sm:$0xff] %vm1718_vm11, %v3946_v13  ;;  %v3819_v23 = vrot.slane %v4438_v43, 1  ;;  %v3815_v1 = vrot.slane %v4440_v41, 1  ;;  %v3947_v6 = vadd.f32 %v3915_v32, %v3814_v51 }
 0x414   : > { %v3998_v49 = vld [vmem:[#allocation2 + $0x80] ss:$2 sm:$0xff]  ;;  %v3782_v27 = vsel %vm1232_vm0, %v3779_v57, %v3781_v37  ;;  %v4357_v4 = vpop.f32.mrb[12].mxu1  ;;  %v3783_v2 = vrot.slane %v4404_v14, 1 }
 0x415   : > { %4009 = vst.msk [vmem:[%s6250_s27 + $0x20] sm:$0xff] %vm1718_vm11, %v3998_v49  ;;  %v3931_v26 = vadd.f32 %v6241_v55, %v3782_v27  ;;  %v3687_v30 = vpop.f32.mrb[13].mxu1  ;;  %v4442_v35 = vadd.f32 %v6245_v15, %v4357_v4  ;;  %v3816_v44 = vsel %vm1232_vm0, %v3813_v63, %v3815_v1  ;;  %3979 = vst.msk [vmem:[#allocation2 + $0xa8] sm:$0xff] %vm1718_vm11, %v3947_v6 }
 0x416   : > { %v4358_v54 = vpop.f32.mrb[14].mxu1  ;;  %v3784_v31 = vsel %vm1232_vm0, %v3781_v37, %v3783_v2  ;;  %v3786_v57 = vsel %vm1232_vm0, %v3783_v2, %v3785_v0  ;;  %v4444_v7 = vadd.f32 %v6245_v15, %v3687_v30  ;;  %v3818_v53 = vsel %vm1232_vm0, %v3815_v1, %v3817_v40 }
 0x417   : > { %3963 = vst.msk [vmem:[#allocation2 + $0x28] sm:$0xff] %vm1718_vm11, %v3931_v26  ;;  %v3690_v58 = vpop.f32.mrb[15].mxu1  ;;  %v3870_v45 = vadd.f32 %v4398_v5, %v3784_v31  ;;  %v3871_v55 = vadd.f32 %v4404_v14, %v3786_v57  ;;  %v3886_v3 = vadd.f32 %v4436_v20, %v3816_v44  ;;  %v3887_v21 = vadd.f32 %v4440_v41, %v3818_v53 }
 0x418   : > { %v3825_v62 = vrot.slane %v4442_v35, 1  ;;  %v3820_v16 = vsel %vm1232_vm0, %v3817_v40, %v3819_v23  ;;  %v3821_v36 = vrot.slane %v4444_v7, 1  ;;  %v4446_v33 = vadd.f32 %v6245_v15, %v4358_v54 }
 0x419   : > { %v6314_v10 = vadd.f32 %v6291_v59, %v3871_v55  ;;  %v3918_v46 = vadd.f32 %v4434_v19, %v3886_v3  ;;  %v3919_v8 = vadd.f32 %v4438_v43, %v3887_v21  ;;  %v4448_v60 = vadd.f32 %v6245_v15, %v3690_v58 }
 0x41a   : > { %v3822_v39 = vsel %vm1232_vm0, %v3819_v23, %v3821_v36  ;;  %v3788_v50 = vsel %vm1232_vm0, %v3785_v0, %v3787_v11  ;;  %v3902_v61 = vadd.f32 %v4395_v42, %v3870_v45  ;;  %v3827_v32 = vrot.slane %v4446_v33, 1 }
 0x41b   : > { %v3950_v38 = vadd.f32 %v3918_v46, %v3820_v16  ;;  %v3823_v52 = vrot.slane %v4448_v60, 1  ;;  %v3951_v20 = vadd.f32 %v3919_v8, %v3822_v39 }
 0x41c   : > { %v4000_v19 = vld [vmem:[#allocation2 + $0xa0] ss:$2 sm:$0xff]  ;;  %v3934_v9 = vadd.f32 %v3902_v61, %v3788_v50  ;;  %v3828_v15 = vsel %vm1232_vm0, %v3825_v62, %v3827_v32  ;;  %v3861_v5 = vsel %vm1232_vm0, %v3827_v32, 0.0 }
 0x41d   : > { %3982 = vst.msk [vmem:[#allocation2 + $0xc0] sm:$0xff] %vm1718_vm11, %v3950_v38  ;;  %4010 = vst.msk [vmem:[%s6250_s27 + $0x28] sm:$0xff] %vm1718_vm11, %v4000_v19  ;;  %v3824_v17 = vsel %vm1232_vm0, %v3821_v36, %v3823_v52  ;;  %v3826_v42 = vsel %vm1232_vm0, %v3823_v52, %v3825_v62 }
 0x41e   : > { %v3992_v47 = vld [vmem:[#allocation2 + $0x20] ss:$2 sm:$0xff]  ;;  %v3890_v24 = vadd.f32 %v4444_v7, %v3824_v17  ;;  %v3891_v63 = vadd.f32 %v4448_v60, %v3826_v42  ;;  %3983 = vst.msk [vmem:[#allocation2 + $0xc8] sm:$0xff] %vm1718_vm11, %v3951_v20  ;;  %3966 = vst.msk [vmem:[#allocation2 + $0x40] sm:$0xff] %vm1718_vm11, %v3934_v9 }
 0x41f   : > { %4006 = vst.msk [vmem:[%s6250_s27 + $0x8] sm:$0xff] %vm1718_vm11, %v3992_v47 }
 0x420   : > { %v3922_v12 = vadd.f32 %v4442_v35, %v3890_v24  ;;  %v3923_v37 = vadd.f32 %v4446_v33, %v3891_v63 }
 0x422   : > { %v3954_v40 = vadd.f32 %v3922_v12, %v3828_v15  ;;  %v3955_v14 = vadd.f32 %v3923_v37, %v3861_v5 }
 0x424   : > { %3986 = vst.msk [vmem:[#allocation2 + $0xe0] sm:$0xff] %vm1718_vm11, %v3954_v40  ;;  %3987 = vst.msk [vmem:[#allocation2 + $0xe8] sm:$0xff] %vm1718_vm11, %v3955_v14 }
 0x425   : > { %v4002_v43 = vld [vmem:[#allocation2 + $0xc0] ss:$2 sm:$0xff] }
 0x426   : > { %4011 = vst.msk [vmem:[%s6250_s27 + $0x30] sm:$0xff] %vm1718_vm11, %v4002_v43 }
 0x427   : > { %v4307_v13 = vpop.f32.mrb[44].mxu0 }
 0x428   : > { %v3332_v41 = vadd.f32 %v4307_v13, %v6182_v29  ;;  %v3323_v49 = vpop.f32.mrb[45].mxu0 }
 0x429   : > { %v3324_v0 = vadd.f32 %v6182_v29, %v3323_v49  ;;  %v4308_v27 = vpop.f32.mrb[46].mxu0 }
 0x42a   : > { %v4406_v51 = vadd.f32 %v6191_v22, %v3332_v41  ;;  %v3335_v4 = vadd.f32 %v4308_v27, %v6182_v29  ;;  %v3326_v2 = vpop.f32.mrb[47].mxu0 }
 0x42b   : > { %v4409_v26 = vadd.f32 %v6191_v22, %v3324_v0  ;;  %v3327_v23 = vadd.f32 %v6182_v29, %v3326_v2  ;;  %v4004_v54 = vld [vmem:[#allocation2 + $0xe0] ss:$2 sm:$0xff] }
 0x42c   : > { %v4407_v30 = vadd.f32 %v4406_v51, %v6225_v18  ;;  %v4412_v1 = vadd.f32 %v6191_v22, %v3335_v4  ;;  %4012 = vst.msk [vmem:[%s6250_s27 + $0x38] sm:$0xff] %vm1718_vm11, %v4004_v54 }
 0x42d   : > { %v4410_v6 = vadd.f32 %v4409_v26, %v6230_v28  ;;  %v4415_v35 = vadd.f32 %v6191_v22, %v3327_v23 }
 0x42e   : > { %v4413_v31 = vadd.f32 %v4412_v1, %v6234_v56  ;;  %v3793_v58 = vrot.slane %v4407_v30, 1 }
 0x42f   : > { %v3789_v57 = vrot.slane %v4410_v6, 1  ;;  %v4416_v7 = vadd.f32 %v4415_v35, %v6237_v25 }
 0x430   : > { %v3795_v45 = vrot.slane %v4413_v31, 1 }
 0x431   : > { %v3790_v29 = vsel %vm1232_vm0, %v3787_v11, %v3789_v57  ;;  %v3791_v18 = vrot.slane %v4416_v7, 1 }
 0x432   : > { %v3796_v28 = vsel %vm1232_vm0, %v3793_v58, %v3795_v45  ;;  %v3798_v22 = vsel %vm1232_vm0, %v3795_v45, %v3797_v48  ;;  %v3935_v56 = vadd.f32 %v6314_v10, %v3790_v29 }
 0x433   : > { %v3792_v55 = vsel %vm1232_vm0, %v3789_v57, %v3791_v18  ;;  %v3794_v25 = vsel %vm1232_vm0, %v3791_v18, %v3793_v58 }
 0x434   : > { %v3874_v44 = vadd.f32 %v4410_v6, %v3792_v55  ;;  %v3875_v53 = vadd.f32 %v4416_v7, %v3794_v25  ;;  %3967 = vst.msk [vmem:[#allocation2 + $0x48] sm:$0xff] %vm1718_vm11, %v3935_v56 }
 0x436   : > { %v3906_v59 = vadd.f32 %v4407_v30, %v3874_v44  ;;  %v3907_v11 = vadd.f32 %v4413_v31, %v3875_v53 }
 0x438   : > { %v3938_v3 = vadd.f32 %v3906_v59, %v3796_v28  ;;  %v3939_v21 = vadd.f32 %v3907_v11, %v3798_v22 }
 0x43a   : > { %3970 = vst.msk [vmem:[#allocation2 + $0x60] sm:$0xff] %vm1718_vm11, %v3938_v3  ;;  %3971 = vst.msk [vmem:[#allocation2 + $0x68] sm:$0xff] %vm1718_vm11, %v3939_v21 }
 0x43b   : > { %v3994_v34 = vld [vmem:[#allocation2 + $0x40] ss:$2 sm:$0xff] }
 0x43c   : > { %4007 = vst.msk [vmem:[%s6250_s27 + $0x10] sm:$0xff] %vm1718_vm11, %v3994_v34 }
 0x441   : > { %v3996_v48 = vld [vmem:[#allocation2 + $0x60] ss:$2 sm:$0xff] }
 0x442   : > { %4008 = vst.msk [vmem:[%s6250_s27 + $0x18] sm:$0xff] %vm1718_vm11, %v3996_v48 }
 0x443 PF: > { %s17_s24 = sadd.s32 1, %s4553_s24  }
 0x444   : > { %p14_p4 = scmp.ge.s32.totalorder %s17_s24, 4  }
 0x446   :  { %16 = sbr.rel (!%p14_p4) target bundleno = 1 (0x1), region = 85 }

</bundles_post_ra>
